<compile_context>
chip_gen: v5e
topology: v5e:2x2
jax: 0.10.0
libtpu: 0.0.40
codegen_flags: <defaults>
</compile_context>

<pallas_src>
import math
from functools import partial

import jax
import jax.numpy as jnp
from jax.experimental import pallas as pl
from jax.experimental.pallas import tpu as pltpu

LANE = 128


# ----------------------------- in-kernel math helpers -----------------------------

def _layernorm(x, w, b, eps=1e-5):
    # x: (M, C) fp32; w, b: (1, C)  -- matches torch.nn.LayerNorm (biased var)
    mu = jnp.mean(x, axis=-1, keepdims=True)
    var = jnp.mean((x - mu) ** 2, axis=-1, keepdims=True)
    return (x - mu) * jax.lax.rsqrt(var + eps) * w + b


def _new_gelu(x):
    return 0.5 * x * (1.0 + jnp.tanh(math.sqrt(2.0 / math.pi) * (x + 0.044715 * x ** 3)))


def _attn_block(x, ln_w, ln_b, w_qkv, b_qkv, w_proj, b_proj, seqs, seq_len, n_head):
    # x: (M, C) fp32 with M = seqs*seq_len.  w_qkv: (C, 3C) bf16 (Q cols pre-scaled).
    M, C = x.shape
    hd = C // n_head
    h = _layernorm(x, ln_w, ln_b)

    # Single full-width QKV matmul (fills the MXU; no head-split RHS, no broadcast).
    qkv = jnp.dot(h.astype(jnp.bfloat16), w_qkv,
                  preferred_element_type=jnp.float32) + b_qkv            # (M, 3C) f32

    # Per-head score / PV matmuls (same MXU work as a batched dot_general, which
    # Mosaic would unroll per head anyway); one (seqs,T,T) fp32 buffer live at a time.
    heads = []
    for hi in range(n_head):
        lo = hi * hd
        q = qkv[:, lo:lo + hd].reshape(seqs, seq_len, hd)
        k = qkv[:, C + lo:C + lo + hd].reshape(seqs, seq_len, hd)
        v = qkv[:, 2 * C + lo:2 * C + lo + hd].reshape(seqs, seq_len, hd)
        s = jnp.einsum('bqd,bkd->bqk', q.astype(jnp.bfloat16), k.astype(jnp.bfloat16),
                       preferred_element_type=jnp.float32)               # (seqs, T, T)
        m = jnp.max(s, axis=-1, keepdims=True)
        e = jnp.exp(s - m)
        p = e * pl.reciprocal(jnp.sum(e, axis=-1, keepdims=True), approx=True)
        y = jnp.einsum('bqk,bkd->bqd', p.astype(jnp.bfloat16), v.astype(jnp.bfloat16),
                       preferred_element_type=jnp.float32)               # (seqs, T, hd)
        heads.append(y.reshape(M, hd))

    # Lane-concat head outputs back to (M, C) and run ONE K=C output projection.
    y2d = jnp.concatenate(heads, axis=-1)                                # (M, C)
    out = jnp.dot(y2d.astype(jnp.bfloat16), w_proj,
                  preferred_element_type=jnp.float32) + b_proj
    return x + out


def _mlp_block(x, ln_w, ln_b, w1, b1, w2, b2):
    # w1: (C, 4C) bf16, w2: (4C, C) bf16; biases fp32.
    h = _layernorm(x, ln_w, ln_b)
    f = jnp.dot(h.astype(jnp.bfloat16), w1, preferred_element_type=jnp.float32) + b1
    f = _new_gelu(f)
    o = jnp.dot(f.astype(jnp.bfloat16), w2, preferred_element_type=jnp.float32) + b2
    return x + o


# ----------------------------- fused, layer-streamed kernel -----------------------------

def _fused_kernel(*refs, n_head, seqs, seq_len, has_pos):
    resid = refs[-1]          # VMEM scratch: residual stream (M, C) fp32
    o_ref = refs[-2]
    in_refs = refs[:-2]

    idx = 0
    x_ref = in_refs[idx]; idx += 1
    pos_ref = None
    if has_pos:
        pos_ref = in_refs[idx]; idx += 1
    emb_w = in_refs[idx]; idx += 1
    if has_pos:
        pos_w = in_refs[idx]; pos_b = in_refs[idx + 1]; idx += 2
    (ln1w, ln1b, wqkv, bqkv, wap, bap,
     ln2w, ln2b, wfc, bfc, wmp, bmp) = in_refs[idx:idx + 12]
    idx += 12
    lnfw, lnfb, pw, pb = in_refs[idx:idx + 4]

    layer = pl.program_id(1)

    @pl.when(layer == 0)
    def _embed():
        h = jnp.dot(x_ref[...].astype(jnp.bfloat16), emb_w[...],
                    preferred_element_type=jnp.float32)                  # (M, C)
        if has_pos:
            h = h + jnp.dot(pos_ref[...].astype(jnp.bfloat16), pos_w[...],
                            preferred_element_type=jnp.float32) + pos_b[...]
        resid[...] = h        # dropout p=0.0 -> identity

    x = resid[...]
    x = _attn_block(x, ln1w[0], ln1b[0], wqkv[0], bqkv[0], wap[0], bap[0],
                    seqs, seq_len, n_head)
    x = _mlp_block(x, ln2w[0], ln2b[0], wfc[0], bfc[0], wmp[0], bmp[0])
    resid[...] = x

    @pl.when(layer == pl.num_programs(1) - 1)
    def _final():
        h = _layernorm(x, lnfw[...], lnfb[...])
        out = jnp.dot(h.astype(jnp.bfloat16), pw[...],
                      preferred_element_type=jnp.float32) + pb[...]      # (M, O_pad)
        o_ref[...] = out.reshape(o_ref.shape).astype(o_ref.dtype)


# ----------------------------- wrapper -----------------------------

def _choose_seqs_per_chunk(batch, seq_len, target_rows=256):
    spc = max(1, min(batch, target_rows // max(seq_len, 1)))
    if batch >= 2 and (batch // spc) < 2:
        spc = (batch + 1) // 2          # keep >=2 parallel grid steps (v7x: 2 TCs)
    while batch % spc:
        spc -= 1
    return spc


def _vmem_limit_bytes():
    cap = 128 * 1024 * 1024
    try:
        cap = int(pltpu.get_tpu_info().vmem_capacity_bytes)
    except Exception:
        pass
    # ~75% of physical VMEM (48 MiB on v7x), capped at 100 MiB on v5e/v6e.
    return int(min(cap * 3 // 4, 100 * 1024 * 1024))


def model_forward(kp, x, pos=None):
    """kp: kernel-layout params from prepare_kernel_params(); x: (B,T,Din); pos: (B,T,4) or None."""
    B, T, Din = x.shape
    has_pos = pos is not None
    L = kp['n_layer']
    C = kp['n_embd']
    H = kp['num_heads']
    o_pad = kp['proj_w'].shape[1]

    seqs = _choose_seqs_per_chunk(B, T)
    n_chunks = B // seqs
    M = seqs * T

    x2 = x.reshape(B * T, Din)
    pos2 = pos.reshape(B * T, pos.shape[-1]) if has_pos else None

    def run(single_buffer_consts):
        const_kw = {}
        if single_buffer_consts and hasattr(pl, "Buffered"):
            const_kw = dict(pipeline_mode=pl.Buffered(1))   # grid-invariant -> no double buffer

        def const_spec(a):
            return pl.BlockSpec(a.shape, lambda c, l, _n=a.ndim: (0,) * _n, **const_kw)

        def layer_spec(a):  # stacked (L, ...) per-layer weights, streamed by layer id
            return pl.BlockSpec((1,) + a.shape[1:], lambda c, l: (l, 0, 0))

        call_args, in_specs = [], []

        def add(arr, spec):
            call_args.append(arr)
            in_specs.append(spec)

        add(x2, pl.BlockSpec((M, Din), lambda c, l: (c, 0)))
        if has_pos:
            add(pos2, pl.BlockSpec((M, pos2.shape[-1]), lambda c, l: (c, 0)))
        add(kp['emb_w'], const_spec(kp['emb_w']))
        if has_pos:
            add(kp['pos_w'], const_spec(kp['pos_w']))
            add(kp['pos_b'], const_spec(kp['pos_b']))
        for name in ('ln1_w', 'ln1_b', 'qkv_w', 'qkv_b', 'ap_w', 'ap_b',
                     'ln2_w', 'ln2_b', 'fc_w', 'fc_b', 'mp_w', 'mp_b'):
            add(kp[name], layer_spec(kp[name]))
        for name in ('ln_f_w', 'ln_f_b', 'proj_w', 'proj_b'):
            add(kp[name], const_spec(kp[name]))

        return pl.pallas_call(
            partial(_fused_kernel, n_head=H, seqs=seqs, seq_len=T, has_pos=has_pos),
            out_shape=jax.ShapeDtypeStruct((B, T, o_pad), jnp.bfloat16),
            grid=(n_chunks, L),
            in_specs=in_specs,
            out_specs=pl.BlockSpec((seqs, T, o_pad), lambda c, l: (c, 0, 0)),
            scratch_shapes=[pltpu.VMEM((M, C), jnp.float32)],
            compiler_params=pltpu.CompilerParams(
                dimension_semantics=("parallel", "arbitrary"),
                vmem_limit_bytes=_vmem_limit_bytes()),
        )(*call_args)

    try:
        out = run(True)
    except Exception:
        out = run(False)   # fallback: default (double-buffered) constant specs
    return out[..., :kp['output_dim']].astype(jnp.float32)


# ----------------------------- parameters -----------------------------

def init_params(key, config):
    """Torch-layout parameters (Linear weights (out,in), biases (1,out))."""
    def lin(k, out_f, in_f, bias=True):
        k1, k2 = jax.random.split(k)
        bound = 1.0 / math.sqrt(in_f)
        w = jax.random.uniform(k1, (out_f, in_f), jnp.float32, -bound, bound)
        b = (jax.random.uniform(k2, (1, out_f), jnp.float32, -bound, bound)
             if bias else jnp.zeros((1, out_f), jnp.float32))
        return w, b

    C = config['n_embd']
    keys = jax.random.split(key, 3 + config['attention_layers'])
    emb_w, _ = lin(keys[0], C, config['input_dim'], bias=False)
    pos_w, pos_b = lin(keys[1], C, 4)

    blocks = []
    for li in range(config['attention_layers']):
        ks = jax.random.split(keys[3 + li], 4)
        attn_w, attn_b = lin(ks[0], 3 * C, C)
        attn_proj_w, attn_proj_b = lin(ks[1], C, C)
        fc_w, fc_b = lin(ks[2], 4 * C, C)
        mlp_proj_w, mlp_proj_b = lin(ks[3], C, 4 * C)
        blocks.append(dict(
            ln1_w=jnp.ones((1, C), jnp.float32), ln1_b=jnp.zeros((1, C), jnp.float32),
            attn_w=attn_w, attn_b=attn_b,
            attn_proj_w=attn_proj_w, attn_proj_b=attn_proj_b,
            ln2_w=jnp.ones((1, C), jnp.float32), ln2_b=jnp.zeros((1, C), jnp.float32),
            fc_w=fc_w, fc_b=fc_b,
            mlp_proj_w=mlp_proj_w, mlp_proj_b=mlp_proj_b,
        ))

    proj_w, proj_b = lin(keys[2], config['output_dim'], C)
    return dict(
        emb_w=emb_w, pos_w=pos_w, pos_b=pos_b, blocks=blocks,
        ln_f_w=jnp.ones((1, C), jnp.float32), ln_f_b=jnp.zeros((1, C), jnp.float32),
        proj_w=proj_w, proj_b=proj_b,
        num_heads=config['num_heads'], output_dim=config['output_dim'],
    )


def prepare_kernel_params(params):
    """Torch layout -> kernel layout: pre-transposed bf16 matmul weights, per-layer
       tensors stacked along a leading layer axis (for layer-streaming), attention
       scale folded into the Q columns, lane-padded output projection."""
    C = params['emb_w'].shape[0]
    H = params['num_heads']
    hd = C // H
    scale = 1.0 / math.sqrt(hd)
    bf = jnp.bfloat16
    L = len(params['blocks'])

    def t_bf(w):  # (out, in) -> (in, out), bf16
        return jnp.asarray(w.T, bf)

    acc = {k: [] for k in ('ln1_w', 'ln1_b', 'qkv_w', 'qkv_b', 'ap_w', 'ap_b',
                           'ln2_w', 'ln2_b', 'fc_w', 'fc_b', 'mp_w', 'mp_b')}
    for p in params['blocks']:
        acc['ln1_w'].append(p['ln1_w']); acc['ln1_b'].append(p['ln1_b'])
        w = p['attn_w'].T                        # (C, 3C): cols [0:C]=Q, [C:2C]=K, [2C:3C]=V
        w = w.at[:, :C].multiply(scale)          # fold 1/sqrt(hd) into Q
        b = p['attn_b'].at[:, :C].multiply(scale)
        acc['qkv_w'].append(jnp.asarray(w, bf)); acc['qkv_b'].append(b)
        acc['ap_w'].append(t_bf(p['attn_proj_w'])); acc['ap_b'].append(p['attn_proj_b'])
        acc['ln2_w'].append(p['ln2_w']); acc['ln2_b'].append(p['ln2_b'])
        acc['fc_w'].append(t_bf(p['fc_w'])); acc['fc_b'].append(p['fc_b'])
        acc['mp_w'].append(t_bf(p['mlp_proj_w'])); acc['mp_b'].append(p['mlp_proj_b'])

    kp = {k: jnp.stack(v, axis=0) for k, v in acc.items()}

    O = params['proj_w'].shape[0]
    o_pad = max(LANE, ((O + LANE - 1) // LANE) * LANE)
    pw_pad = jnp.zeros((o_pad, C), jnp.float32).at[:O].set(params['proj_w'])
    pb_pad = jnp.zeros((1, o_pad), jnp.float32).at[:, :O].set(params['proj_b'])

    kp.update(
        emb_w=t_bf(params['emb_w']),
        pos_w=t_bf(params['pos_w']), pos_b=params['pos_b'],
        ln_f_w=params['ln_f_w'], ln_f_b=params['ln_f_b'],
        proj_w=jnp.asarray(pw_pad.T, bf),   # (C, O_pad) bf16, zero-padded columns
        proj_b=pb_pad,                      # (1, O_pad)
        num_heads=H, output_dim=O, n_layer=L, n_embd=C,
    )
    return kp


# ----------------------------- pure-JAX fp32 reference (sanity check) -----------------------------

def _ref_forward(params, x, pos):
    def ln(h, w, b):
        mu = jnp.mean(h, -1, keepdims=True)
        var = jnp.mean((h - mu) ** 2, -1, keepdims=True)
        return (h - mu) / jnp.sqrt(var + 1e-5) * w[0] + b[0]

    H = params['num_heads']
    out = x @ params['emb_w'].T + pos @ params['pos_w'].T + params['pos_b'][0]
    B, T, C = out.shape
    hd = C // H
    for p in params['blocks']:
        h = ln(out, p['ln1_w'], p['ln1_b'])
        qkv = h @ p['attn_w'].T + p['attn_b'][0]
        q, k, v = jnp.split(qkv, 3, axis=-1)
        q = q.reshape(B, T, H, hd).transpose(0, 2, 1, 3)
        k = k.reshape(B, T, H, hd).transpose(0, 2, 1, 3)
        v = v.reshape(B, T, H, hd).transpose(0, 2, 1, 3)
        att = jax.nn.softmax((q @ k.transpose(0, 1, 3, 2)) / math.sqrt(hd), axis=-1)
        y = (att @ v).transpose(0, 2, 1, 3).reshape(B, T, C)
        out = out + y @ p['attn_proj_w'].T + p['attn_proj_b'][0]
        h2 = ln(out, p['ln2_w'], p['ln2_b'])
        f = _new_gelu(h2 @ p['fc_w'].T + p['fc_b'][0])
        out = out + f @ p['mlp_proj_w'].T + p['mlp_proj_b'][0]
    out = ln(out, params['ln_f_w'], params['ln_f_b'])
    return out @ params['proj_w'].T + params['proj_b'][0]


# ----------------------------- main -----------------------------

if __name__ == "__main__":
    config = dict(input_dim=16, output_dim=8, n_embd=32, num_heads=4,
                  attention_layers=2, dropout=0.0)

    key = jax.random.PRNGKey(0)
    kparam, kx, kpos = jax.random.split(key, 3)
    params = init_params(kparam, config)
    kernel_params = prepare_kernel_params(params)

    B, T = 2, 8
    x = jax.random.normal(kx, (B, T, config['input_dim']), jnp.float32)
    pos = jax.random.normal(kpos, (B, T, 4), jnp.float32)

    y = model_forward(kernel_params, x, pos)
    jax.block_until_ready(y)

    y_ref = _ref_forward(params, x, pos)
    assert y.shape == (B, T, config['output_dim'])
    max_err = float(jnp.max(jnp.abs(y - y_ref)))
    # bf16 matmul operands + bf16 output + approx reciprocal -> loosened tolerance vs fp32 ref
    assert jnp.allclose(y, y_ref, rtol=5e-2, atol=5e-2), f"mismatch vs reference, max err {max_err}"

    print("KERNEL_OK")
</pallas_src>

<mosaic_0001>
module attributes {stable_mosaic.version = 11 : i64} {
  func.func @_fused_kernel(%arg0: i32, %arg1: i32, %arg2: memref<8x16xf32, #tpu.memory_space<vmem>>, %arg3: memref<8x4xf32, #tpu.memory_space<vmem>>, %arg4: memref<16x32xbf16, #tpu.memory_space<vmem>>, %arg5: memref<4x32xbf16, #tpu.memory_space<vmem>>, %arg6: memref<1x32xf32, #tpu.memory_space<vmem>>, %arg7: memref<1x1x32xf32, #tpu.memory_space<vmem>>, %arg8: memref<1x1x32xf32, #tpu.memory_space<vmem>>, %arg9: memref<1x32x96xbf16, #tpu.memory_space<vmem>>, %arg10: memref<1x1x96xf32, #tpu.memory_space<vmem>>, %arg11: memref<1x32x32xbf16, #tpu.memory_space<vmem>>, %arg12: memref<1x1x32xf32, #tpu.memory_space<vmem>>, %arg13: memref<1x1x32xf32, #tpu.memory_space<vmem>>, %arg14: memref<1x1x32xf32, #tpu.memory_space<vmem>>, %arg15: memref<1x32x128xbf16, #tpu.memory_space<vmem>>, %arg16: memref<1x1x128xf32, #tpu.memory_space<vmem>>, %arg17: memref<1x128x32xbf16, #tpu.memory_space<vmem>>, %arg18: memref<1x1x32xf32, #tpu.memory_space<vmem>>, %arg19: memref<1x32xf32, #tpu.memory_space<vmem>>, %arg20: memref<1x32xf32, #tpu.memory_space<vmem>>, %arg21: memref<32x128xbf16, #tpu.memory_space<vmem>>, %arg22: memref<1x128xf32, #tpu.memory_space<vmem>>, %arg23: memref<1x8x128xbf16, #tpu.memory_space<vmem>>, %arg24: memref<8x32xf32, #tpu.memory_space<vmem>>) attributes {dimension_semantics = [#tpu.dimension_semantics<parallel>, #tpu.dimension_semantics<arbitrary>], iteration_bounds = array<i64: 2, 2>, scalar_prefetch = 0 : i64, scratch_operands = 1 : i64, tpu.core_type = #tpu.core_type<tc>, window_params = [{transform_indices = @transform_0, window_bounds = array<i64: 8, 16>}, {transform_indices = @transform_1, window_bounds = array<i64: 8, 4>}, {pipeline_mode = #tpu.pipeline_mode<synchronous>, transform_indices = @transform_2, window_bounds = array<i64: 16, 32>}, {pipeline_mode = #tpu.pipeline_mode<synchronous>, transform_indices = @transform_3, window_bounds = array<i64: 4, 32>}, {pipeline_mode = #tpu.pipeline_mode<synchronous>, transform_indices = @transform_4, window_bounds = array<i64: 1, 32>}, {transform_indices = @transform_5, window_bounds = array<i64: 1, 1, 32>}, {transform_indices = @transform_6, window_bounds = array<i64: 1, 1, 32>}, {transform_indices = @transform_7, window_bounds = array<i64: 1, 32, 96>}, {transform_indices = @transform_8, window_bounds = array<i64: 1, 1, 96>}, {transform_indices = @transform_9, window_bounds = array<i64: 1, 32, 32>}, {transform_indices = @transform_10, window_bounds = array<i64: 1, 1, 32>}, {transform_indices = @transform_11, window_bounds = array<i64: 1, 1, 32>}, {transform_indices = @transform_12, window_bounds = array<i64: 1, 1, 32>}, {transform_indices = @transform_13, window_bounds = array<i64: 1, 32, 128>}, {transform_indices = @transform_14, window_bounds = array<i64: 1, 1, 128>}, {transform_indices = @transform_15, window_bounds = array<i64: 1, 128, 32>}, {transform_indices = @transform_16, window_bounds = array<i64: 1, 1, 32>}, {pipeline_mode = #tpu.pipeline_mode<synchronous>, transform_indices = @transform_17, window_bounds = array<i64: 1, 32>}, {pipeline_mode = #tpu.pipeline_mode<synchronous>, transform_indices = @transform_18, window_bounds = array<i64: 1, 32>}, {pipeline_mode = #tpu.pipeline_mode<synchronous>, transform_indices = @transform_19, window_bounds = array<i64: 32, 128>}, {pipeline_mode = #tpu.pipeline_mode<synchronous>, transform_indices = @transform_20, window_bounds = array<i64: 1, 128>}, {transform_indices = @transform_21, window_bounds = array<i64: 1, 8, 128>}]} {
    %c0_i32 = arith.constant 0 : i32
    %0 = arith.cmpi eq, %arg1, %c0_i32 : i32
    %1 = arith.extui %0 : i1 to i32
    %c0_i32_0 = arith.constant 0 : i32
    %2 = arith.cmpi ne, %1, %c0_i32_0 : i32
    scf.if %2 {
      %c0_74 = arith.constant 0 : index
      %c0_75 = arith.constant 0 : index
      %200 = vector.load %arg2[%c0_74, %c0_75] : memref<8x16xf32, #tpu.memory_space<vmem>>, vector<8x16xf32>
      %201 = arith.truncf %200 : vector<8x16xf32> to vector<8x16xbf16>
      %c0_76 = arith.constant 0 : index
      %c0_77 = arith.constant 0 : index
      %202 = vector.load %arg4[%c0_76, %c0_77] : memref<16x32xbf16, #tpu.memory_space<vmem>>, vector<16x32xbf16>
      %cst_78 = arith.constant dense<0.000000e+00> : vector<8x32xf32>
      %203 = tpu.matmul %201, %202, %cst_78 {dimension_numbers = #tpu.dot_dimension_numbers<[1], [0], [0], [1], [0, 0, 1, 1], [], []>} : vector<8x16xbf16>, vector<16x32xbf16>, vector<8x32xf32> -> vector<8x32xf32>
      %c0_79 = arith.constant 0 : index
      %c0_80 = arith.constant 0 : index
      %204 = vector.load %arg3[%c0_79, %c0_80] : memref<8x4xf32, #tpu.memory_space<vmem>>, vector<8x4xf32>
      %205 = arith.truncf %204 : vector<8x4xf32> to vector<8x4xbf16>
      %c0_81 = arith.constant 0 : index
      %c0_82 = arith.constant 0 : index
      %206 = vector.load %arg5[%c0_81, %c0_82] : memref<4x32xbf16, #tpu.memory_space<vmem>>, vector<4x32xbf16>
      %cst_83 = arith.constant dense<0.000000e+00> : vector<8x32xf32>
      %207 = tpu.matmul %205, %206, %cst_83 {dimension_numbers = #tpu.dot_dimension_numbers<[1], [0], [0], [1], [0, 0, 1, 1], [], []>} : vector<8x4xbf16>, vector<4x32xbf16>, vector<8x32xf32> -> vector<8x32xf32>
      %208 = arith.addf %203, %207 : vector<8x32xf32>
      %c0_84 = arith.constant 0 : index
      %c0_85 = arith.constant 0 : index
      %209 = vector.load %arg6[%c0_84, %c0_85] : memref<1x32xf32, #tpu.memory_space<vmem>>, vector<1x32xf32>
      %210 = vector.broadcast %209 : vector<1x32xf32> to vector<8x32xf32>
      %211 = arith.addf %208, %210 : vector<8x32xf32>
      %c0_86 = arith.constant 0 : index
      %c0_87 = arith.constant 0 : index
      %212 = vector.load %arg24[%c0_86, %c0_87] : memref<8x32xf32, #tpu.memory_space<vmem>>, vector<8x32xf32>
      tpu.vector_store %arg24[%c0_86, %c0_87], %211 {strides = array<i32>} : memref<8x32xf32, #tpu.memory_space<vmem>>, vector<8x32xf32>,
    } else {
    }
    %c0 = arith.constant 0 : index
    %c0_1 = arith.constant 0 : index
    %3 = vector.load %arg24[%c0, %c0_1] : memref<8x32xf32, #tpu.memory_space<vmem>>, vector<8x32xf32>
    %c0_2 = arith.constant 0 : index
    %c0_3 = arith.constant 0 : index
    %c0_4 = arith.constant 0 : index
    %4 = vector.load %arg7[%c0_2, %c0_3, %c0_4] : memref<1x1x32xf32, #tpu.memory_space<vmem>>, vector<1x1x32xf32>
    %5 = vector.shape_cast %4 : vector<1x1x32xf32> to vector<1x32xf32>
    %c0_5 = arith.constant 0 : index
    %c0_6 = arith.constant 0 : index
    %c0_7 = arith.constant 0 : index
    %6 = vector.load %arg8[%c0_5, %c0_6, %c0_7] : memref<1x1x32xf32, #tpu.memory_space<vmem>>, vector<1x1x32xf32>
    %7 = vector.shape_cast %6 : vector<1x1x32xf32> to vector<1x32xf32>
    %c0_8 = arith.constant 0 : index
    %c0_9 = arith.constant 0 : index
    %c0_10 = arith.constant 0 : index
    %8 = vector.load %arg9[%c0_8, %c0_9, %c0_10] : memref<1x32x96xbf16, #tpu.memory_space<vmem>>, vector<1x32x96xbf16>
    %9 = vector.shape_cast %8 : vector<1x32x96xbf16> to vector<32x96xbf16>
    %c0_11 = arith.constant 0 : index
    %c0_12 = arith.constant 0 : index
    %c0_13 = arith.constant 0 : index
    %10 = vector.load %arg10[%c0_11, %c0_12, %c0_13] : memref<1x1x96xf32, #tpu.memory_space<vmem>>, vector<1x1x96xf32>
    %11 = vector.shape_cast %10 : vector<1x1x96xf32> to vector<1x96xf32>
    %c0_14 = arith.constant 0 : index
    %c0_15 = arith.constant 0 : index
    %c0_16 = arith.constant 0 : index
    %12 = vector.load %arg11[%c0_14, %c0_15, %c0_16] : memref<1x32x32xbf16, #tpu.memory_space<vmem>>, vector<1x32x32xbf16>
    %13 = vector.shape_cast %12 : vector<1x32x32xbf16> to vector<32x32xbf16>
    %c0_17 = arith.constant 0 : index
    %c0_18 = arith.constant 0 : index
    %c0_19 = arith.constant 0 : index
    %14 = vector.load %arg12[%c0_17, %c0_18, %c0_19] : memref<1x1x32xf32, #tpu.memory_space<vmem>>, vector<1x1x32xf32>
    %15 = vector.shape_cast %14 : vector<1x1x32xf32> to vector<1x32xf32>
    %cst = arith.constant dense<0.000000e+00> : vector<8xf32>
    %16 = vector.multi_reduction <add>, %3, %cst [1] : vector<8x32xf32> to vector<8xf32>
    %17 = vector.shape_cast %16 : vector<8xf32> to vector<8x1xf32>
    %cst_20 = arith.constant 3.200000e+01 : f32
    %18 = vector.broadcast %cst_20 : f32 to vector<8x1xf32>
    %19 = arith.divf %17, %18 : vector<8x1xf32>
    %20 = vector.broadcast %19 : vector<8x1xf32> to vector<8x32xf32>
    %21 = arith.subf %3, %20 : vector<8x32xf32>
    %22 = arith.mulf %21, %21 : vector<8x32xf32>
    %cst_21 = arith.constant dense<0.000000e+00> : vector<8xf32>
    %23 = vector.multi_reduction <add>, %22, %cst_21 [1] : vector<8x32xf32> to vector<8xf32>
    %24 = vector.shape_cast %23 : vector<8xf32> to vector<8x1xf32>
    %cst_22 = arith.constant 3.200000e+01 : f32
    %25 = vector.broadcast %cst_22 : f32 to vector<8x1xf32>
    %26 = arith.divf %24, %25 : vector<8x1xf32>
    %27 = vector.broadcast %19 : vector<8x1xf32> to vector<8x32xf32>
    %28 = arith.subf %3, %27 : vector<8x32xf32>
    %cst_23 = arith.constant 9.99999974E-6 : f32
    %29 = vector.broadcast %cst_23 : f32 to vector<8x1xf32>
    %30 = arith.addf %26, %29 : vector<8x1xf32>
    %31 = math.rsqrt %30 : vector<8x1xf32>
    %32 = vector.broadcast %31 : vector<8x1xf32> to vector<8x32xf32>
    %33 = arith.mulf %28, %32 : vector<8x32xf32>
    %34 = vector.broadcast %5 : vector<1x32xf32> to vector<8x32xf32>
    %35 = arith.mulf %33, %34 : vector<8x32xf32>
    %36 = vector.broadcast %7 : vector<1x32xf32> to vector<8x32xf32>
    %37 = arith.addf %35, %36 : vector<8x32xf32>
    %38 = arith.truncf %37 : vector<8x32xf32> to vector<8x32xbf16>
    %cst_24 = arith.constant dense<0.000000e+00> : vector<8x96xf32>
    %39 = tpu.matmul %38, %9, %cst_24 {dimension_numbers = #tpu.dot_dimension_numbers<[1], [0], [0], [1], [0, 0, 1, 1], [], []>} : vector<8x32xbf16>, vector<32x96xbf16>, vector<8x96xf32> -> vector<8x96xf32>
    %40 = vector.broadcast %11 : vector<1x96xf32> to vector<8x96xf32>
    %41 = arith.addf %39, %40 : vector<8x96xf32>
    %42 = vector.extract_strided_slice %41 {offsets = [0, 0], sizes = [8, 8], strides = [1, 1]} : vector<8x96xf32> to vector<8x8xf32>
    %43 = vector.shape_cast %42 : vector<8x8xf32> to vector<1x8x8xf32>
    %44 = vector.extract_strided_slice %41 {offsets = [0, 32], sizes = [8, 8], strides = [1, 1]} : vector<8x96xf32> to vector<8x8xf32>
    %45 = vector.shape_cast %44 : vector<8x8xf32> to vector<1x8x8xf32>
    %46 = vector.extract_strided_slice %41 {offsets = [0, 64], sizes = [8, 8], strides = [1, 1]} : vector<8x96xf32> to vector<8x8xf32>
    %47 = vector.shape_cast %46 : vector<8x8xf32> to vector<1x8x8xf32>
    %48 = arith.truncf %43 : vector<1x8x8xf32> to vector<1x8x8xbf16>
    %49 = arith.truncf %45 : vector<1x8x8xf32> to vector<1x8x8xbf16>
    "tpu.trace_start"() <{level = 10 : i32, message = "bqd,bkd->bqk"}> : () -> ()
    %cst_25 = arith.constant dense<0.000000e+00> : vector<1x8x8xf32>
    %50 = tpu.matmul %48, %49, %cst_25 {dimension_numbers = #tpu.dot_dimension_numbers<[2], [2], [1], [1], [0, 0, 0, 1, 1, 1], [0], [0]>} : vector<1x8x8xbf16>, vector<1x8x8xbf16>, vector<1x8x8xf32> -> vector<1x8x8xf32>
    "tpu.trace_stop"() : () -> ()
    %cst_26 = arith.constant dense<0xFF800000> : vector<1x8xf32>
    %51 = vector.multi_reduction <maximumf>, %50, %cst_26 [2] : vector<1x8x8xf32> to vector<1x8xf32>
    %52 = vector.shape_cast %51 : vector<1x8xf32> to vector<1x8x1xf32>
    %53 = vector.broadcast %52 : vector<1x8x1xf32> to vector<1x8x8xf32>
    %54 = arith.subf %50, %53 : vector<1x8x8xf32>
    %55 = math.exp %54 : vector<1x8x8xf32>
    %cst_27 = arith.constant dense<0.000000e+00> : vector<1x8xf32>
    %56 = vector.multi_reduction <add>, %55, %cst_27 [2] : vector<1x8x8xf32> to vector<1x8xf32>
    %57 = vector.shape_cast %56 : vector<1x8xf32> to vector<1x8x1xf32>
    %58 = tpu.reciprocal %57 {approx = true} : vector<1x8x1xf32> -> vector<1x8x1xf32>
    %59 = vector.broadcast %58 : vector<1x8x1xf32> to vector<1x8x8xf32>
    %60 = arith.mulf %55, %59 : vector<1x8x8xf32>
    %61 = arith.truncf %60 : vector<1x8x8xf32> to vector<1x8x8xbf16>
    %62 = arith.truncf %47 : vector<1x8x8xf32> to vector<1x8x8xbf16>
    "tpu.trace_start"() <{level = 10 : i32, message = "bqk,bkd->bqd"}> : () -> ()
    %cst_28 = arith.constant dense<0.000000e+00> : vector<1x8x8xf32>
    %63 = tpu.matmul %61, %62, %cst_28 {dimension_numbers = #tpu.dot_dimension_numbers<[2], [1], [1], [2], [0, 0, 0, 1, 1, 2], [0], [0]>} : vector<1x8x8xbf16>, vector<1x8x8xbf16>, vector<1x8x8xf32> -> vector<1x8x8xf32>
    "tpu.trace_stop"() : () -> ()
    %64 = vector.shape_cast %63 : vector<1x8x8xf32> to vector<8x8xf32>
    %65 = vector.extract_strided_slice %41 {offsets = [0, 8], sizes = [8, 8], strides = [1, 1]} : vector<8x96xf32> to vector<8x8xf32>
    %66 = vector.shape_cast %65 : vector<8x8xf32> to vector<1x8x8xf32>
    %67 = vector.extract_strided_slice %41 {offsets = [0, 40], sizes = [8, 8], strides = [1, 1]} : vector<8x96xf32> to vector<8x8xf32>
    %68 = vector.shape_cast %67 : vector<8x8xf32> to vector<1x8x8xf32>
    %69 = vector.extract_strided_slice %41 {offsets = [0, 72], sizes = [8, 8], strides = [1, 1]} : vector<8x96xf32> to vector<8x8xf32>
    %70 = vector.shape_cast %69 : vector<8x8xf32> to vector<1x8x8xf32>
    %71 = arith.truncf %66 : vector<1x8x8xf32> to vector<1x8x8xbf16>
    %72 = arith.truncf %68 : vector<1x8x8xf32> to vector<1x8x8xbf16>
    "tpu.trace_start"() <{level = 10 : i32, message = "bqd,bkd->bqk"}> : () -> ()
    %cst_29 = arith.constant dense<0.000000e+00> : vector<1x8x8xf32>
    %73 = tpu.matmul %71, %72, %cst_29 {dimension_numbers = #tpu.dot_dimension_numbers<[2], [2], [1], [1], [0, 0, 0, 1, 1, 1], [0], [0]>} : vector<1x8x8xbf16>, vector<1x8x8xbf16>, vector<1x8x8xf32> -> vector<1x8x8xf32>
    "tpu.trace_stop"() : () -> ()
    %cst_30 = arith.constant dense<0xFF800000> : vector<1x8xf32>
    %74 = vector.multi_reduction <maximumf>, %73, %cst_30 [2] : vector<1x8x8xf32> to vector<1x8xf32>
    %75 = vector.shape_cast %74 : vector<1x8xf32> to vector<1x8x1xf32>
    %76 = vector.broadcast %75 : vector<1x8x1xf32> to vector<1x8x8xf32>
    %77 = arith.subf %73, %76 : vector<1x8x8xf32>
    %78 = math.exp %77 : vector<1x8x8xf32>
    %cst_31 = arith.constant dense<0.000000e+00> : vector<1x8xf32>
    %79 = vector.multi_reduction <add>, %78, %cst_31 [2] : vector<1x8x8xf32> to vector<1x8xf32>
    %80 = vector.shape_cast %79 : vector<1x8xf32> to vector<1x8x1xf32>
    %81 = tpu.reciprocal %80 {approx = true} : vector<1x8x1xf32> -> vector<1x8x1xf32>
    %82 = vector.broadcast %81 : vector<1x8x1xf32> to vector<1x8x8xf32>
    %83 = arith.mulf %78, %82 : vector<1x8x8xf32>
    %84 = arith.truncf %83 : vector<1x8x8xf32> to vector<1x8x8xbf16>
    %85 = arith.truncf %70 : vector<1x8x8xf32> to vector<1x8x8xbf16>
    "tpu.trace_start"() <{level = 10 : i32, message = "bqk,bkd->bqd"}> : () -> ()
    %cst_32 = arith.constant dense<0.000000e+00> : vector<1x8x8xf32>
    %86 = tpu.matmul %84, %85, %cst_32 {dimension_numbers = #tpu.dot_dimension_numbers<[2], [1], [1], [2], [0, 0, 0, 1, 1, 2], [0], [0]>} : vector<1x8x8xbf16>, vector<1x8x8xbf16>, vector<1x8x8xf32> -> vector<1x8x8xf32>
    "tpu.trace_stop"() : () -> ()
    %87 = vector.shape_cast %86 : vector<1x8x8xf32> to vector<8x8xf32>
    %88 = vector.extract_strided_slice %41 {offsets = [0, 16], sizes = [8, 8], strides = [1, 1]} : vector<8x96xf32> to vector<8x8xf32>
    %89 = vector.shape_cast %88 : vector<8x8xf32> to vector<1x8x8xf32>
    %90 = vector.extract_strided_slice %41 {offsets = [0, 48], sizes = [8, 8], strides = [1, 1]} : vector<8x96xf32> to vector<8x8xf32>
    %91 = vector.shape_cast %90 : vector<8x8xf32> to vector<1x8x8xf32>
    %92 = vector.extract_strided_slice %41 {offsets = [0, 80], sizes = [8, 8], strides = [1, 1]} : vector<8x96xf32> to vector<8x8xf32>
    %93 = vector.shape_cast %92 : vector<8x8xf32> to vector<1x8x8xf32>
    %94 = arith.truncf %89 : vector<1x8x8xf32> to vector<1x8x8xbf16>
    %95 = arith.truncf %91 : vector<1x8x8xf32> to vector<1x8x8xbf16>
    "tpu.trace_start"() <{level = 10 : i32, message = "bqd,bkd->bqk"}> : () -> ()
    %cst_33 = arith.constant dense<0.000000e+00> : vector<1x8x8xf32>
    %96 = tpu.matmul %94, %95, %cst_33 {dimension_numbers = #tpu.dot_dimension_numbers<[2], [2], [1], [1], [0, 0, 0, 1, 1, 1], [0], [0]>} : vector<1x8x8xbf16>, vector<1x8x8xbf16>, vector<1x8x8xf32> -> vector<1x8x8xf32>
    "tpu.trace_stop"() : () -> ()
    %cst_34 = arith.constant dense<0xFF800000> : vector<1x8xf32>
    %97 = vector.multi_reduction <maximumf>, %96, %cst_34 [2] : vector<1x8x8xf32> to vector<1x8xf32>
    %98 = vector.shape_cast %97 : vector<1x8xf32> to vector<1x8x1xf32>
    %99 = vector.broadcast %98 : vector<1x8x1xf32> to vector<1x8x8xf32>
    %100 = arith.subf %96, %99 : vector<1x8x8xf32>
    %101 = math.exp %100 : vector<1x8x8xf32>
    %cst_35 = arith.constant dense<0.000000e+00> : vector<1x8xf32>
    %102 = vector.multi_reduction <add>, %101, %cst_35 [2] : vector<1x8x8xf32> to vector<1x8xf32>
    %103 = vector.shape_cast %102 : vector<1x8xf32> to vector<1x8x1xf32>
    %104 = tpu.reciprocal %103 {approx = true} : vector<1x8x1xf32> -> vector<1x8x1xf32>
    %105 = vector.broadcast %104 : vector<1x8x1xf32> to vector<1x8x8xf32>
    %106 = arith.mulf %101, %105 : vector<1x8x8xf32>
    %107 = arith.truncf %106 : vector<1x8x8xf32> to vector<1x8x8xbf16>
    %108 = arith.truncf %93 : vector<1x8x8xf32> to vector<1x8x8xbf16>
    "tpu.trace_start"() <{level = 10 : i32, message = "bqk,bkd->bqd"}> : () -> ()
    %cst_36 = arith.constant dense<0.000000e+00> : vector<1x8x8xf32>
    %109 = tpu.matmul %107, %108, %cst_36 {dimension_numbers = #tpu.dot_dimension_numbers<[2], [1], [1], [2], [0, 0, 0, 1, 1, 2], [0], [0]>} : vector<1x8x8xbf16>, vector<1x8x8xbf16>, vector<1x8x8xf32> -> vector<1x8x8xf32>
    "tpu.trace_stop"() : () -> ()
    %110 = vector.shape_cast %109 : vector<1x8x8xf32> to vector<8x8xf32>
    %111 = vector.extract_strided_slice %41 {offsets = [0, 24], sizes = [8, 8], strides = [1, 1]} : vector<8x96xf32> to vector<8x8xf32>
    %112 = vector.shape_cast %111 : vector<8x8xf32> to vector<1x8x8xf32>
    %113 = vector.extract_strided_slice %41 {offsets = [0, 56], sizes = [8, 8], strides = [1, 1]} : vector<8x96xf32> to vector<8x8xf32>
    %114 = vector.shape_cast %113 : vector<8x8xf32> to vector<1x8x8xf32>
    %115 = vector.extract_strided_slice %41 {offsets = [0, 88], sizes = [8, 8], strides = [1, 1]} : vector<8x96xf32> to vector<8x8xf32>
    %116 = vector.shape_cast %115 : vector<8x8xf32> to vector<1x8x8xf32>
    %117 = arith.truncf %112 : vector<1x8x8xf32> to vector<1x8x8xbf16>
    %118 = arith.truncf %114 : vector<1x8x8xf32> to vector<1x8x8xbf16>
    "tpu.trace_start"() <{level = 10 : i32, message = "bqd,bkd->bqk"}> : () -> ()
    %cst_37 = arith.constant dense<0.000000e+00> : vector<1x8x8xf32>
    %119 = tpu.matmul %117, %118, %cst_37 {dimension_numbers = #tpu.dot_dimension_numbers<[2], [2], [1], [1], [0, 0, 0, 1, 1, 1], [0], [0]>} : vector<1x8x8xbf16>, vector<1x8x8xbf16>, vector<1x8x8xf32> -> vector<1x8x8xf32>
    "tpu.trace_stop"() : () -> ()
    %cst_38 = arith.constant dense<0xFF800000> : vector<1x8xf32>
    %120 = vector.multi_reduction <maximumf>, %119, %cst_38 [2] : vector<1x8x8xf32> to vector<1x8xf32>
    %121 = vector.shape_cast %120 : vector<1x8xf32> to vector<1x8x1xf32>
    %122 = vector.broadcast %121 : vector<1x8x1xf32> to vector<1x8x8xf32>
    %123 = arith.subf %119, %122 : vector<1x8x8xf32>
    %124 = math.exp %123 : vector<1x8x8xf32>
    %cst_39 = arith.constant dense<0.000000e+00> : vector<1x8xf32>
    %125 = vector.multi_reduction <add>, %124, %cst_39 [2] : vector<1x8x8xf32> to vector<1x8xf32>
    %126 = vector.shape_cast %125 : vector<1x8xf32> to vector<1x8x1xf32>
    %127 = tpu.reciprocal %126 {approx = true} : vector<1x8x1xf32> -> vector<1x8x1xf32>
    %128 = vector.broadcast %127 : vector<1x8x1xf32> to vector<1x8x8xf32>
    %129 = arith.mulf %124, %128 : vector<1x8x8xf32>
    %130 = arith.truncf %129 : vector<1x8x8xf32> to vector<1x8x8xbf16>
    %131 = arith.truncf %116 : vector<1x8x8xf32> to vector<1x8x8xbf16>
    "tpu.trace_start"() <{level = 10 : i32, message = "bqk,bkd->bqd"}> : () -> ()
    %cst_40 = arith.constant dense<0.000000e+00> : vector<1x8x8xf32>
    %132 = tpu.matmul %130, %131, %cst_40 {dimension_numbers = #tpu.dot_dimension_numbers<[2], [1], [1], [2], [0, 0, 0, 1, 1, 2], [0], [0]>} : vector<1x8x8xbf16>, vector<1x8x8xbf16>, vector<1x8x8xf32> -> vector<1x8x8xf32>
    "tpu.trace_stop"() : () -> ()
    %133 = vector.shape_cast %132 : vector<1x8x8xf32> to vector<8x8xf32>
    %134 = tpu.concatenate %64, %87, %110, %133 in 1 : vector<8x8xf32>, vector<8x8xf32>, vector<8x8xf32>, vector<8x8xf32> -> vector<8x32xf32>
    %135 = arith.truncf %134 : vector<8x32xf32> to vector<8x32xbf16>
    %cst_41 = arith.constant dense<0.000000e+00> : vector<8x32xf32>
    %136 = tpu.matmul %135, %13, %cst_41 {dimension_numbers = #tpu.dot_dimension_numbers<[1], [0], [0], [1], [0, 0, 1, 1], [], []>} : vector<8x32xbf16>, vector<32x32xbf16>, vector<8x32xf32> -> vector<8x32xf32>
    %137 = vector.broadcast %15 : vector<1x32xf32> to vector<8x32xf32>
    %138 = arith.addf %136, %137 : vector<8x32xf32>
    %139 = arith.addf %3, %138 : vector<8x32xf32>
    %c0_42 = arith.constant 0 : index
    %c0_43 = arith.constant 0 : index
    %c0_44 = arith.constant 0 : index
    %140 = vector.load %arg13[%c0_42, %c0_43, %c0_44] : memref<1x1x32xf32, #tpu.memory_space<vmem>>, vector<1x1x32xf32>
    %141 = vector.shape_cast %140 : vector<1x1x32xf32> to vector<1x32xf32>
    %c0_45 = arith.constant 0 : index
    %c0_46 = arith.constant 0 : index
    %c0_47 = arith.constant 0 : index
    %142 = vector.load %arg14[%c0_45, %c0_46, %c0_47] : memref<1x1x32xf32, #tpu.memory_space<vmem>>, vector<1x1x32xf32>
    %143 = vector.shape_cast %142 : vector<1x1x32xf32> to vector<1x32xf32>
    %c0_48 = arith.constant 0 : index
    %c0_49 = arith.constant 0 : index
    %c0_50 = arith.constant 0 : index
    %144 = vector.load %arg15[%c0_48, %c0_49, %c0_50] : memref<1x32x128xbf16, #tpu.memory_space<vmem>>, vector<1x32x128xbf16>
    %145 = vector.shape_cast %144 : vector<1x32x128xbf16> to vector<32x128xbf16>
    %c0_51 = arith.constant 0 : index
    %c0_52 = arith.constant 0 : index
    %c0_53 = arith.constant 0 : index
    %146 = vector.load %arg16[%c0_51, %c0_52, %c0_53] : memref<1x1x128xf32, #tpu.memory_space<vmem>>, vector<1x1x128xf32>
    %147 = vector.shape_cast %146 : vector<1x1x128xf32> to vector<1x128xf32>
    %c0_54 = arith.constant 0 : index
    %c0_55 = arith.constant 0 : index
    %c0_56 = arith.constant 0 : index
    %148 = vector.load %arg17[%c0_54, %c0_55, %c0_56] : memref<1x128x32xbf16, #tpu.memory_space<vmem>>, vector<1x128x32xbf16>
    %149 = vector.shape_cast %148 : vector<1x128x32xbf16> to vector<128x32xbf16>
    %c0_57 = arith.constant 0 : index
    %c0_58 = arith.constant 0 : index
    %c0_59 = arith.constant 0 : index
    %150 = vector.load %arg18[%c0_57, %c0_58, %c0_59] : memref<1x1x32xf32, #tpu.memory_space<vmem>>, vector<1x1x32xf32>
    %151 = vector.shape_cast %150 : vector<1x1x32xf32> to vector<1x32xf32>
    %cst_60 = arith.constant dense<0.000000e+00> : vector<8xf32>
    %152 = vector.multi_reduction <add>, %139, %cst_60 [1] : vector<8x32xf32> to vector<8xf32>
    %153 = vector.shape_cast %152 : vector<8xf32> to vector<8x1xf32>
    %cst_61 = arith.constant 3.200000e+01 : f32
    %154 = vector.broadcast %cst_61 : f32 to vector<8x1xf32>
    %155 = arith.divf %153, %154 : vector<8x1xf32>
    %156 = vector.broadcast %155 : vector<8x1xf32> to vector<8x32xf32>
    %157 = arith.subf %139, %156 : vector<8x32xf32>
    %158 = arith.mulf %157, %157 : vector<8x32xf32>
    %cst_62 = arith.constant dense<0.000000e+00> : vector<8xf32>
    %159 = vector.multi_reduction <add>, %158, %cst_62 [1] : vector<8x32xf32> to vector<8xf32>
    %160 = vector.shape_cast %159 : vector<8xf32> to vector<8x1xf32>
    %cst_63 = arith.constant 3.200000e+01 : f32
    %161 = vector.broadcast %cst_63 : f32 to vector<8x1xf32>
    %162 = arith.divf %160, %161 : vector<8x1xf32>
    %163 = vector.broadcast %155 : vector<8x1xf32> to vector<8x32xf32>
    %164 = arith.subf %139, %163 : vector<8x32xf32>
    %cst_64 = arith.constant 9.99999974E-6 : f32
    %165 = vector.broadcast %cst_64 : f32 to vector<8x1xf32>
    %166 = arith.addf %162, %165 : vector<8x1xf32>
    %167 = math.rsqrt %166 : vector<8x1xf32>
    %168 = vector.broadcast %167 : vector<8x1xf32> to vector<8x32xf32>
    %169 = arith.mulf %164, %168 : vector<8x32xf32>
    %170 = vector.broadcast %141 : vector<1x32xf32> to vector<8x32xf32>
    %171 = arith.mulf %169, %170 : vector<8x32xf32>
    %172 = vector.broadcast %143 : vector<1x32xf32> to vector<8x32xf32>
    %173 = arith.addf %171, %172 : vector<8x32xf32>
    %174 = arith.truncf %173 : vector<8x32xf32> to vector<8x32xbf16>
    %cst_65 = arith.constant dense<0.000000e+00> : vector<8x128xf32>
    %175 = tpu.matmul %174, %145, %cst_65 {dimension_numbers = #tpu.dot_dimension_numbers<[1], [0], [0], [1], [0, 0, 1, 1], [], []>} : vector<8x32xbf16>, vector<32x128xbf16>, vector<8x128xf32> -> vector<8x128xf32>
    %176 = vector.broadcast %147 : vector<1x128xf32> to vector<8x128xf32>
    %177 = arith.addf %175, %176 : vector<8x128xf32>
    %cst_66 = arith.constant 5.000000e-01 : f32
    %178 = vector.broadcast %cst_66 : f32 to vector<8x128xf32>
    %179 = arith.mulf %178, %177 : vector<8x128xf32>
    %180 = arith.mulf %177, %177 : vector<8x128xf32>
    %181 = arith.mulf %177, %180 : vector<8x128xf32>
    %cst_67 = arith.constant 4.471500e-02 : f32
    %182 = vector.broadcast %cst_67 : f32 to vector<8x128xf32>
    %183 = arith.mulf %182, %181 : vector<8x128xf32>
    %184 = arith.addf %177, %183 : vector<8x128xf32>
    %cst_68 = arith.constant 0.797884583 : f32
    %185 = vector.broadcast %cst_68 : f32 to vector<8x128xf32>
    %186 = arith.mulf %185, %184 : vector<8x128xf32>
    %187 = math.tanh %186 : vector<8x128xf32>
    %cst_69 = arith.constant 1.000000e+00 : f32
    %188 = vector.broadcast %cst_69 : f32 to vector<8x128xf32>
    %189 = arith.addf %188, %187 : vector<8x128xf32>
    %190 = arith.mulf %179, %189 : vector<8x128xf32>
    %191 = arith.truncf %190 : vector<8x128xf32> to vector<8x128xbf16>
    %cst_70 = arith.constant dense<0.000000e+00> : vector<8x32xf32>
    %192 = tpu.matmul %191, %149, %cst_70 {dimension_numbers = #tpu.dot_dimension_numbers<[1], [0], [0], [1], [0, 0, 1, 1], [], []>} : vector<8x128xbf16>, vector<128x32xbf16>, vector<8x32xf32> -> vector<8x32xf32>
    %193 = vector.broadcast %151 : vector<1x32xf32> to vector<8x32xf32>
    %194 = arith.addf %192, %193 : vector<8x32xf32>
    %195 = arith.addf %139, %194 : vector<8x32xf32>
    %c0_71 = arith.constant 0 : index
    %c0_72 = arith.constant 0 : index
    %196 = vector.load %arg24[%c0_71, %c0_72] : memref<8x32xf32, #tpu.memory_space<vmem>>, vector<8x32xf32>
    tpu.vector_store %arg24[%c0_71, %c0_72], %195 {strides = array<i32>} : memref<8x32xf32, #tpu.memory_space<vmem>>, vector<8x32xf32>,
    %c1_i32 = arith.constant 1 : i32
    %197 = arith.cmpi eq, %arg1, %c1_i32 : i32
    %198 = arith.extui %197 : i1 to i32
    %c0_i32_73 = arith.constant 0 : i32
    %199 = arith.cmpi ne, %198, %c0_i32_73 : i32
    scf.if %199 {
      %c0_74 = arith.constant 0 : index
      %c0_75 = arith.constant 0 : index
      %200 = vector.load %arg19[%c0_74, %c0_75] : memref<1x32xf32, #tpu.memory_space<vmem>>, vector<1x32xf32>
      %c0_76 = arith.constant 0 : index
      %c0_77 = arith.constant 0 : index
      %201 = vector.load %arg20[%c0_76, %c0_77] : memref<1x32xf32, #tpu.memory_space<vmem>>, vector<1x32xf32>
      %cst_78 = arith.constant dense<0.000000e+00> : vector<8xf32>
      %202 = vector.multi_reduction <add>, %195, %cst_78 [1] : vector<8x32xf32> to vector<8xf32>
      %203 = vector.shape_cast %202 : vector<8xf32> to vector<8x1xf32>
      %cst_79 = arith.constant 3.200000e+01 : f32
      %204 = vector.broadcast %cst_79 : f32 to vector<8x1xf32>
      %205 = arith.divf %203, %204 : vector<8x1xf32>
      %206 = vector.broadcast %205 : vector<8x1xf32> to vector<8x32xf32>
      %207 = arith.subf %195, %206 : vector<8x32xf32>
      %208 = arith.mulf %207, %207 : vector<8x32xf32>
      %cst_80 = arith.constant dense<0.000000e+00> : vector<8xf32>
      %209 = vector.multi_reduction <add>, %208, %cst_80 [1] : vector<8x32xf32> to vector<8xf32>
      %210 = vector.shape_cast %209 : vector<8xf32> to vector<8x1xf32>
      %cst_81 = arith.constant 3.200000e+01 : f32
      %211 = vector.broadcast %cst_81 : f32 to vector<8x1xf32>
      %212 = arith.divf %210, %211 : vector<8x1xf32>
      %213 = vector.broadcast %205 : vector<8x1xf32> to vector<8x32xf32>
      %214 = arith.subf %195, %213 : vector<8x32xf32>
      %cst_82 = arith.constant 9.99999974E-6 : f32
      %215 = vector.broadcast %cst_82 : f32 to vector<8x1xf32>
      %216 = arith.addf %212, %215 : vector<8x1xf32>
      %217 = math.rsqrt %216 : vector<8x1xf32>
      %218 = vector.broadcast %217 : vector<8x1xf32> to vector<8x32xf32>
      %219 = arith.mulf %214, %218 : vector<8x32xf32>
      %220 = vector.broadcast %200 : vector<1x32xf32> to vector<8x32xf32>
      %221 = arith.mulf %219, %220 : vector<8x32xf32>
      %222 = vector.broadcast %201 : vector<1x32xf32> to vector<8x32xf32>
      %223 = arith.addf %221, %222 : vector<8x32xf32>
      %224 = arith.truncf %223 : vector<8x32xf32> to vector<8x32xbf16>
      %c0_83 = arith.constant 0 : index
      %c0_84 = arith.constant 0 : index
      %225 = vector.load %arg21[%c0_83, %c0_84] : memref<32x128xbf16, #tpu.memory_space<vmem>>, vector<32x128xbf16>
      %cst_85 = arith.constant dense<0.000000e+00> : vector<8x128xf32>
      %226 = tpu.matmul %224, %225, %cst_85 {dimension_numbers = #tpu.dot_dimension_numbers<[1], [0], [0], [1], [0, 0, 1, 1], [], []>} : vector<8x32xbf16>, vector<32x128xbf16>, vector<8x128xf32> -> vector<8x128xf32>
      %c0_86 = arith.constant 0 : index
      %c0_87 = arith.constant 0 : index
      %227 = vector.load %arg22[%c0_86, %c0_87] : memref<1x128xf32, #tpu.memory_space<vmem>>, vector<1x128xf32>
      %228 = vector.broadcast %227 : vector<1x128xf32> to vector<8x128xf32>
      %229 = arith.addf %226, %228 : vector<8x128xf32>
      %230 = vector.shape_cast %229 : vector<8x128xf32> to vector<1x8x128xf32>
      %231 = arith.truncf %230 : vector<1x8x128xf32> to vector<1x8x128xbf16>
      %c0_88 = arith.constant 0 : index
      %c0_89 = arith.constant 0 : index
      %c0_90 = arith.constant 0 : index
      %232 = vector.load %arg23[%c0_88, %c0_89, %c0_90] : memref<1x8x128xbf16, #tpu.memory_space<vmem>>, vector<1x8x128xbf16>
      tpu.vector_store %arg23[%c0_88, %c0_89, %c0_90], %231 {strides = array<i32>} : memref<1x8x128xbf16, #tpu.memory_space<vmem>>, vector<1x8x128xbf16>,
    } else {
    }
    return
  }
  func.func @transform_0(%arg0: i32, %arg1: i32) -> (i32, i32) {
    %c0_i32 = arith.constant 0 : i32
    %c0_i32_0 = arith.constant 0 : i32
    return %arg0, %c0_i32 : i32, i32
  }
  func.func @transform_1(%arg0: i32, %arg1: i32) -> (i32, i32) {
    %c0_i32 = arith.constant 0 : i32
    %c0_i32_0 = arith.constant 0 : i32
    return %arg0, %c0_i32 : i32, i32
  }
  func.func @transform_2(%arg0: i32, %arg1: i32) -> (i32, i32) {
    %c0_i32 = arith.constant 0 : i32
    %c0_i32_0 = arith.constant 0 : i32
    %c0_i32_1 = arith.constant 0 : i32
    return %c0_i32, %c0_i32_0 : i32, i32
  }
  func.func @transform_3(%arg0: i32, %arg1: i32) -> (i32, i32) {
    %c0_i32 = arith.constant 0 : i32
    %c0_i32_0 = arith.constant 0 : i32
    %c0_i32_1 = arith.constant 0 : i32
    return %c0_i32, %c0_i32_0 : i32, i32
  }
  func.func @transform_4(%arg0: i32, %arg1: i32) -> (i32, i32) {
    %c0_i32 = arith.constant 0 : i32
    %c0_i32_0 = arith.constant 0 : i32
    %c0_i32_1 = arith.constant 0 : i32
    return %c0_i32, %c0_i32_0 : i32, i32
  }
  func.func @transform_5(%arg0: i32, %arg1: i32) -> (i32, i32, i32) {
    %c0_i32 = arith.constant 0 : i32
    %c0_i32_0 = arith.constant 0 : i32
    %c0_i32_1 = arith.constant 0 : i32
    return %arg1, %c0_i32, %c0_i32_0 : i32, i32, i32
  }
  func.func @transform_6(%arg0: i32, %arg1: i32) -> (i32, i32, i32) {
    %c0_i32 = arith.constant 0 : i32
    %c0_i32_0 = arith.constant 0 : i32
    %c0_i32_1 = arith.constant 0 : i32
    return %arg1, %c0_i32, %c0_i32_0 : i32, i32, i32
  }
  func.func @transform_7(%arg0: i32, %arg1: i32) -> (i32, i32, i32) {
    %c0_i32 = arith.constant 0 : i32
    %c0_i32_0 = arith.constant 0 : i32
    %c0_i32_1 = arith.constant 0 : i32
    return %arg1, %c0_i32, %c0_i32_0 : i32, i32, i32
  }
  func.func @transform_8(%arg0: i32, %arg1: i32) -> (i32, i32, i32) {
    %c0_i32 = arith.constant 0 : i32
    %c0_i32_0 = arith.constant 0 : i32
    %c0_i32_1 = arith.constant 0 : i32
    return %arg1, %c0_i32, %c0_i32_0 : i32, i32, i32
  }
  func.func @transform_9(%arg0: i32, %arg1: i32) -> (i32, i32, i32) {
    %c0_i32 = arith.constant 0 : i32
    %c0_i32_0 = arith.constant 0 : i32
    %c0_i32_1 = arith.constant 0 : i32
    return %arg1, %c0_i32, %c0_i32_0 : i32, i32, i32
  }
  func.func @transform_10(%arg0: i32, %arg1: i32) -> (i32, i32, i32) {
    %c0_i32 = arith.constant 0 : i32
    %c0_i32_0 = arith.constant 0 : i32
    %c0_i32_1 = arith.constant 0 : i32
    return %arg1, %c0_i32, %c0_i32_0 : i32, i32, i32
  }
  func.func @transform_11(%arg0: i32, %arg1: i32) -> (i32, i32, i32) {
    %c0_i32 = arith.constant 0 : i32
    %c0_i32_0 = arith.constant 0 : i32
    %c0_i32_1 = arith.constant 0 : i32
    return %arg1, %c0_i32, %c0_i32_0 : i32, i32, i32
  }
  func.func @transform_12(%arg0: i32, %arg1: i32) -> (i32, i32, i32) {
    %c0_i32 = arith.constant 0 : i32
    %c0_i32_0 = arith.constant 0 : i32
    %c0_i32_1 = arith.constant 0 : i32
    return %arg1, %c0_i32, %c0_i32_0 : i32, i32, i32
  }
  func.func @transform_13(%arg0: i32, %arg1: i32) -> (i32, i32, i32) {
    %c0_i32 = arith.constant 0 : i32
    %c0_i32_0 = arith.constant 0 : i32
    %c0_i32_1 = arith.constant 0 : i32
    return %arg1, %c0_i32, %c0_i32_0 : i32, i32, i32
  }
  func.func @transform_14(%arg0: i32, %arg1: i32) -> (i32, i32, i32) {
    %c0_i32 = arith.constant 0 : i32
    %c0_i32_0 = arith.constant 0 : i32
    %c0_i32_1 = arith.constant 0 : i32
    return %arg1, %c0_i32, %c0_i32_0 : i32, i32, i32
  }
  func.func @transform_15(%arg0: i32, %arg1: i32) -> (i32, i32, i32) {
    %c0_i32 = arith.constant 0 : i32
    %c0_i32_0 = arith.constant 0 : i32
    %c0_i32_1 = arith.constant 0 : i32
    return %arg1, %c0_i32, %c0_i32_0 : i32, i32, i32
  }
  func.func @transform_16(%arg0: i32, %arg1: i32) -> (i32, i32, i32) {
    %c0_i32 = arith.constant 0 : i32
    %c0_i32_0 = arith.constant 0 : i32
    %c0_i32_1 = arith.constant 0 : i32
    return %arg1, %c0_i32, %c0_i32_0 : i32, i32, i32
  }
  func.func @transform_17(%arg0: i32, %arg1: i32) -> (i32, i32) {
    %c0_i32 = arith.constant 0 : i32
    %c0_i32_0 = arith.constant 0 : i32
    %c0_i32_1 = arith.constant 0 : i32
    return %c0_i32, %c0_i32_0 : i32, i32
  }
  func.func @transform_18(%arg0: i32, %arg1: i32) -> (i32, i32) {
    %c0_i32 = arith.constant 0 : i32
    %c0_i32_0 = arith.constant 0 : i32
    %c0_i32_1 = arith.constant 0 : i32
    return %c0_i32, %c0_i32_0 : i32, i32
  }
  func.func @transform_19(%arg0: i32, %arg1: i32) -> (i32, i32) {
    %c0_i32 = arith.constant 0 : i32
    %c0_i32_0 = arith.constant 0 : i32
    %c0_i32_1 = arith.constant 0 : i32
    return %c0_i32, %c0_i32_0 : i32, i32
  }
  func.func @transform_20(%arg0: i32, %arg1: i32) -> (i32, i32) {
    %c0_i32 = arith.constant 0 : i32
    %c0_i32_0 = arith.constant 0 : i32
    %c0_i32_1 = arith.constant 0 : i32
    return %c0_i32, %c0_i32_0 : i32, i32
  }
  func.func @transform_21(%arg0: i32, %arg1: i32) -> (i32, i32, i32) {
    %c0_i32 = arith.constant 0 : i32
    %c0_i32_0 = arith.constant 0 : i32
    %c0_i32_1 = arith.constant 0 : i32
    return %arg0, %c0_i32, %c0_i32_0 : i32, i32, i32
  }
}

module attributes {stable_mosaic.version = 11 : i64} {
  func.func @_fused_kernel(%arg0: i32, %arg1: i32, %arg2: memref<8x16xf32, #tpu.memory_space<vmem>>, %arg3: memref<8x4xf32, #tpu.memory_space<vmem>>, %arg4: memref<16x32xbf16, #tpu.memory_space<vmem>>, %arg5: memref<4x32xbf16, #tpu.memory_space<vmem>>, %arg6: memref<1x32xf32, #tpu.memory_space<vmem>>, %arg7: memref<1x1x32xf32, #tpu.memory_space<vmem>>, %arg8: memref<1x1x32xf32, #tpu.memory_space<vmem>>, %arg9: memref<1x32x96xbf16, #tpu.memory_space<vmem>>, %arg10: memref<1x1x96xf32, #tpu.memory_space<vmem>>, %arg11: memref<1x32x32xbf16, #tpu.memory_space<vmem>>, %arg12: memref<1x1x32xf32, #tpu.memory_space<vmem>>, %arg13: memref<1x1x32xf32, #tpu.memory_space<vmem>>, %arg14: memref<1x1x32xf32, #tpu.memory_space<vmem>>, %arg15: memref<1x32x128xbf16, #tpu.memory_space<vmem>>, %arg16: memref<1x1x128xf32, #tpu.memory_space<vmem>>, %arg17: memref<1x128x32xbf16, #tpu.memory_space<vmem>>, %arg18: memref<1x1x32xf32, #tpu.memory_space<vmem>>, %arg19: memref<1x32xf32, #tpu.memory_space<vmem>>, %arg20: memref<1x32xf32, #tpu.memory_space<vmem>>, %arg21: memref<32x128xbf16, #tpu.memory_space<vmem>>, %arg22: memref<1x128xf32, #tpu.memory_space<vmem>>, %arg23: memref<1x8x128xbf16, #tpu.memory_space<vmem>>, %arg24: memref<8x32xf32, #tpu.memory_space<vmem>>) attributes {dimension_semantics = [#tpu.dimension_semantics<parallel>, #tpu.dimension_semantics<arbitrary>], iteration_bounds = array<i64: 2, 2>, scalar_prefetch = 0 : i64, scratch_operands = 1 : i64, tpu.core_type = #tpu.core_type<tc>, window_params = [{transform_indices = @transform_0, window_bounds = array<i64: 8, 16>}, {transform_indices = @transform_1, window_bounds = array<i64: 8, 4>}, {pipeline_mode = #tpu.pipeline_mode<synchronous>, transform_indices = @transform_2, window_bounds = array<i64: 16, 32>}, {pipeline_mode = #tpu.pipeline_mode<synchronous>, transform_indices = @transform_3, window_bounds = array<i64: 4, 32>}, {pipeline_mode = #tpu.pipeline_mode<synchronous>, transform_indices = @transform_4, window_bounds = array<i64: 1, 32>}, {transform_indices = @transform_5, window_bounds = array<i64: 1, 1, 32>}, {transform_indices = @transform_6, window_bounds = array<i64: 1, 1, 32>}, {transform_indices = @transform_7, window_bounds = array<i64: 1, 32, 96>}, {transform_indices = @transform_8, window_bounds = array<i64: 1, 1, 96>}, {transform_indices = @transform_9, window_bounds = array<i64: 1, 32, 32>}, {transform_indices = @transform_10, window_bounds = array<i64: 1, 1, 32>}, {transform_indices = @transform_11, window_bounds = array<i64: 1, 1, 32>}, {transform_indices = @transform_12, window_bounds = array<i64: 1, 1, 32>}, {transform_indices = @transform_13, window_bounds = array<i64: 1, 32, 128>}, {transform_indices = @transform_14, window_bounds = array<i64: 1, 1, 128>}, {transform_indices = @transform_15, window_bounds = array<i64: 1, 128, 32>}, {transform_indices = @transform_16, window_bounds = array<i64: 1, 1, 32>}, {pipeline_mode = #tpu.pipeline_mode<synchronous>, transform_indices = @transform_17, window_bounds = array<i64: 1, 32>}, {pipeline_mode = #tpu.pipeline_mode<synchronous>, transform_indices = @transform_18, window_bounds = array<i64: 1, 32>}, {pipeline_mode = #tpu.pipeline_mode<synchronous>, transform_indices = @transform_19, window_bounds = array<i64: 32, 128>}, {pipeline_mode = #tpu.pipeline_mode<synchronous>, transform_indices = @transform_20, window_bounds = array<i64: 1, 128>}, {transform_indices = @transform_21, window_bounds = array<i64: 1, 8, 128>}]} {
    %c0_i32 = arith.constant 0 : i32
    %0 = arith.cmpi eq, %arg1, %c0_i32 : i32
    %1 = arith.extui %0 : i1 to i32
    %c0_i32_0 = arith.constant 0 : i32
    %2 = arith.cmpi ne, %1, %c0_i32_0 : i32
    scf.if %2 {
      %c0_74 = arith.constant 0 : index
      %c0_75 = arith.constant 0 : index
      %200 = vector.load %arg2[%c0_74, %c0_75] : memref<8x16xf32, #tpu.memory_space<vmem>>, vector<8x16xf32>
      %201 = arith.truncf %200 : vector<8x16xf32> to vector<8x16xbf16>
      %c0_76 = arith.constant 0 : index
      %c0_77 = arith.constant 0 : index
      %202 = vector.load %arg4[%c0_76, %c0_77] : memref<16x32xbf16, #tpu.memory_space<vmem>>, vector<16x32xbf16>
      %cst_78 = arith.constant dense<0.000000e+00> : vector<8x32xf32>
      %203 = tpu.matmul %201, %202, %cst_78 {dimension_numbers = #tpu.dot_dimension_numbers<[1], [0], [0], [1], [0, 0, 1, 1], [], []>} : vector<8x16xbf16>, vector<16x32xbf16>, vector<8x32xf32> -> vector<8x32xf32>
      %c0_79 = arith.constant 0 : index
      %c0_80 = arith.constant 0 : index
      %204 = vector.load %arg3[%c0_79, %c0_80] : memref<8x4xf32, #tpu.memory_space<vmem>>, vector<8x4xf32>
      %205 = arith.truncf %204 : vector<8x4xf32> to vector<8x4xbf16>
      %c0_81 = arith.constant 0 : index
      %c0_82 = arith.constant 0 : index
      %206 = vector.load %arg5[%c0_81, %c0_82] : memref<4x32xbf16, #tpu.memory_space<vmem>>, vector<4x32xbf16>
      %cst_83 = arith.constant dense<0.000000e+00> : vector<8x32xf32>
      %207 = tpu.matmul %205, %206, %cst_83 {dimension_numbers = #tpu.dot_dimension_numbers<[1], [0], [0], [1], [0, 0, 1, 1], [], []>} : vector<8x4xbf16>, vector<4x32xbf16>, vector<8x32xf32> -> vector<8x32xf32>
      %208 = arith.addf %203, %207 : vector<8x32xf32>
      %c0_84 = arith.constant 0 : index
      %c0_85 = arith.constant 0 : index
      %209 = vector.load %arg6[%c0_84, %c0_85] : memref<1x32xf32, #tpu.memory_space<vmem>>, vector<1x32xf32>
      %210 = vector.broadcast %209 : vector<1x32xf32> to vector<8x32xf32>
      %211 = arith.addf %208, %210 : vector<8x32xf32>
      %c0_86 = arith.constant 0 : index
      %c0_87 = arith.constant 0 : index
      %212 = vector.load %arg24[%c0_86, %c0_87] : memref<8x32xf32, #tpu.memory_space<vmem>>, vector<8x32xf32>
      tpu.vector_store %arg24[%c0_86, %c0_87], %211 {strides = array<i32>} : memref<8x32xf32, #tpu.memory_space<vmem>>, vector<8x32xf32>,
    } else {
    }
    %c0 = arith.constant 0 : index
    %c0_1 = arith.constant 0 : index
    %3 = vector.load %arg24[%c0, %c0_1] : memref<8x32xf32, #tpu.memory_space<vmem>>, vector<8x32xf32>
    %c0_2 = arith.constant 0 : index
    %c0_3 = arith.constant 0 : index
    %c0_4 = arith.constant 0 : index
    %4 = vector.load %arg7[%c0_2, %c0_3, %c0_4] : memref<1x1x32xf32, #tpu.memory_space<vmem>>, vector<1x1x32xf32>
    %5 = vector.shape_cast %4 : vector<1x1x32xf32> to vector<1x32xf32>
    %c0_5 = arith.constant 0 : index
    %c0_6 = arith.constant 0 : index
    %c0_7 = arith.constant 0 : index
    %6 = vector.load %arg8[%c0_5, %c0_6, %c0_7] : memref<1x1x32xf32, #tpu.memory_space<vmem>>, vector<1x1x32xf32>
    %7 = vector.shape_cast %6 : vector<1x1x32xf32> to vector<1x32xf32>
    %c0_8 = arith.constant 0 : index
    %c0_9 = arith.constant 0 : index
    %c0_10 = arith.constant 0 : index
    %8 = vector.load %arg9[%c0_8, %c0_9, %c0_10] : memref<1x32x96xbf16, #tpu.memory_space<vmem>>, vector<1x32x96xbf16>
    %9 = vector.shape_cast %8 : vector<1x32x96xbf16> to vector<32x96xbf16>
    %c0_11 = arith.constant 0 : index
    %c0_12 = arith.constant 0 : index
    %c0_13 = arith.constant 0 : index
    %10 = vector.load %arg10[%c0_11, %c0_12, %c0_13] : memref<1x1x96xf32, #tpu.memory_space<vmem>>, vector<1x1x96xf32>
    %11 = vector.shape_cast %10 : vector<1x1x96xf32> to vector<1x96xf32>
    %c0_14 = arith.constant 0 : index
    %c0_15 = arith.constant 0 : index
    %c0_16 = arith.constant 0 : index
    %12 = vector.load %arg11[%c0_14, %c0_15, %c0_16] : memref<1x32x32xbf16, #tpu.memory_space<vmem>>, vector<1x32x32xbf16>
    %13 = vector.shape_cast %12 : vector<1x32x32xbf16> to vector<32x32xbf16>
    %c0_17 = arith.constant 0 : index
    %c0_18 = arith.constant 0 : index
    %c0_19 = arith.constant 0 : index
    %14 = vector.load %arg12[%c0_17, %c0_18, %c0_19] : memref<1x1x32xf32, #tpu.memory_space<vmem>>, vector<1x1x32xf32>
    %15 = vector.shape_cast %14 : vector<1x1x32xf32> to vector<1x32xf32>
    %cst = arith.constant dense<0.000000e+00> : vector<8xf32>
    %16 = vector.multi_reduction <add>, %3, %cst [1] : vector<8x32xf32> to vector<8xf32>
    %17 = vector.shape_cast %16 : vector<8xf32> to vector<8x1xf32>
    %cst_20 = arith.constant 3.200000e+01 : f32
    %18 = vector.broadcast %cst_20 : f32 to vector<8x1xf32>
    %19 = arith.divf %17, %18 : vector<8x1xf32>
    %20 = vector.broadcast %19 : vector<8x1xf32> to vector<8x32xf32>
    %21 = arith.subf %3, %20 : vector<8x32xf32>
    %22 = arith.mulf %21, %21 : vector<8x32xf32>
    %cst_21 = arith.constant dense<0.000000e+00> : vector<8xf32>
    %23 = vector.multi_reduction <add>, %22, %cst_21 [1] : vector<8x32xf32> to vector<8xf32>
    %24 = vector.shape_cast %23 : vector<8xf32> to vector<8x1xf32>
    %cst_22 = arith.constant 3.200000e+01 : f32
    %25 = vector.broadcast %cst_22 : f32 to vector<8x1xf32>
    %26 = arith.divf %24, %25 : vector<8x1xf32>
    %27 = vector.broadcast %19 : vector<8x1xf32> to vector<8x32xf32>
    %28 = arith.subf %3, %27 : vector<8x32xf32>
    %cst_23 = arith.constant 9.99999974E-6 : f32
    %29 = vector.broadcast %cst_23 : f32 to vector<8x1xf32>
    %30 = arith.addf %26, %29 : vector<8x1xf32>
    %31 = math.rsqrt %30 : vector<8x1xf32>
    %32 = vector.broadcast %31 : vector<8x1xf32> to vector<8x32xf32>
    %33 = arith.mulf %28, %32 : vector<8x32xf32>
    %34 = vector.broadcast %5 : vector<1x32xf32> to vector<8x32xf32>
    %35 = arith.mulf %33, %34 : vector<8x32xf32>
    %36 = vector.broadcast %7 : vector<1x32xf32> to vector<8x32xf32>
    %37 = arith.addf %35, %36 : vector<8x32xf32>
    %38 = arith.truncf %37 : vector<8x32xf32> to vector<8x32xbf16>
    %cst_24 = arith.constant dense<0.000000e+00> : vector<8x96xf32>
    %39 = tpu.matmul %38, %9, %cst_24 {dimension_numbers = #tpu.dot_dimension_numbers<[1], [0], [0], [1], [0, 0, 1, 1], [], []>} : vector<8x32xbf16>, vector<32x96xbf16>, vector<8x96xf32> -> vector<8x96xf32>
    %40 = vector.broadcast %11 : vector<1x96xf32> to vector<8x96xf32>
    %41 = arith.addf %39, %40 : vector<8x96xf32>
    %42 = vector.extract_strided_slice %41 {offsets = [0, 0], sizes = [8, 8], strides = [1, 1]} : vector<8x96xf32> to vector<8x8xf32>
    %43 = vector.shape_cast %42 : vector<8x8xf32> to vector<1x8x8xf32>
    %44 = vector.extract_strided_slice %41 {offsets = [0, 32], sizes = [8, 8], strides = [1, 1]} : vector<8x96xf32> to vector<8x8xf32>
    %45 = vector.shape_cast %44 : vector<8x8xf32> to vector<1x8x8xf32>
    %46 = vector.extract_strided_slice %41 {offsets = [0, 64], sizes = [8, 8], strides = [1, 1]} : vector<8x96xf32> to vector<8x8xf32>
    %47 = vector.shape_cast %46 : vector<8x8xf32> to vector<1x8x8xf32>
    %48 = arith.truncf %43 : vector<1x8x8xf32> to vector<1x8x8xbf16>
    %49 = arith.truncf %45 : vector<1x8x8xf32> to vector<1x8x8xbf16>
    "tpu.trace_start"() <{level = 10 : i32, message = "bqd,bkd->bqk"}> : () -> ()
    %cst_25 = arith.constant dense<0.000000e+00> : vector<1x8x8xf32>
    %50 = tpu.matmul %48, %49, %cst_25 {dimension_numbers = #tpu.dot_dimension_numbers<[2], [2], [1], [1], [0, 0, 0, 1, 1, 1], [0], [0]>} : vector<1x8x8xbf16>, vector<1x8x8xbf16>, vector<1x8x8xf32> -> vector<1x8x8xf32>
    "tpu.trace_stop"() : () -> ()
    %cst_26 = arith.constant dense<0xFF800000> : vector<1x8xf32>
    %51 = vector.multi_reduction <maximumf>, %50, %cst_26 [2] : vector<1x8x8xf32> to vector<1x8xf32>
    %52 = vector.shape_cast %51 : vector<1x8xf32> to vector<1x8x1xf32>
    %53 = vector.broadcast %52 : vector<1x8x1xf32> to vector<1x8x8xf32>
    %54 = arith.subf %50, %53 : vector<1x8x8xf32>
    %55 = math.exp %54 : vector<1x8x8xf32>
    %cst_27 = arith.constant dense<0.000000e+00> : vector<1x8xf32>
    %56 = vector.multi_reduction <add>, %55, %cst_27 [2] : vector<1x8x8xf32> to vector<1x8xf32>
    %57 = vector.shape_cast %56 : vector<1x8xf32> to vector<1x8x1xf32>
    %58 = tpu.reciprocal %57 {approx = true} : vector<1x8x1xf32> -> vector<1x8x1xf32>
    %59 = vector.broadcast %58 : vector<1x8x1xf32> to vector<1x8x8xf32>
    %60 = arith.mulf %55, %59 : vector<1x8x8xf32>
    %61 = arith.truncf %60 : vector<1x8x8xf32> to vector<1x8x8xbf16>
    %62 = arith.truncf %47 : vector<1x8x8xf32> to vector<1x8x8xbf16>
    "tpu.trace_start"() <{level = 10 : i32, message = "bqk,bkd->bqd"}> : () -> ()
    %cst_28 = arith.constant dense<0.000000e+00> : vector<1x8x8xf32>
    %63 = tpu.matmul %61, %62, %cst_28 {dimension_numbers = #tpu.dot_dimension_numbers<[2], [1], [1], [2], [0, 0, 0, 1, 1, 2], [0], [0]>} : vector<1x8x8xbf16>, vector<1x8x8xbf16>, vector<1x8x8xf32> -> vector<1x8x8xf32>
    "tpu.trace_stop"() : () -> ()
    %64 = vector.shape_cast %63 : vector<1x8x8xf32> to vector<8x8xf32>
    %65 = vector.extract_strided_slice %41 {offsets = [0, 8], sizes = [8, 8], strides = [1, 1]} : vector<8x96xf32> to vector<8x8xf32>
    %66 = vector.shape_cast %65 : vector<8x8xf32> to vector<1x8x8xf32>
    %67 = vector.extract_strided_slice %41 {offsets = [0, 40], sizes = [8, 8], strides = [1, 1]} : vector<8x96xf32> to vector<8x8xf32>
    %68 = vector.shape_cast %67 : vector<8x8xf32> to vector<1x8x8xf32>
    %69 = vector.extract_strided_slice %41 {offsets = [0, 72], sizes = [8, 8], strides = [1, 1]} : vector<8x96xf32> to vector<8x8xf32>
    %70 = vector.shape_cast %69 : vector<8x8xf32> to vector<1x8x8xf32>
    %71 = arith.truncf %66 : vector<1x8x8xf32> to vector<1x8x8xbf16>
    %72 = arith.truncf %68 : vector<1x8x8xf32> to vector<1x8x8xbf16>
    "tpu.trace_start"() <{level = 10 : i32, message = "bqd,bkd->bqk"}> : () -> ()
    %cst_29 = arith.constant dense<0.000000e+00> : vector<1x8x8xf32>
    %73 = tpu.matmul %71, %72, %cst_29 {dimension_numbers = #tpu.dot_dimension_numbers<[2], [2], [1], [1], [0, 0, 0, 1, 1, 1], [0], [0]>} : vector<1x8x8xbf16>, vector<1x8x8xbf16>, vector<1x8x8xf32> -> vector<1x8x8xf32>
    "tpu.trace_stop"() : () -> ()
    %cst_30 = arith.constant dense<0xFF800000> : vector<1x8xf32>
    %74 = vector.multi_reduction <maximumf>, %73, %cst_30 [2] : vector<1x8x8xf32> to vector<1x8xf32>
    %75 = vector.shape_cast %74 : vector<1x8xf32> to vector<1x8x1xf32>
    %76 = vector.broadcast %75 : vector<1x8x1xf32> to vector<1x8x8xf32>
    %77 = arith.subf %73, %76 : vector<1x8x8xf32>
    %78 = math.exp %77 : vector<1x8x8xf32>
    %cst_31 = arith.constant dense<0.000000e+00> : vector<1x8xf32>
    %79 = vector.multi_reduction <add>, %78, %cst_31 [2] : vector<1x8x8xf32> to vector<1x8xf32>
    %80 = vector.shape_cast %79 : vector<1x8xf32> to vector<1x8x1xf32>
    %81 = tpu.reciprocal %80 {approx = true} : vector<1x8x1xf32> -> vector<1x8x1xf32>
    %82 = vector.broadcast %81 : vector<1x8x1xf32> to vector<1x8x8xf32>
    %83 = arith.mulf %78, %82 : vector<1x8x8xf32>
    %84 = arith.truncf %83 : vector<1x8x8xf32> to vector<1x8x8xbf16>
    %85 = arith.truncf %70 : vector<1x8x8xf32> to vector<1x8x8xbf16>
    "tpu.trace_start"() <{level = 10 : i32, message = "bqk,bkd->bqd"}> : () -> ()
    %cst_32 = arith.constant dense<0.000000e+00> : vector<1x8x8xf32>
    %86 = tpu.matmul %84, %85, %cst_32 {dimension_numbers = #tpu.dot_dimension_numbers<[2], [1], [1], [2], [0, 0, 0, 1, 1, 2], [0], [0]>} : vector<1x8x8xbf16>, vector<1x8x8xbf16>, vector<1x8x8xf32> -> vector<1x8x8xf32>
    "tpu.trace_stop"() : () -> ()
    %87 = vector.shape_cast %86 : vector<1x8x8xf32> to vector<8x8xf32>
    %88 = vector.extract_strided_slice %41 {offsets = [0, 16], sizes = [8, 8], strides = [1, 1]} : vector<8x96xf32> to vector<8x8xf32>
    %89 = vector.shape_cast %88 : vector<8x8xf32> to vector<1x8x8xf32>
    %90 = vector.extract_strided_slice %41 {offsets = [0, 48], sizes = [8, 8], strides = [1, 1]} : vector<8x96xf32> to vector<8x8xf32>
    %91 = vector.shape_cast %90 : vector<8x8xf32> to vector<1x8x8xf32>
    %92 = vector.extract_strided_slice %41 {offsets = [0, 80], sizes = [8, 8], strides = [1, 1]} : vector<8x96xf32> to vector<8x8xf32>
    %93 = vector.shape_cast %92 : vector<8x8xf32> to vector<1x8x8xf32>
    %94 = arith.truncf %89 : vector<1x8x8xf32> to vector<1x8x8xbf16>
    %95 = arith.truncf %91 : vector<1x8x8xf32> to vector<1x8x8xbf16>
    "tpu.trace_start"() <{level = 10 : i32, message = "bqd,bkd->bqk"}> : () -> ()
    %cst_33 = arith.constant dense<0.000000e+00> : vector<1x8x8xf32>
    %96 = tpu.matmul %94, %95, %cst_33 {dimension_numbers = #tpu.dot_dimension_numbers<[2], [2], [1], [1], [0, 0, 0, 1, 1, 1], [0], [0]>} : vector<1x8x8xbf16>, vector<1x8x8xbf16>, vector<1x8x8xf32> -> vector<1x8x8xf32>
    "tpu.trace_stop"() : () -> ()
    %cst_34 = arith.constant dense<0xFF800000> : vector<1x8xf32>
    %97 = vector.multi_reduction <maximumf>, %96, %cst_34 [2] : vector<1x8x8xf32> to vector<1x8xf32>
    %98 = vector.shape_cast %97 : vector<1x8xf32> to vector<1x8x1xf32>
    %99 = vector.broadcast %98 : vector<1x8x1xf32> to vector<1x8x8xf32>
    %100 = arith.subf %96, %99 : vector<1x8x8xf32>
    %101 = math.exp %100 : vector<1x8x8xf32>
    %cst_35 = arith.constant dense<0.000000e+00> : vector<1x8xf32>
    %102 = vector.multi_reduction <add>, %101, %cst_35 [2] : vector<1x8x8xf32> to vector<1x8xf32>
    %103 = vector.shape_cast %102 : vector<1x8xf32> to vector<1x8x1xf32>
    %104 = tpu.reciprocal %103 {approx = true} : vector<1x8x1xf32> -> vector<1x8x1xf32>
    %105 = vector.broadcast %104 : vector<1x8x1xf32> to vector<1x8x8xf32>
    %106 = arith.mulf %101, %105 : vector<1x8x8xf32>
    %107 = arith.truncf %106 : vector<1x8x8xf32> to vector<1x8x8xbf16>
    %108 = arith.truncf %93 : vector<1x8x8xf32> to vector<1x8x8xbf16>
    "tpu.trace_start"() <{level = 10 : i32, message = "bqk,bkd->bqd"}> : () -> ()
    %cst_36 = arith.constant dense<0.000000e+00> : vector<1x8x8xf32>
    %109 = tpu.matmul %107, %108, %cst_36 {dimension_numbers = #tpu.dot_dimension_numbers<[2], [1], [1], [2], [0, 0, 0, 1, 1, 2], [0], [0]>} : vector<1x8x8xbf16>, vector<1x8x8xbf16>, vector<1x8x8xf32> -> vector<1x8x8xf32>
    "tpu.trace_stop"() : () -> ()
    %110 = vector.shape_cast %109 : vector<1x8x8xf32> to vector<8x8xf32>
    %111 = vector.extract_strided_slice %41 {offsets = [0, 24], sizes = [8, 8], strides = [1, 1]} : vector<8x96xf32> to vector<8x8xf32>
    %112 = vector.shape_cast %111 : vector<8x8xf32> to vector<1x8x8xf32>
    %113 = vector.extract_strided_slice %41 {offsets = [0, 56], sizes = [8, 8], strides = [1, 1]} : vector<8x96xf32> to vector<8x8xf32>
    %114 = vector.shape_cast %113 : vector<8x8xf32> to vector<1x8x8xf32>
    %115 = vector.extract_strided_slice %41 {offsets = [0, 88], sizes = [8, 8], strides = [1, 1]} : vector<8x96xf32> to vector<8x8xf32>
    %116 = vector.shape_cast %115 : vector<8x8xf32> to vector<1x8x8xf32>
    %117 = arith.truncf %112 : vector<1x8x8xf32> to vector<1x8x8xbf16>
    %118 = arith.truncf %114 : vector<1x8x8xf32> to vector<1x8x8xbf16>
    "tpu.trace_start"() <{level = 10 : i32, message = "bqd,bkd->bqk"}> : () -> ()
    %cst_37 = arith.constant dense<0.000000e+00> : vector<1x8x8xf32>
    %119 = tpu.matmul %117, %118, %cst_37 {dimension_numbers = #tpu.dot_dimension_numbers<[2], [2], [1], [1], [0, 0, 0, 1, 1, 1], [0], [0]>} : vector<1x8x8xbf16>, vector<1x8x8xbf16>, vector<1x8x8xf32> -> vector<1x8x8xf32>
    "tpu.trace_stop"() : () -> ()
    %cst_38 = arith.constant dense<0xFF800000> : vector<1x8xf32>
    %120 = vector.multi_reduction <maximumf>, %119, %cst_38 [2] : vector<1x8x8xf32> to vector<1x8xf32>
    %121 = vector.shape_cast %120 : vector<1x8xf32> to vector<1x8x1xf32>
    %122 = vector.broadcast %121 : vector<1x8x1xf32> to vector<1x8x8xf32>
    %123 = arith.subf %119, %122 : vector<1x8x8xf32>
    %124 = math.exp %123 : vector<1x8x8xf32>
    %cst_39 = arith.constant dense<0.000000e+00> : vector<1x8xf32>
    %125 = vector.multi_reduction <add>, %124, %cst_39 [2] : vector<1x8x8xf32> to vector<1x8xf32>
    %126 = vector.shape_cast %125 : vector<1x8xf32> to vector<1x8x1xf32>
    %127 = tpu.reciprocal %126 {approx = true} : vector<1x8x1xf32> -> vector<1x8x1xf32>
    %128 = vector.broadcast %127 : vector<1x8x1xf32> to vector<1x8x8xf32>
    %129 = arith.mulf %124, %128 : vector<1x8x8xf32>
    %130 = arith.truncf %129 : vector<1x8x8xf32> to vector<1x8x8xbf16>
    %131 = arith.truncf %116 : vector<1x8x8xf32> to vector<1x8x8xbf16>
    "tpu.trace_start"() <{level = 10 : i32, message = "bqk,bkd->bqd"}> : () -> ()
    %cst_40 = arith.constant dense<0.000000e+00> : vector<1x8x8xf32>
    %132 = tpu.matmul %130, %131, %cst_40 {dimension_numbers = #tpu.dot_dimension_numbers<[2], [1], [1], [2], [0, 0, 0, 1, 1, 2], [0], [0]>} : vector<1x8x8xbf16>, vector<1x8x8xbf16>, vector<1x8x8xf32> -> vector<1x8x8xf32>
    "tpu.trace_stop"() : () -> ()
    %133 = vector.shape_cast %132 : vector<1x8x8xf32> to vector<8x8xf32>
    %134 = tpu.concatenate %64, %87, %110, %133 in 1 : vector<8x8xf32>, vector<8x8xf32>, vector<8x8xf32>, vector<8x8xf32> -> vector<8x32xf32>
    %135 = arith.truncf %134 : vector<8x32xf32> to vector<8x32xbf16>
    %cst_41 = arith.constant dense<0.000000e+00> : vector<8x32xf32>
    %136 = tpu.matmul %135, %13, %cst_41 {dimension_numbers = #tpu.dot_dimension_numbers<[1], [0], [0], [1], [0, 0, 1, 1], [], []>} : vector<8x32xbf16>, vector<32x32xbf16>, vector<8x32xf32> -> vector<8x32xf32>
    %137 = vector.broadcast %15 : vector<1x32xf32> to vector<8x32xf32>
    %138 = arith.addf %136, %137 : vector<8x32xf32>
    %139 = arith.addf %3, %138 : vector<8x32xf32>
    %c0_42 = arith.constant 0 : index
    %c0_43 = arith.constant 0 : index
    %c0_44 = arith.constant 0 : index
    %140 = vector.load %arg13[%c0_42, %c0_43, %c0_44] : memref<1x1x32xf32, #tpu.memory_space<vmem>>, vector<1x1x32xf32>
    %141 = vector.shape_cast %140 : vector<1x1x32xf32> to vector<1x32xf32>
    %c0_45 = arith.constant 0 : index
    %c0_46 = arith.constant 0 : index
    %c0_47 = arith.constant 0 : index
    %142 = vector.load %arg14[%c0_45, %c0_46, %c0_47] : memref<1x1x32xf32, #tpu.memory_space<vmem>>, vector<1x1x32xf32>
    %143 = vector.shape_cast %142 : vector<1x1x32xf32> to vector<1x32xf32>
    %c0_48 = arith.constant 0 : index
    %c0_49 = arith.constant 0 : index
    %c0_50 = arith.constant 0 : index
    %144 = vector.load %arg15[%c0_48, %c0_49, %c0_50] : memref<1x32x128xbf16, #tpu.memory_space<vmem>>, vector<1x32x128xbf16>
    %145 = vector.shape_cast %144 : vector<1x32x128xbf16> to vector<32x128xbf16>
    %c0_51 = arith.constant 0 : index
    %c0_52 = arith.constant 0 : index
    %c0_53 = arith.constant 0 : index
    %146 = vector.load %arg16[%c0_51, %c0_52, %c0_53] : memref<1x1x128xf32, #tpu.memory_space<vmem>>, vector<1x1x128xf32>
    %147 = vector.shape_cast %146 : vector<1x1x128xf32> to vector<1x128xf32>
    %c0_54 = arith.constant 0 : index
    %c0_55 = arith.constant 0 : index
    %c0_56 = arith.constant 0 : index
    %148 = vector.load %arg17[%c0_54, %c0_55, %c0_56] : memref<1x128x32xbf16, #tpu.memory_space<vmem>>, vector<1x128x32xbf16>
    %149 = vector.shape_cast %148 : vector<1x128x32xbf16> to vector<128x32xbf16>
    %c0_57 = arith.constant 0 : index
    %c0_58 = arith.constant 0 : index
    %c0_59 = arith.constant 0 : index
    %150 = vector.load %arg18[%c0_57, %c0_58, %c0_59] : memref<1x1x32xf32, #tpu.memory_space<vmem>>, vector<1x1x32xf32>
    %151 = vector.shape_cast %150 : vector<1x1x32xf32> to vector<1x32xf32>
    %cst_60 = arith.constant dense<0.000000e+00> : vector<8xf32>
    %152 = vector.multi_reduction <add>, %139, %cst_60 [1] : vector<8x32xf32> to vector<8xf32>
    %153 = vector.shape_cast %152 : vector<8xf32> to vector<8x1xf32>
    %cst_61 = arith.constant 3.200000e+01 : f32
    %154 = vector.broadcast %cst_61 : f32 to vector<8x1xf32>
    %155 = arith.divf %153, %154 : vector<8x1xf32>
    %156 = vector.broadcast %155 : vector<8x1xf32> to vector<8x32xf32>
    %157 = arith.subf %139, %156 : vector<8x32xf32>
    %158 = arith.mulf %157, %157 : vector<8x32xf32>
    %cst_62 = arith.constant dense<0.000000e+00> : vector<8xf32>
    %159 = vector.multi_reduction <add>, %158, %cst_62 [1] : vector<8x32xf32> to vector<8xf32>
    %160 = vector.shape_cast %159 : vector<8xf32> to vector<8x1xf32>
    %cst_63 = arith.constant 3.200000e+01 : f32
    %161 = vector.broadcast %cst_63 : f32 to vector<8x1xf32>
    %162 = arith.divf %160, %161 : vector<8x1xf32>
    %163 = vector.broadcast %155 : vector<8x1xf32> to vector<8x32xf32>
    %164 = arith.subf %139, %163 : vector<8x32xf32>
    %cst_64 = arith.constant 9.99999974E-6 : f32
    %165 = vector.broadcast %cst_64 : f32 to vector<8x1xf32>
    %166 = arith.addf %162, %165 : vector<8x1xf32>
    %167 = math.rsqrt %166 : vector<8x1xf32>
    %168 = vector.broadcast %167 : vector<8x1xf32> to vector<8x32xf32>
    %169 = arith.mulf %164, %168 : vector<8x32xf32>
    %170 = vector.broadcast %141 : vector<1x32xf32> to vector<8x32xf32>
    %171 = arith.mulf %169, %170 : vector<8x32xf32>
    %172 = vector.broadcast %143 : vector<1x32xf32> to vector<8x32xf32>
    %173 = arith.addf %171, %172 : vector<8x32xf32>
    %174 = arith.truncf %173 : vector<8x32xf32> to vector<8x32xbf16>
    %cst_65 = arith.constant dense<0.000000e+00> : vector<8x128xf32>
    %175 = tpu.matmul %174, %145, %cst_65 {dimension_numbers = #tpu.dot_dimension_numbers<[1], [0], [0], [1], [0, 0, 1, 1], [], []>} : vector<8x32xbf16>, vector<32x128xbf16>, vector<8x128xf32> -> vector<8x128xf32>
    %176 = vector.broadcast %147 : vector<1x128xf32> to vector<8x128xf32>
    %177 = arith.addf %175, %176 : vector<8x128xf32>
    %cst_66 = arith.constant 5.000000e-01 : f32
    %178 = vector.broadcast %cst_66 : f32 to vector<8x128xf32>
    %179 = arith.mulf %178, %177 : vector<8x128xf32>
    %180 = arith.mulf %177, %177 : vector<8x128xf32>
    %181 = arith.mulf %177, %180 : vector<8x128xf32>
    %cst_67 = arith.constant 4.471500e-02 : f32
    %182 = vector.broadcast %cst_67 : f32 to vector<8x128xf32>
    %183 = arith.mulf %182, %181 : vector<8x128xf32>
    %184 = arith.addf %177, %183 : vector<8x128xf32>
    %cst_68 = arith.constant 0.797884583 : f32
    %185 = vector.broadcast %cst_68 : f32 to vector<8x128xf32>
    %186 = arith.mulf %185, %184 : vector<8x128xf32>
    %187 = math.tanh %186 : vector<8x128xf32>
    %cst_69 = arith.constant 1.000000e+00 : f32
    %188 = vector.broadcast %cst_69 : f32 to vector<8x128xf32>
    %189 = arith.addf %188, %187 : vector<8x128xf32>
    %190 = arith.mulf %179, %189 : vector<8x128xf32>
    %191 = arith.truncf %190 : vector<8x128xf32> to vector<8x128xbf16>
    %cst_70 = arith.constant dense<0.000000e+00> : vector<8x32xf32>
    %192 = tpu.matmul %191, %149, %cst_70 {dimension_numbers = #tpu.dot_dimension_numbers<[1], [0], [0], [1], [0, 0, 1, 1], [], []>} : vector<8x128xbf16>, vector<128x32xbf16>, vector<8x32xf32> -> vector<8x32xf32>
    %193 = vector.broadcast %151 : vector<1x32xf32> to vector<8x32xf32>
    %194 = arith.addf %192, %193 : vector<8x32xf32>
    %195 = arith.addf %139, %194 : vector<8x32xf32>
    %c0_71 = arith.constant 0 : index
    %c0_72 = arith.constant 0 : index
    %196 = vector.load %arg24[%c0_71, %c0_72] : memref<8x32xf32, #tpu.memory_space<vmem>>, vector<8x32xf32>
    tpu.vector_store %arg24[%c0_71, %c0_72], %195 {strides = array<i32>} : memref<8x32xf32, #tpu.memory_space<vmem>>, vector<8x32xf32>,
    %c1_i32 = arith.constant 1 : i32
    %197 = arith.cmpi eq, %arg1, %c1_i32 : i32
    %198 = arith.extui %197 : i1 to i32
    %c0_i32_73 = arith.constant 0 : i32
    %199 = arith.cmpi ne, %198, %c0_i32_73 : i32
    scf.if %199 {
      %c0_74 = arith.constant 0 : index
      %c0_75 = arith.constant 0 : index
      %200 = vector.load %arg19[%c0_74, %c0_75] : memref<1x32xf32, #tpu.memory_space<vmem>>, vector<1x32xf32>
      %c0_76 = arith.constant 0 : index
      %c0_77 = arith.constant 0 : index
      %201 = vector.load %arg20[%c0_76, %c0_77] : memref<1x32xf32, #tpu.memory_space<vmem>>, vector<1x32xf32>
      %cst_78 = arith.constant dense<0.000000e+00> : vector<8xf32>
      %202 = vector.multi_reduction <add>, %195, %cst_78 [1] : vector<8x32xf32> to vector<8xf32>
      %203 = vector.shape_cast %202 : vector<8xf32> to vector<8x1xf32>
      %cst_79 = arith.constant 3.200000e+01 : f32
      %204 = vector.broadcast %cst_79 : f32 to vector<8x1xf32>
      %205 = arith.divf %203, %204 : vector<8x1xf32>
      %206 = vector.broadcast %205 : vector<8x1xf32> to vector<8x32xf32>
      %207 = arith.subf %195, %206 : vector<8x32xf32>
      %208 = arith.mulf %207, %207 : vector<8x32xf32>
      %cst_80 = arith.constant dense<0.000000e+00> : vector<8xf32>
      %209 = vector.multi_reduction <add>, %208, %cst_80 [1] : vector<8x32xf32> to vector<8xf32>
      %210 = vector.shape_cast %209 : vector<8xf32> to vector<8x1xf32>
      %cst_81 = arith.constant 3.200000e+01 : f32
      %211 = vector.broadcast %cst_81 : f32 to vector<8x1xf32>
      %212 = arith.divf %210, %211 : vector<8x1xf32>
      %213 = vector.broadcast %205 : vector<8x1xf32> to vector<8x32xf32>
      %214 = arith.subf %195, %213 : vector<8x32xf32>
      %cst_82 = arith.constant 9.99999974E-6 : f32
      %215 = vector.broadcast %cst_82 : f32 to vector<8x1xf32>
      %216 = arith.addf %212, %215 : vector<8x1xf32>
      %217 = math.rsqrt %216 : vector<8x1xf32>
      %218 = vector.broadcast %217 : vector<8x1xf32> to vector<8x32xf32>
      %219 = arith.mulf %214, %218 : vector<8x32xf32>
      %220 = vector.broadcast %200 : vector<1x32xf32> to vector<8x32xf32>
      %221 = arith.mulf %219, %220 : vector<8x32xf32>
      %222 = vector.broadcast %201 : vector<1x32xf32> to vector<8x32xf32>
      %223 = arith.addf %221, %222 : vector<8x32xf32>
      %224 = arith.truncf %223 : vector<8x32xf32> to vector<8x32xbf16>
      %c0_83 = arith.constant 0 : index
      %c0_84 = arith.constant 0 : index
      %225 = vector.load %arg21[%c0_83, %c0_84] : memref<32x128xbf16, #tpu.memory_space<vmem>>, vector<32x128xbf16>
      %cst_85 = arith.constant dense<0.000000e+00> : vector<8x128xf32>
      %226 = tpu.matmul %224, %225, %cst_85 {dimension_numbers = #tpu.dot_dimension_numbers<[1], [0], [0], [1], [0, 0, 1, 1], [], []>} : vector<8x32xbf16>, vector<32x128xbf16>, vector<8x128xf32> -> vector<8x128xf32>
      %c0_86 = arith.constant 0 : index
      %c0_87 = arith.constant 0 : index
      %227 = vector.load %arg22[%c0_86, %c0_87] : memref<1x128xf32, #tpu.memory_space<vmem>>, vector<1x128xf32>
      %228 = vector.broadcast %227 : vector<1x128xf32> to vector<8x128xf32>
      %229 = arith.addf %226, %228 : vector<8x128xf32>
      %230 = vector.shape_cast %229 : vector<8x128xf32> to vector<1x8x128xf32>
      %231 = arith.truncf %230 : vector<1x8x128xf32> to vector<1x8x128xbf16>
      %c0_88 = arith.constant 0 : index
      %c0_89 = arith.constant 0 : index
      %c0_90 = arith.constant 0 : index
      %232 = vector.load %arg23[%c0_88, %c0_89, %c0_90] : memref<1x8x128xbf16, #tpu.memory_space<vmem>>, vector<1x8x128xbf16>
      tpu.vector_store %arg23[%c0_88, %c0_89, %c0_90], %231 {strides = array<i32>} : memref<1x8x128xbf16, #tpu.memory_space<vmem>>, vector<1x8x128xbf16>,
    } else {
    }
    return
  }
  func.func @transform_0(%arg0: i32, %arg1: i32) -> (i32, i32) {
    %c0_i32 = arith.constant 0 : i32
    %c0_i32_0 = arith.constant 0 : i32
    return %arg0, %c0_i32 : i32, i32
  }
  func.func @transform_1(%arg0: i32, %arg1: i32) -> (i32, i32) {
    %c0_i32 = arith.constant 0 : i32
    %c0_i32_0 = arith.constant 0 : i32
    return %arg0, %c0_i32 : i32, i32
  }
  func.func @transform_2(%arg0: i32, %arg1: i32) -> (i32, i32) {
    %c0_i32 = arith.constant 0 : i32
    %c0_i32_0 = arith.constant 0 : i32
    %c0_i32_1 = arith.constant 0 : i32
    return %c0_i32, %c0_i32_0 : i32, i32
  }
  func.func @transform_3(%arg0: i32, %arg1: i32) -> (i32, i32) {
    %c0_i32 = arith.constant 0 : i32
    %c0_i32_0 = arith.constant 0 : i32
    %c0_i32_1 = arith.constant 0 : i32
    return %c0_i32, %c0_i32_0 : i32, i32
  }
  func.func @transform_4(%arg0: i32, %arg1: i32) -> (i32, i32) {
    %c0_i32 = arith.constant 0 : i32
    %c0_i32_0 = arith.constant 0 : i32
    %c0_i32_1 = arith.constant 0 : i32
    return %c0_i32, %c0_i32_0 : i32, i32
  }
  func.func @transform_5(%arg0: i32, %arg1: i32) -> (i32, i32, i32) {
    %c0_i32 = arith.constant 0 : i32
    %c0_i32_0 = arith.constant 0 : i32
    %c0_i32_1 = arith.constant 0 : i32
    return %arg1, %c0_i32, %c0_i32_0 : i32, i32, i32
  }
  func.func @transform_6(%arg0: i32, %arg1: i32) -> (i32, i32, i32) {
    %c0_i32 = arith.constant 0 : i32
    %c0_i32_0 = arith.constant 0 : i32
    %c0_i32_1 = arith.constant 0 : i32
    return %arg1, %c0_i32, %c0_i32_0 : i32, i32, i32
  }
  func.func @transform_7(%arg0: i32, %arg1: i32) -> (i32, i32, i32) {
    %c0_i32 = arith.constant 0 : i32
    %c0_i32_0 = arith.constant 0 : i32
    %c0_i32_1 = arith.constant 0 : i32
    return %arg1, %c0_i32, %c0_i32_0 : i32, i32, i32
  }
  func.func @transform_8(%arg0: i32, %arg1: i32) -> (i32, i32, i32) {
    %c0_i32 = arith.constant 0 : i32
    %c0_i32_0 = arith.constant 0 : i32
    %c0_i32_1 = arith.constant 0 : i32
    return %arg1, %c0_i32, %c0_i32_0 : i32, i32, i32
  }
  func.func @transform_9(%arg0: i32, %arg1: i32) -> (i32, i32, i32) {
    %c0_i32 = arith.constant 0 : i32
    %c0_i32_0 = arith.constant 0 : i32
    %c0_i32_1 = arith.constant 0 : i32
    return %arg1, %c0_i32, %c0_i32_0 : i32, i32, i32
  }
  func.func @transform_10(%arg0: i32, %arg1: i32) -> (i32, i32, i32) {
    %c0_i32 = arith.constant 0 : i32
    %c0_i32_0 = arith.constant 0 : i32
    %c0_i32_1 = arith.constant 0 : i32
    return %arg1, %c0_i32, %c0_i32_0 : i32, i32, i32
  }
  func.func @transform_11(%arg0: i32, %arg1: i32) -> (i32, i32, i32) {
    %c0_i32 = arith.constant 0 : i32
    %c0_i32_0 = arith.constant 0 : i32
    %c0_i32_1 = arith.constant 0 : i32
    return %arg1, %c0_i32, %c0_i32_0 : i32, i32, i32
  }
  func.func @transform_12(%arg0: i32, %arg1: i32) -> (i32, i32, i32) {
    %c0_i32 = arith.constant 0 : i32
    %c0_i32_0 = arith.constant 0 : i32
    %c0_i32_1 = arith.constant 0 : i32
    return %arg1, %c0_i32, %c0_i32_0 : i32, i32, i32
  }
  func.func @transform_13(%arg0: i32, %arg1: i32) -> (i32, i32, i32) {
    %c0_i32 = arith.constant 0 : i32
    %c0_i32_0 = arith.constant 0 : i32
    %c0_i32_1 = arith.constant 0 : i32
    return %arg1, %c0_i32, %c0_i32_0 : i32, i32, i32
  }
  func.func @transform_14(%arg0: i32, %arg1: i32) -> (i32, i32, i32) {
    %c0_i32 = arith.constant 0 : i32
    %c0_i32_0 = arith.constant 0 : i32
    %c0_i32_1 = arith.constant 0 : i32
    return %arg1, %c0_i32, %c0_i32_0 : i32, i32, i32
  }
  func.func @transform_15(%arg0: i32, %arg1: i32) -> (i32, i32, i32) {
    %c0_i32 = arith.constant 0 : i32
    %c0_i32_0 = arith.constant 0 : i32
    %c0_i32_1 = arith.constant 0 : i32
    return %arg1, %c0_i32, %c0_i32_0 : i32, i32, i32
  }
  func.func @transform_16(%arg0: i32, %arg1: i32) -> (i32, i32, i32) {
    %c0_i32 = arith.constant 0 : i32
    %c0_i32_0 = arith.constant 0 : i32
    %c0_i32_1 = arith.constant 0 : i32
    return %arg1, %c0_i32, %c0_i32_0 : i32, i32, i32
  }
  func.func @transform_17(%arg0: i32, %arg1: i32) -> (i32, i32) {
    %c0_i32 = arith.constant 0 : i32
    %c0_i32_0 = arith.constant 0 : i32
    %c0_i32_1 = arith.constant 0 : i32
    return %c0_i32, %c0_i32_0 : i32, i32
  }
  func.func @transform_18(%arg0: i32, %arg1: i32) -> (i32, i32) {
    %c0_i32 = arith.constant 0 : i32
    %c0_i32_0 = arith.constant 0 : i32
    %c0_i32_1 = arith.constant 0 : i32
    return %c0_i32, %c0_i32_0 : i32, i32
  }
  func.func @transform_19(%arg0: i32, %arg1: i32) -> (i32, i32) {
    %c0_i32 = arith.constant 0 : i32
    %c0_i32_0 = arith.constant 0 : i32
    %c0_i32_1 = arith.constant 0 : i32
    return %c0_i32, %c0_i32_0 : i32, i32
  }
  func.func @transform_20(%arg0: i32, %arg1: i32) -> (i32, i32) {
    %c0_i32 = arith.constant 0 : i32
    %c0_i32_0 = arith.constant 0 : i32
    %c0_i32_1 = arith.constant 0 : i32
    return %c0_i32, %c0_i32_0 : i32, i32
  }
  func.func @transform_21(%arg0: i32, %arg1: i32) -> (i32, i32, i32) {
    %c0_i32 = arith.constant 0 : i32
    %c0_i32_0 = arith.constant 0 : i32
    %c0_i32_1 = arith.constant 0 : i32
    return %arg0, %c0_i32, %c0_i32_0 : i32, i32, i32
  }
}

</mosaic_0001>

<bundles_post_ra>
// kernel: tpu_custom_call.1
= control target key start
LH: loop header
LB: loop body
LE: loop exit
PB: predicated region body
PF: predicated region fallthrough
CT: control target
= control target key end

     0   :  { %s2561_s0 = inlined_call_operand.vmem [shape: f32[16,16], index: 0, kind: input, shape index: {}]   ;;  %s2562_s1 = inlined_call_operand.vmem [shape: f32[16,4], index: 1, kind: input, shape index: {}]   ;;  %s2563_s2 = inlined_call_operand.vmem [shape: bf16[16,32], index: 2, kind: input, shape index: {}]   ;;  %s2564_s3 = inlined_call_operand.vmem [shape: bf16[4,32], index: 3, kind: input, shape index: {}]   ;;  %s2565_s4 = inlined_call_operand.vmem [shape: f32[1,32], index: 4, kind: input, shape index: {}]   ;;  %s2566_s5 = inlined_call_operand.vmem [shape: f32[2,1,32], index: 5, kind: input, shape index: {}]   ;;  %s2567_s6 = inlined_call_operand.vmem [shape: f32[2,1,32], index: 6, kind: input, shape index: {}]   ;;  %s2568_s7 = inlined_call_operand.vmem [shape: bf16[2,32,96], index: 7, kind: input, shape index: {}]   ;;  %s2569_s8 = inlined_call_operand.vmem [shape: f32[2,1,96], index: 8, kind: input, shape index: {}]   ;;  %s2570_s9 = inlined_call_operand.vmem [shape: bf16[2,32,32], index: 9, kind: input, shape index: {}]   ;;  %s2571_s10 = inlined_call_operand.vmem [shape: f32[2,1,32], index: 10, kind: input, shape index: {}]   ;;  %s2572_s11 = inlined_call_operand.vmem [shape: f32[2,1,32], index: 11, kind: input, shape index: {}]   ;;  %s2573_s12 = inlined_call_operand.vmem [shape: f32[2,1,32], index: 12, kind: input, shape index: {}]   ;;  %s2574_s13 = inlined_call_operand.vmem [shape: bf16[2,32,128], index: 13, kind: input, shape index: {}]   ;;  %s2575_s14 = inlined_call_operand.vmem [shape: f32[2,1,128], index: 14, kind: input, shape index: {}]   ;;  %s2576_s15 = inlined_call_operand.vmem [shape: bf16[2,128,32], index: 15, kind: input, shape index: {}]   ;;  %s2577_s16 = inlined_call_operand.vmem [shape: f32[2,1,32], index: 16, kind: input, shape index: {}]   ;;  %s2578_s17 = inlined_call_operand.vmem [shape: f32[1,32], index: 17, kind: input, shape index: {}]   ;;  %s2579_s18 = inlined_call_operand.vmem [shape: f32[1,32], index: 18, kind: input, shape index: {}]   ;;  %s2580_s19 = inlined_call_operand.vmem [shape: bf16[32,128], index: 19, kind: input, shape index: {}]   ;;  %s2581_s20 = inlined_call_operand.vmem [shape: f32[1,128], index: 20, kind: input, shape index: {}]   ;;  %s2582_s21 = inlined_call_operand.hbm [shape: bf16[2,8,128], index: 21, kind: output, shape index: {}]  }
   0x1   :  { %2599 = sst [smem:[#allocation19_spill]] %s2561_s0 }
   0x2   :  { %2600 = sst [smem:[#allocation20_spill]] %s2562_s1 }
   0x3   :  { %2601 = sst [smem:[#allocation21_spill]] %s2563_s2 }
   0x4   :  { %2602 = sst [smem:[#allocation22_spill]] %s2564_s3 }
   0x5   :  { %2603 = sst [smem:[#allocation23_spill]] %s2565_s4 }
   0x6   :  { %2604 = sst [smem:[#allocation24_spill]] %s2566_s5 }
   0x7   :  { %2605 = sst [smem:[#allocation25_spill]] %s2568_s7 }
   0x8   :  { %2606 = sst [smem:[#allocation26_spill]] %s2570_s9 }
   0x9   :  { %2607 = sst [smem:[#allocation27_spill]] %s2576_s15 }
   0xa   :  { %2608 = sst [smem:[#allocation28_spill]] %s2577_s16 }
   0xb   :  { %2609 = sst [smem:[#allocation29_spill]] %s2578_s17 }
   0xc   :  { %2610 = sst [smem:[#allocation30_spill]] %s2579_s18 }
   0xd   :  { %2611 = sst [smem:[#allocation31_spill]] %s2580_s19 }
   0xe   :  { %2612 = sst [smem:[#allocation32_spill]] %s2581_s20 }
   0xf   :  { %2613 = sst [smem:[#allocation33_spill]] %s2582_s21 }
  0x10   :  { %26 = vsyncpa [#allocation4], 0 }
  0x11   :  { %28 = vsyncpa [#allocation4 + $0x1], 0  ;;  %s2222_s2 = smov 0   ;;  %s2224_s25 = smov 0  }
  0x12   :  { %s2226_s26 = smov 0   ;;  %s2228_s27 = smov 0  }
  0x13   :  { %s2230_s3 = smov 0   ;;  %s2232_s28 = smov 0  }
  0x14   :  { %s2234_s29 = smov 0   ;;  %s2236_s0 = smov 0  }
  0x15 LB: > { %2614 = sst [smem:[#allocation6_spill]] %s2067_s2  ;;  %s1752_s4 = sadd.s32 4294967295, %s2095_s0   ;;  %s2095_s0 = sphi %s2236_s0, %s34_s0   ;;  %s2091_s29 = sphi %s2234_s29, %s2668_s29   ;;  %s2087_s28 = sphi %s2232_s28, %s2667_s28   ;;  %s2083_s3 = sphi %s2230_s3, %s2666_s3   ;;  %s2079_s27 = sphi %s2228_s27, %s2665_s27   ;;  %s2075_s26 = sphi %s2226_s26, %s2664_s26   ;;  %s2071_s25 = sphi %s2224_s25, %s2663_s25   ;;  %s2067_s2 = sphi %s2222_s2, %s2662_s2  }
  0x16   : > { %2615 = sst [smem:[#allocation7_spill]] %s2071_s25  ;;  %s1753_s30 = sadd.s32 4294967294, %s2095_s0  }
  0x17   : > { %2616 = sst [smem:[#allocation8_spill]] %s2075_s26  ;;  %s43_s5 = sadd.s32 1, %s2087_s28 }
  0x18   : > { %2617 = sst [smem:[#allocation9_spill]] %s2079_s27  ;;  %p44_p0 = scmp.ge.s32.totalorder %s43_s5, 2 }
  0x19   : > { %2618 = sst [smem:[#allocation10_spill]] %s2083_s3  ;;  %s46_s22 = sadd.s32 1, %s2091_s29 }
  0x1a   : > { %2619 = sst [smem:[#allocation11_spill]] %s2087_s28  ;;  %p574_p1 = scmp.ne.s32.totalorder %s2075_s26, %s2071_s25 }
  0x1b   : > { %2620 = sst [smem:[#allocation12_spill]] %s2091_s29  ;;  %p575_p2 = scmp.eq.s32.totalorder %s1752_s4, 3 }
  0x1c   : > { %2621 = sst [smem:[#allocation13_spill]] %s2095_s0  ;;  %s2670_s5 = smov (%p44_p0, %s43_s5), 0 }
  0x1d   : > { %2622 = sst [smem:[#allocation14_spill]] %s2670_s5  ;;  %s2672_s22 = smov (!%p44_p0, %s46_s22), %s2091_s29 }
  0x1e   : > { %p2271_p3 = por %p575_p2, %p574_p1  ;;  %p580_p4 = scmp.ne.s32.totalorder %s2071_s25, %s2067_s2 }
  0x1f   : > { %p48_p5 = scmp.ge.s32.totalorder %s2672_s22, 2  ;;  %p581_p6 = scmp.eq.s32.totalorder %s1753_s30, 3 }
  0x20   : > { %s2623_s23 = scalar_select %p2271_p3, 1, 0 }
  0x21   : > { %p1756_p7 = scmp.ge.s32.totalorder %s2095_s0, 1  ;;  %p714_p8 = scmp.lt.s32.totalorder %s2095_s0, 5 }
  0x22   : > { %2624 = sst [smem:[#allocation15_spill]] %s2623_s23  ;;  %s2674_s22 = smov (%p48_p5, %s2672_s22), 0 }
  0x23   : > { %2625 = sst [smem:[#allocation16_spill]] %s2674_s22  ;;  %p2281_p9 = por %p581_p6, %p580_p4 }
  0x24   : > { %p715_p10 = pnand %p1756_p7, %p714_p8  ;;  %s561_s24 = ssub.s32 %s2091_s29, %s2674_s22 }
  0x25   : > { %s2626_s1 = scalar_select %p2281_p9, 1, 0 }
  0x26   : > { %s564_s4 = sadd.s32 1, %s2075_s26  ;;  %p562_p11 = scmp.eq.s32.totalorder %s561_s24, 0 }
  0x27   : > { %2627 = sst [smem:[#allocation17_spill]] %s2626_s1  ;;  %718 = sbr.rel (%p715_p10) target bundleno = 2931 (0xb73), region = 104 }
  0x28   : > { %s2289_s5 = scalar_select %p562_p11, %s2075_s26, %s564_s4  }
  0x29   : > { %s2588_s30 = sand.u32 (!%p715_p10), 1, %s2071_s25   ;;  %p821_p12 = scmp.lt.s32.totalorder (!%p715_p10), %s2083_s3, 1 }
  0x2a   : > { %2628 = sst [smem:[#allocation18_spill]] %s2289_s5  ;;  %s2295_s28 = sshll.u32 (!%p715_p10), %s2588_s30, 2 }
  0x2b   : > { %p829_p13 = scmp.lt.s32.totalorder (!%p715_p10), %s2079_s27, 1  ;;  %s2629_s29 = sld [smem:[#allocation19_spill]] (!%p715_p10) }
  0x2c   : > { %s822_s1 = scalar_select %p821_p12, %s2083_s3, 1 }
  0x2d   : > { %s2300_s2 = scalar_select %p829_p13, %s2079_s27, 1 }
  0x2e   : > { %s1758_s24 = sshll.u32 %s822_s1, 3  ;;  %s2630_s0 = sld [smem:[#allocation20_spill]] }
  0x2f   : > { %s1856_s27 = sshll.u32 %s2300_s2, 4  ;;  %s2632_s7 = sld [smem:[#allocation25_spill]] }
  0x30   : > { %s2633_s9 = sld [smem:[#allocation26_spill]]  ;;  %s2346_s19 = scalar_lea.vmem %s2574_s13, %s1856_s27 }
  0x31   : > { %s824_s30 = scalar_lea.vmem %s2629_s29, %s1758_s24  ;;  %s2634_s17 = sld [smem:[#allocation27_spill]] }
  0x32   : > { %s820_s1 = scalar_lea.vmem [#allocation3], %s2295_s28  ;;  %s2636_s22 = sld [smem:[#allocation9_spill]] }
  0x34   : > { %s828_s21 = scalar_lea.vmem %s2630_s0, %s1758_s24  ;;  %s2635_s24 = sld [smem:[#allocation28_spill]] }
  0x35   : > { %s2324_s15 = scalar_lea.vmem %s2632_s7, %s1856_s27  ;;  %s1859_s7 = sshll.u32 %s2300_s2, 6 }
  0x36   : > { %s2329_s5 = scalar_lea.vmem %s2633_s9, %s1856_s27 }
  0x37   : > { %s2356_s9 = scalar_lea.vmem %s2634_s17, %s1859_s7 }
  0x38   : > { %p1768_p0 = scmp.ne.s32.totalorder %s2636_s22, 0 }
  0x39   : > { %s2637_s29 = sld [smem:[#allocation22_spill]] (!%p1768_p0) }
  0x3a   : > { %s872_s16 = scalar_lea.vmem %s2635_s24, %s2300_s2  ;;  %877 = sbr.rel (%p1768_p0) target bundleno = 203 (0xcb), region = 108 }
  0x3b   : > { %s2638_s20 = sld [smem:[#allocation21_spill]] (!%p1768_p0) }
  0x3c   : > { %s2639_s17 = sld [smem:[#allocation23_spill]] (!%p1768_p0) }
  0x3f   : > { %v884_v0 = vld [vmem:[%s2637_s29] sm:$0x3]  ;;  %vm889_vm0 = vcmask 1041408   ;;  %vm885_vm1 = vcmask 31744   ;;  %vm912_vm2 = vcmask 130048   ;;  %vm934_vm3 = vcmask 261120  }
  0x40   : > { %v882_v2 = vld [vmem:[%s828_s21] sm:$0xff]  ;;  %v891_v3 = vsel %vm889_vm0, %v884_v0, 0 }
  0x41   : > { %v1860_v1 = vld [vmem:[%s2638_s20] sm:$0xff]  ;;  %v883_v4 = vpack.c.bf16 %v882_v2, %v882_v2  ;;  %900 = vmatpush.bf16.msra.mxu0 %v891_v3 }
  0x42   : > { %v878_v5 = vld [vmem:[%s824_s30] sm:$0xff]  ;;  %923 = vmatpush.bf16.msra.mxu1 %v1860_v1 }
  0x43   : > { %v879_v6 = vpack.c.bf16 %v878_v5, %v878_v5  ;;  %v1963_v7 = vld [vmem:[%s2639_s17] ss:$0 sm:$0xff] }
  0x44   : > { %1769 = vmatmul.msk.bf16.vlgmr.msra.gmra.mxu0 %vm885_vm1, %v883_v4 }
  0x45   : > { %1774 = vmatmul.msk.bf16.vlgmr.msra.gmra.mxu1 %vm912_vm2, %v879_v6 }
  0xc1   : > { %v902_v8 = vpop.f32.mrf.mxu0 }
  0xc2   : > { %v925_v9 = vpop.f32.mrf.mxu1 }
  0xc3   : > { %v926_v10 = vadd.f32 %v925_v9, %v902_v8 }
  0xc5   : > { %v933_v11 = vadd.f32 %v1963_v7, %v926_v10 }
  0xc7   : > { %935 = vst.msk [vmem:[#allocation2] sm:$0xff] %vm934_vm3, %v933_v11 }
  0xc9   : > { %v904_v12 = vpop.f32.mrf.mxu0 }
  0xca   : > { %v927_v13 = vpop.f32.mrf.mxu1 }
  0xcb PF: > { %vm949_vm4 = vcmask 261120   ;;  %v2097_v16 = vmov 32.0   ;;  %v1862_v28 = vld [vmem:[%s2324_s15 + $0x8] sm:$0xff]  ;;  %v1861_v29 = vld [vmem:[%s2324_s15] sm:$0xff]  ;;  %s2640_s15 = sld [smem:[#allocation24_spill]]  ;;  %s2642_s3 = scalar_lea.vmem %s2567_s6, %s2300_s2  ;;  %vm1062_vm9 = vcmask 1043456  }
  0xcc   : > { %1972 = vrcp.f32 %v2097_v16  ;;  %1012 = vmatpush.bf16.msra.mxu0 %v1862_v28  ;;  %v1965_v42 = vld [vmem:[%s2642_s3] ss:$0 sm:$0xff]  ;;  %s2643_s27 = scalar_lea.vmem %s2569_s8, %s2300_s2  ;;  %s2098_s4 = smov 88   ;;  %vm1025_vm10 = vcmask 64512   ;;  %vm1260_vm11 = vcmask 130048   ;;  %vm1262_vm12 = vcmask 195584  }
  0xcd   : > { %v1966_v46 = vld [vmem:[%s2643_s27] ss:$0 sm:$0xff]  ;;  %s2099_s29 = smov 64   ;;  %s2100_s26 = smov 96  }
  0xce   : > { %v2373_v14 = vld [vmem:[#allocation2] sm:$0xff]  ;;  %s2101_s0 = smov 72   ;;  %s2102_s7 = smov 80  }
  0xcf   : > { %v950_v15 = vsel %vm949_vm4, %v2373_v14, 0.0  ;;  %s2103_s22 = smov 120   ;;  %s2104_s17 = smov 104  }
  0xd0   : > { %951 = vadd.xlane.f32.xlu0 %v950_v15  ;;  %1013 = vmatpush.bf16.msra.mxu0 %v1861_v29  ;;  %s2105_s20 = smov 112   ;;  %s2106_s21 = smov 40  }
  0xd1   : > { %s2641_s30 = scalar_lea.vmem %s2640_s15, %s2300_s2  ;;  %s2107_s15 = smov 48  }
  0xd2   : > { %v1973_v17 = vpop.eup %1972  ;;  %v1964_v39 = vld [vmem:[%s2641_s30] ss:$0 sm:$0xff]  ;;  %s2108_s30 = smov 56   ;;  %s2109_s24 = smov 16  }
  0xd3   : > { %v954_v18 = vmul.f32 32.0, %v1973_v17  ;;  %vm958_vm5 = vweird.f32 %v1973_v17  ;;  %s2110_s25 = smov 8   ;;  %s2111_s3 = smov 24  }
  0xd4   : > { %s2644_s27 = scalar_lea.vmem %s2571_s10, %s2300_s2 }
  0xd5   : > { %v955_v19 = vsub.f32 1.0, %v954_v18 }
  0xd7   : > { %v956_v20 = vmul.f32 %v1973_v17, %v955_v19 }
  0xd9   : > { %v957_v21 = vadd.f32 %v1973_v17, %v956_v20 }
  0xdb   : > { %v2377_v22 = vsel %vm958_vm5, %v1973_v17, %v957_v21 }
 0x143   : > { %v952_v23 = vpop.xlane.xlu0 %951 }
 0x144   : > { %v960_v24 = vmul.f32 %v2377_v22, %v952_v23 }
 0x146   : > { %v961_v25 = vsub.f32 %v2373_v14, %v960_v24 }
 0x148   : > { %v962_v26 = vmul.f32 %v961_v25, %v961_v25 }
 0x14a   : > { %v963_v27 = vsel %vm949_vm4, %v962_v26, 0.0 }
 0x14b   : > { %964 = vadd.xlane.f32.xlu0 %v963_v27 }
 0x1be   : > { %v965_v30 = vpop.xlane.xlu0 %964 }
 0x1bf   : > { %v966_v31 = vmul.f32 %v965_v30, %v2377_v22 }
 0x1c1   : > { %v967_v32 = vadd.f32 1e-05, %v966_v31 }
 0x1c3   : > { %1974 = vrsqrt.f32 %v967_v32  ;;  %vm974_vm7 = vweird.f32 %v967_v32 }
 0x1c9   : > { %v1975_v33 = vpop.eup %1974 }
 0x1ca   : > { %v969_v34 = vmul.f32 %v1975_v33, %v967_v32  ;;  %vm975_vm6 = vweird.f32 %v1975_v33 }
 0x1cb   : > { %vm976_vm8 = vmor %vm974_vm7, %vm975_vm6 }
 0x1cc   : > { %v970_v35 = vmul.f32 %v1975_v33, %v969_v34 }
 0x1ce   : > { %v971_v36 = vmul.f32 0.5, %v970_v35 }
 0x1d0   : > { %v972_v37 = vsub.f32 1.5, %v971_v36 }
 0x1d2   : > { %v973_v38 = vmul.f32 %v1975_v33, %v972_v37 }
 0x1d4   : > { %v977_v40 = vsel %vm976_vm8, %v1975_v33, %v973_v38 }
 0x1d5   : > { %v978_v41 = vmul.f32 %v977_v40, %v961_v25 }
 0x1d7   : > { %v982_v43 = vmul.f32 %v1964_v39, %v978_v41 }
 0x1d9   : > { %v986_v44 = vadd.f32 %v1965_v42, %v982_v43 }
 0x1db   : > { %v987_v45 = vpack.c.bf16 %v986_v44, %v986_v44 }
 0x1dd   : > { %1783 = vmatmul.msk.bf16.vlgmr.msra.gmra.mxu0 %vm949_vm4, %v987_v45 }
 0x25a   : > { %v1015_v47 = vpop.f32.mrf.mxu0 }
 0x25b   : > { %v1016_v48 = vadd.f32 %v1966_v46, %v1015_v47 }
 0x25d   : > { %v1019_v49 = vpack.c.bf16 %v1016_v48, %v1016_v48 }
 0x25f   : > { %v1021_v50 = vunpack.c.l.b16 %v1019_v49 }
 0x261   : > { %v2401_v51 = vpack.c.b16 %v1021_v50, %v1021_v50 }
 0x262   : > { %v1017_v52 = vpop.f32.mrf.mxu0 }
 0x263   : > { %1081 = vrot.lane.b32.xlu0 %v2401_v51, %s2098_s4  ;;  %1057 = vrot.lane.b32.xlu2 %v2401_v51, %s2099_s29  ;;  %s2645_s4 = scalar_lea.vmem %s2572_s11, %s2300_s2 }
 0x264   : > { %1023 = vrot.lane.b32.xlu1 %v2401_v51, %s2100_s26 }
 0x26b   : > { %1193 = vrot.lane.b32.xlu0 %v2401_v51, %s2101_s0  ;;  %s2646_s0 = scalar_lea.vmem %s2573_s12, %s2300_s2 }
 0x273   : > { %1137 = vrot.lane.b32.xlu0 %v2401_v51, %s2102_s7 }
 0x2bd   : > { %v1058_v53 = vpop.permute.xlu2 %1057 }
 0x2be   : > { %v1064_v54 = vsel %vm1062_vm9, %v1058_v53, 0 }
 0x2bf   : > { %1073 = vmatpush.bf16.msra.mxu2 %v1064_v54 }
 0x2d5   : > { %v1082_v55 = vpop.permute.xlu0 %1081 }
 0x2d6   : > { %v1024_v56 = vpop.permute.xlu1 %1023  ;;  %v1087_v57 = vsel %vm1025_vm10, %v1082_v55, 0 }
 0x2d7   : > { %v1030_v58 = vsel %vm1025_vm10, %v1024_v56, 0  ;;  %1096 = vmatpush.bf16.xpose.msrb.mxu2 %v1087_v57 }
 0x2d8   : > { %1039 = vmatpush.bf16.xpose.msra.mxu1 %v1030_v58 }
 0x2dd   : > { %v1194_v59 = vpop.permute.xlu0 %1193 }
 0x2de   : > { %v1199_v60 = vsel %vm1025_vm10, %v1194_v59, 0 }
 0x2df   : > { %1784 = vmatmul.msk.bf16.vlgmr.msra.gmra.mxu1 %vm1025_vm10, %v1019_v49  ;;  %1208 = vmatpush.bf16.xpose.msra.mxu3 %v1199_v60 }
 0x2e5   : > { %v1138_v61 = vpop.permute.xlu0 %1137 }
 0x2e6   : > { %v1143_v62 = vsel %vm1025_vm10, %v1138_v61, 0 }
 0x2e7   : > { %1152 = vmatpush.bf16.xpose.msrb.mxu0 %v1143_v62 }
 0x35c   : > { %v1041_v63 = vpop.f32.mrf.mxu1 }
 0x35d   : > { %v1045_v0 = vsel %vm1025_vm10, %v1041_v63, -inf }
 0x35e   : > { %1046 = vmax.xlane.f32.xlu1 %v1045_v0 }
 0x364   : > { %v1043_v1 = vpop.f32.mrf.mxu1 }
 0x3d1   : > { %v1047_v2 = vpop.xlane.xlu1 %1046 }
 0x3d2   : > { %v1048_v3 = vsub.f32 %v1041_v63, %v1047_v2  ;;  %v1864_v2 = vld [vmem:[%s2329_s5 + $0x8] sm:$0xff] }
 0x3d3   : > { %1289 = vmatpush.bf16.msra.mxu0 %v1864_v2 }
 0x3d4   : > { %v1049_v4 = vmul.f32 1.442695, %v1048_v3  ;;  %v1863_v3 = vld [vmem:[%s2329_s5] sm:$0xff] }
 0x3d6   : > { %1976 = vpow2.f32 %v1049_v4 }
 0x3d7   : > { %1290 = vmatpush.bf16.msra.mxu0 %v1863_v3 }
 0x3dc   : > { %v1977_v5 = vpop.eup %1976 }
 0x3dd   : > { %v1051_v6 = vsel %vm1025_vm10, %v1977_v5, 0.0 }
 0x3de   : > { %1052 = vadd.xlane.f32.xlu2 %v1051_v6 }
 0x3f6   : > { %1079 = vrot.lane.b32.xlu2 %v2401_v51, %s2103_s22 }
 0x3fe   : > { %1191 = vrot.lane.b32.xlu2 %v2401_v51, %s2104_s17  ;;  %s2647_s17 = scalar_lea.vmem %s2575_s14, %s2300_s2 }
 0x406   : > { %1135 = vrot.lane.b32.xlu2 %v2401_v51, %s2105_s20 }
 0x451   : > { %v1053_v7 = vpop.xlane.xlu2 %1052 }
 0x452   : > { %1978 = vrcp.f32 %v1053_v7 }
 0x458   : > { %v1979_v8 = vpop.eup %1978 }
 0x459   : > { %v1080_v9 = vpop.permute.xlu2 %1079  ;;  %v1055_v10 = vmul.f32 %v1979_v8, %v1977_v5 }
 0x45b   : > { %v1056_v11 = vpack.c.bf16 %v1055_v10, %v1055_v10 }
 0x45d   : > { %1785 = vmatmul.msk.bf16.vlgmr.msra.gmra.mxu2 %vm1025_vm10, %v1056_v11  ;;  %v1967_v11 = vld [vmem:[%s2644_s27] ss:$0 sm:$0xff] }
 0x461   : > { %v1192_v12 = vpop.permute.xlu2 %1191 }
 0x462   : > { %1790 = vmatmul.msk.bf16.vlgmr.msra.gmra.mxu3 %vm1025_vm10, %v1192_v12 }
 0x469   : > { %v1136_v13 = vpop.permute.xlu2 %1135 }
 0x46a   : > { %1788 = vmatmul.msk.bf16.vlgmr.msrb.gmra.mxu0 %vm1025_vm10, %v1136_v13 }
 0x46d   : > { %1786 = vmatmul.msk.bf16.vlgmr.msrb.gmra.mxu2 %vm1025_vm10, %v1080_v9 }
 0x4e0   : > { %v2423_v15 = vpop.f32.mrf.mxu2 }
 0x4e5   : > { %v1210_v16 = vpop.f32.mrf.mxu3 }
 0x4e6   : > { %v1214_v17 = vsel %vm1025_vm10, %v1210_v16, -inf }
 0x4e7   : > { %1215 = vmax.xlane.f32.xlu0 %v1214_v17  ;;  %v1154_v18 = vpop.f32.mrf.mxu0 }
 0x4e8   : > { %v1077_v19 = vpop.f32.mrf.mxu2  ;;  %v1158_v20 = vsel %vm1025_vm10, %v1154_v18, -inf }
 0x4e9   : > { %1159 = vmax.xlane.f32.xlu2 %v1158_v20 }
 0x4ed   : > { %v1212_v21 = vpop.f32.mrf.mxu3 }
 0x4ef   : > { %v1156_v23 = vpop.f32.mrf.mxu0 }
 0x4f0   : > { %v1098_v24 = vpop.f32.mrf.mxu2 }
 0x4f1   : > { %v1102_v25 = vsel %vm1025_vm10, %v1098_v24, -inf }
 0x4f2   : > { %1103 = vmax.xlane.f32.xlu1 %v1102_v25  ;;  %v1865_v25 = vld [vmem:[%s2346_s19] sm:$0xff] }
 0x4f8   : > { %v1100_v26 = vpop.f32.mrf.mxu2 }
 0x501   : > { %1226 = vrot.lane.b32.xlu2 %v2401_v51, %s2106_s21 }
 0x55a   : > { %v1216_v37 = vpop.xlane.xlu0 %1215 }
 0x55b   : > { %v1217_v38 = vsub.f32 %v1210_v16, %v1216_v37 }
 0x55c   : > { %v1160_v27 = vpop.xlane.xlu2 %1159 }
 0x55d   : > { %v1161_v28 = vsub.f32 %v1154_v18, %v1160_v27  ;;  %v1218_v39 = vmul.f32 1.442695, %v1217_v38 }
 0x55f   : > { %v1162_v29 = vmul.f32 1.442695, %v1161_v28  ;;  %v1873_v28 = vld [vmem:[%s2356_s9 + $0x30] sm:$0xff] }
 0x561   : > { %1980 = vpow2.f32 %v1162_v29 }
 0x564   : > { %v1227_v50 = vpop.permute.xlu2 %1226 }
 0x565   : > { %v1104_v30 = vpop.xlane.xlu1 %1103  ;;  %v1232_v54 = vsel %vm1062_vm9, %v1227_v50, 0 }
 0x566   : > { %v1105_v31 = vsub.f32 %v1098_v24, %v1104_v30  ;;  %v1866_v24 = vld [vmem:[%s2346_s19 + $0x8] sm:$0xff] }
 0x567   : > { %v1981_v32 = vpop.eup %1980 }
 0x568   : > { %v1106_v33 = vmul.f32 1.442695, %v1105_v31  ;;  %v1164_v34 = vsel %vm1025_vm10, %v1981_v32, 0.0 }
 0x569   : > { %1165 = vadd.xlane.f32.xlu0 %v1164_v34 }
 0x56a   : > { %1982 = vpow2.f32 %v1106_v33 }
 0x56b   : > { %1984 = vpow2.f32 %v1218_v39  ;;  %v1969_v39 = vld [vmem:[%s2646_s0] ss:$0 sm:$0xff] }
 0x570   : > { %v1983_v35 = vpop.eup %1982 }
 0x571   : > { %v1108_v36 = vsel %vm1025_vm10, %v1983_v35, 0.0  ;;  %v1985_v40 = vpop.eup %1984 }
 0x572   : > { %1109 = vadd.xlane.f32.xlu1 %v1108_v36  ;;  %v1220_v41 = vsel %vm1025_vm10, %v1985_v40, 0.0  ;;  %v1968_v36 = vld [vmem:[%s2645_s4] ss:$0 sm:$0xff] }
 0x57d   : > { %1170 = vrot.lane.b32.xlu0 %v2401_v51, %s2107_s15  ;;  %s2649_s15 = sld [smem:[#allocation9_spill]] }
 0x583   : > { %p1842_p1 = scmp.ne.s32.totalorder %s2649_s15, 1 }
 0x584   : > { %s2651_s23 = sld [smem:[#allocation29_spill]] (!%p1842_p1) }
 0x585   : > { %s2652_s5 = sld [smem:[#allocation30_spill]] (!%p1842_p1) }
 0x586   : > { %s2653_s26 = sld [smem:[#allocation32_spill]] (!%p1842_p1) }
 0x58b   : > { %1114 = vrot.lane.b32.xlu1 %v2401_v51, %s2108_s30  ;;  %s2650_s30 = sld [smem:[#allocation31_spill]] (!%p1842_p1) }
 0x5b5   : > { %1221 = vadd.xlane.f32.xlu1 %v1220_v41 }
 0x5dc   : > { %v1166_v42 = vpop.xlane.xlu0 %1165 }
 0x5dd   : > { %1986 = vrcp.f32 %v1166_v42 }
 0x5e3   : > { %v1987_v43 = vpop.eup %1986 }
 0x5e4   : > { %v1168_v44 = vmul.f32 %v1987_v43, %v1981_v32  ;;  %v1872_v43 = vld [vmem:[%s2356_s9 + $0x28] sm:$0xff] }
 0x5e5   : > { %v1110_v46 = vpop.xlane.xlu1 %1109 }
 0x5e6   : > { %v1169_v48 = vpack.c.bf16 %v1168_v44, %v1168_v44  ;;  %1988 = vrcp.f32 %v1110_v46  ;;  %v1871_v44 = vld [vmem:[%s2356_s9 + $0x20] sm:$0xff]  ;;  %v1869_v46 = vld [vmem:[%s2356_s9 + $0x10] sm:$0xff] }
 0x5ec   : > { %v1989_v49 = vpop.eup %1988 }
 0x5ed   : > { %v1112_v51 = vmul.f32 %v1989_v49, %v1983_v35  ;;  %v1970_v49 = vld [vmem:[%s2647_s17] ss:$0 sm:$0xff] }
 0x5ef   : > { %v1171_v45 = vpop.permute.xlu0 %1170  ;;  %v1113_v55 = vpack.c.bf16 %v1112_v51, %v1112_v51 }
 0x5f0   : > { %v1176_v47 = vsel %vm1062_vm9, %v1171_v45, 0  ;;  %v1870_v45 = vld [vmem:[%s2356_s9 + $0x18] sm:$0xff] }
 0x5f1   : > { %1185 = vmatpush.bf16.msrb.mxu1 %v1176_v47  ;;  %v1868_v47 = vld [vmem:[%s2356_s9 + $0x8] sm:$0xff] }
 0x5f4   : > { %1789 = vmatmul.msk.bf16.vlgmr.msrb.gmra.mxu1 %vm1025_vm10, %v1169_v48  ;;  %v1867_v48 = vld [vmem:[%s2356_s9] sm:$0xff] }
 0x5f5   : > { %1376 = vmatpush.bf16.msra.mxu1 %v1866_v24 }
 0x5f9   : > { %1377 = vmatpush.bf16.msra.mxu1 %v1865_v25 }
 0x5fd   : > { %v1115_v52 = vpop.permute.xlu1 %1114 }
 0x5fe   : > { %v1120_v53 = vsel %vm1062_vm9, %v1115_v52, 0 }
 0x5ff   : > { %1129 = vmatpush.bf16.msra.mxu2 %v1120_v53 }
 0x602   : > { %1787 = vmatmul.msk.bf16.vlgmr.msra.gmra.mxu2 %vm1025_vm10, %v1113_v55 }
 0x603   : > { %1241 = vmatpush.bf16.msrb.mxu2 %v1232_v54 }
 0x628   : > { %v1222_v56 = vpop.xlane.xlu1 %1221 }
 0x629   : > { %1990 = vrcp.f32 %v1222_v56 }
 0x62f   : > { %v1991_v57 = vpop.eup %1990 }
 0x630   : > { %v1224_v58 = vmul.f32 %v1991_v57, %v1985_v40 }
 0x632   : > { %v1225_v59 = vpack.c.bf16 %v1224_v58, %v1224_v58 }
 0x634   : > { %1791 = vmatmul.msk.bf16.vlgmr.msrb.gmra.mxu2 %vm1025_vm10, %v1225_v59 }
 0x671   : > { %v1187_v60 = vpop.f32.mrf.mxu1 }
 0x672   : > { %1252 = vrot.lane.b32.xlu0 %v1187_v60, %s2109_s24 }
 0x679   : > { %v1189_v61 = vpop.f32.mrf.mxu1 }
 0x685   : > { %v1131_v62 = vpop.f32.mrf.mxu2 }
 0x686   : > { %1248 = vrot.lane.b32.xlu2 %v1131_v62, %s2110_s25 }
 0x68d   : > { %v1133_v63 = vpop.f32.mrf.mxu2 }
 0x68e   : > { %v1971_v63 = vld [vmem:[%s872_s16] ss:$0 sm:$0xff] }
 0x6b7   : > { %v1243_v0 = vpop.f32.mrf.mxu2 }
 0x6b8   : > { %1256 = vrot.lane.b32.xlu2 %v1243_v0, %s2111_s3 }
 0x6bf   : > { %v1245_v1 = vpop.f32.mrf.mxu2 }
 0x6e0   : > { %v1249_v4 = vpop.permute.xlu2 %1248 }
 0x6e1   : > { %v1259_v6 = vsel %vm1025_vm10, %v2423_v15, %v1249_v4 }
 0x6e4   : > { %v1253_v5 = vpop.permute.xlu0 %1252 }
 0x6e5   : > { %v1261_v7 = vsel %vm1260_vm11, %v1259_v6, %v1253_v5 }
 0x712   : > { %v1257_v8 = vpop.permute.xlu2 %1256 }
 0x713   : > { %v1263_v9 = vsel %vm1262_vm12, %v1261_v7, %v1257_v8 }
 0x714   : > { %v1264_v10 = vpack.c.bf16 %v1263_v9, %v1263_v9 }
 0x716   : > { %1800 = vmatmul.msk.bf16.vlgmr.msra.gmra.mxu0 %vm949_vm4, %v1264_v10 }
 0x793   : > { %v1292_v12 = vpop.f32.mrf.mxu0 }
 0x794   : > { %v1293_v13 = vadd.f32 %v1967_v11, %v1292_v12 }
 0x796   : > { %v2451_v16 = vadd.f32 %v1293_v13, %v2373_v14  ;;  %v1874_v14 = vld [vmem:[%s2356_s9 + $0x38] sm:$0xff] }
 0x797   : > { %1444 = vmatpush.bf16.msrb.mxu3 %v1874_v14 }
 0x798   : > { %v1321_v15 = vsel %vm949_vm4, %v2451_v16, 0.0 }
 0x799   : > { %1322 = vadd.xlane.f32.xlu0 %v1321_v15 }
 0x79b   : > { %v1294_v17 = vpop.f32.mrf.mxu0  ;;  %1445 = vmatpush.bf16.msrb.mxu3 %v1873_v28 }
 0x79f   : > { %1446 = vmatpush.bf16.msrb.mxu3 %v1872_v43 }
 0x7a3   : > { %1447 = vmatpush.bf16.msrb.mxu3 %v1871_v44 }
 0x7a7   : > { %1448 = vmatpush.bf16.msrb.mxu3 %v1870_v45 }
 0x7ab   : > { %1449 = vmatpush.bf16.msrb.mxu3 %v1869_v46 }
 0x7af   : > { %1450 = vmatpush.bf16.msrb.mxu3 %v1868_v47 }
 0x7b3   : > { %1451 = vmatpush.bf16.msrb.mxu3 %v1867_v48 }
 0x80c   : > { %v1323_v18 = vpop.xlane.xlu0 %1322 }
 0x80d   : > { %v1324_v19 = vmul.f32 %v1323_v18, %v2377_v22 }
 0x80f   : > { %v1325_v20 = vsub.f32 %v2451_v16, %v1324_v19 }
 0x811   : > { %v1326_v21 = vmul.f32 %v1325_v20, %v1325_v20 }
 0x813   : > { %v1327_v23 = vsel %vm949_vm4, %v1326_v21, 0.0 }
 0x814   : > { %1328 = vadd.xlane.f32.xlu1 %v1327_v23 }
 0x887   : > { %v1329_v26 = vpop.xlane.xlu1 %1328 }
 0x888   : > { %v1330_v27 = vmul.f32 %v1329_v26, %v2377_v22 }
 0x88a   : > { %v1331_v29 = vadd.f32 1e-05, %v1330_v27 }
 0x88c   : > { %1992 = vrsqrt.f32 %v1331_v29  ;;  %vm1338_vm14 = vweird.f32 %v1331_v29 }
 0x892   : > { %v1993_v30 = vpop.eup %1992 }
 0x893   : > { %v1333_v31 = vmul.f32 %v1993_v30, %v1331_v29  ;;  %vm1339_vm13 = vweird.f32 %v1993_v30 }
 0x894   : > { %vm1340_vm15 = vmor %vm1338_vm14, %vm1339_vm13 }
 0x895   : > { %v1334_v32 = vmul.f32 %v1993_v30, %v1333_v31 }
 0x897   : > { %v1335_v33 = vmul.f32 0.5, %v1334_v32 }
 0x899   : > { %v1336_v34 = vsub.f32 1.5, %v1335_v33 }
 0x89b   : > { %v1337_v35 = vmul.f32 %v1993_v30, %v1336_v34 }
 0x89d   : > { %v1341_v37 = vsel %vm1340_vm15, %v1993_v30, %v1337_v35 }
 0x89e   : > { %v1342_v38 = vmul.f32 %v1341_v37, %v1325_v20 }
 0x8a0   : > { %v1346_v40 = vmul.f32 %v1968_v36, %v1342_v38 }
 0x8a2   : > { %v1350_v41 = vadd.f32 %v1969_v39, %v1346_v40 }
 0x8a4   : > { %v1351_v42 = vpack.c.bf16 %v1350_v41, %v1350_v41 }
 0x8a6   : > { %1809 = vmatmul.msk.bf16.vlgmr.msra.gmra.mxu1 %vm949_vm4, %v1351_v42 }
 0x923   : > { %v1379_v50 = vpop.f32.mrf.mxu1 }
 0x924   : > { %v1380_v51 = vadd.f32 %v1970_v49, %v1379_v50 }
 0x926   : > { %v1384_v52 = vmul.f32 %v1380_v51, %v1380_v51  ;;  %v1383_v59 = vmul.f32 0.5, %v1380_v51 }
 0x928   : > { %v1385_v53 = vmul.f32 %v1384_v52, %v1380_v51 }
 0x92a   : > { %v1386_v54 = vmul.f32 0.044715, %v1385_v53 }
 0x92b   : > { %v1381_v55 = vpop.f32.mrf.mxu1 }
 0x92c   : > { %v1387_v56 = vadd.f32 %v1386_v54, %v1380_v51 }
 0x92e   : > { %v1388_v57 = vmul.f32 0.7978846, %v1387_v56 }
 0x930   : > { %1994 = vtanh.f32 %v1388_v57 }
 0x936   : > { %v1995_v58 = vpop.eup %1994 }
 0x937   : > { %v1390_v60 = vadd.f32 1.0, %v1995_v58 }
 0x939   : > { %v1391_v61 = vmul.f32 %v1390_v60, %v1383_v59 }
 0x93b   : > { %v1392_v62 = vpack.c.bf16 %v1391_v61, %v1391_v61 }
 0x93d   : > { %1452 = vmatmul.bf16.vlgmr.msrb.gmra.mxu3 %v1392_v62 }
 0x9c0   : > { %v1453_v0 = vpop.f32.mrf.mxu3 }
 0x9c1   : > { %v1454_v1 = vadd.f32 %v1971_v63, %v1453_v0 }
 0x9c3   : > { %v1457_v2 = vadd.f32 %v1454_v1, %v2451_v16 }
 0x9c4   : > { %1462 = sbr.rel (%p1842_p1) target bundleno = 2909 (0xb5d), region = 112 }
 0x9c5   : > { %1458 = vst.msk [vmem:[#allocation2] sm:$0xff] %vm949_vm4, %v1457_v2 }
 0x9c8   : > { %v1455_v3 = vpop.f32.mrf.mxu3 }
 0x9c9   : > { %v1465_v4 = vsel %vm949_vm4, %v1457_v2, 0.0  ;;  %v1876_v10 = vld [vmem:[%s2650_s30 + $0x8] sm:$0xff]  ;;  %v1875_v11 = vld [vmem:[%s2650_s30] sm:$0xff] }
 0x9ca   : > { %1466 = vadd.xlane.f32.xlu0 %v1465_v4  ;;  %1525 = vmatpush.bf16.msra.mxu0 %v1876_v10  ;;  %v1996_v23 = vld [vmem:[%s2651_s23] ss:$0 sm:$0xff] }
 0x9cb   : > { %v1998_v28 = vld [vmem:[%s2653_s26] ss:$0 sm:$0xff] }
 0x9ce   : > { %1526 = vmatpush.bf16.msra.mxu0 %v1875_v11 }
 0xa3d   : > { %v1467_v5 = vpop.xlane.xlu0 %1466 }
 0xa3e   : > { %v1468_v6 = vmul.f32 %v1467_v5, %v2377_v22 }
 0xa40   : > { %v1469_v7 = vsub.f32 %v1457_v2, %v1468_v6 }
 0xa42   : > { %v1470_v8 = vmul.f32 %v1469_v7, %v1469_v7 }
 0xa44   : > { %v1471_v9 = vsel %vm949_vm4, %v1470_v8, 0.0 }
 0xa45   : > { %1472 = vadd.xlane.f32.xlu0 %v1471_v9 }
 0xab8   : > { %v1473_v12 = vpop.xlane.xlu0 %1472 }
 0xab9   : > { %v1474_v13 = vmul.f32 %v1473_v12, %v2377_v22  ;;  %v1997_v22 = vld [vmem:[%s2652_s5] ss:$0 sm:$0xff] }
 0xabb   : > { %v1475_v16 = vadd.f32 1e-05, %v1474_v13 }
 0xabd   : > { %1999 = vrsqrt.f32 %v1475_v16  ;;  %vm1482_vm1 = vweird.f32 %v1475_v16 }
 0xac3   : > { %v2000_v15 = vpop.eup %1999 }
 0xac4   : > { %v1477_v17 = vmul.f32 %v2000_v15, %v1475_v16  ;;  %vm1483_vm0 = vweird.f32 %v2000_v15 }
 0xac5   : > { %vm1484_vm2 = vmor %vm1482_vm1, %vm1483_vm0 }
 0xac6   : > { %v1478_v18 = vmul.f32 %v2000_v15, %v1477_v17 }
 0xac8   : > { %v1479_v19 = vmul.f32 0.5, %v1478_v18 }
 0xaca   : > { %v1480_v20 = vsub.f32 1.5, %v1479_v19 }
 0xacc   : > { %v1481_v21 = vmul.f32 %v2000_v15, %v1480_v20 }
 0xace   : > { %v1485_v24 = vsel %vm1484_vm2, %v2000_v15, %v1481_v21 }
 0xacf   : > { %v1486_v25 = vmul.f32 %v1485_v24, %v1469_v7 }
 0xad1   : > { %v1490_v14 = vmul.f32 %v1996_v23, %v1486_v25 }
 0xad3   : > { %v1494_v26 = vadd.f32 %v1997_v22, %v1490_v14 }
 0xad5   : > { %v1495_v27 = vpack.c.bf16 %v1494_v26, %v1494_v26 }
 0xad7   : > { %1851 = vmatmul.msk.bf16.vlgmr.msra.gmra.mxu0 %vm949_vm4, %v1495_v27 }
 0xb54   : > { %v1528_v29 = vpop.f32.mrf.mxu0 }
 0xb55   : > { %v1529_v30 = vadd.f32 %v1998_v28, %v1528_v29 }
 0xb57   : > { %v1532_v31 = vpack.c.bf16 %v1529_v30, %v1529_v30 }
 0xb59   : > { %1533 = vst [vmem:[%s820_s1] sm:$0xf] %v1532_v31 }
 0xb5c   : > { %v1530_v32 = vpop.f32.mrf.mxu0 }
 0xb5d PF: > { %s2654_s0 = sld [smem:[#allocation10_spill]]  ;;  %s1547_s2 = sshll.u32 %s820_s1, 4  ;;  %s1548_s2 = int_to_ptr.vmem [resolvable:$true] %s1547_s2 }
 0xb5e   : > { %s2655_s7 = sld [smem:[#allocation7_spill]] }
 0xb5f   : > { %s2657_s21 = sld [smem:[#allocation33_spill]] }
 0xb63   : > { %s1853_s17 = sshll.u32 %s2654_s0, 2 }
 0xb64   : > { %s2658_s24 = sand.u32 1, %s2655_s7  }
 0xb65   : > { %s1545_s15 = scalar_lea.hbm %s2657_s21, %s1853_s17  ;;  %s1535_s25 = scalar_lea.sflag [#allocation4], %s2658_s24 }
 0xb66   : > { %s1549_s16 = sshll.u32 %s1545_s15, 4  ;;  %s2021_s19 = scalar_lea.hbm %s2657_s21, 8  ;;  %s1550_s16 = int_to_ptr.hbm [resolvable:$true] %s1549_s16 }
 0xb67   : > { %s2015_s3 = sshra.s32 %s1550_s16, 4  ;;  %s2016_s3 = int_to_ptr.hbm [resolvable:$true] %s2015_s3 }
 0xb68   : > { %s2017_s18 = scalar_lea.hbm %s2016_s3, 4  ;;  %p2022_p6 = scmp.lt.s32.totalorder %s2016_s3, %s2657_s21 }
 0xb69   : > { %p2018_p2 = scmp.ne.s32.totalorder %s2016_s3, %s2017_s18  ;;  %p2023_p7 = scmp.lt.s32.totalorder %s2021_s19, %s2017_s18 }
 0xb6b   : > { %p2019_p4 = pnand %p2018_p2, %p2271_p3  ;;  %p2024_p8 = por %p2023_p7, %p2022_p6 }
 0xb6d   : > { %p2020_p5 = pneg %p2019_p4 }
 0xb6f   : > { %p2025_p10 = pnand %p2024_p8, %p2020_p5 }
 0xb71   : > { %2028 = shalt.err (!%p2025_p10)
}
 0xb72   : > { %1877 = dma.vmem_to_hbm [thread:$0]  (%p2271_p3), %s1548_s2, 64, %s1550_s16, %s1535_s25  }
 0xb73 PF: > { %s2659_s28 = sld [smem:[#allocation13_spill]] }
 0xb74   : > { %s2660_s1 = sld [smem:[#allocation6_spill]] }
 0xb79   : > { %p1883_p11 = scmp.ge.s32.totalorder %s2659_s28, 2 }
 0xb7a   : > { %s1561_s26 = sand.u32 1, %s2660_s1  }
 0xb7b   : > { %p1880_p12 = pnand %p1883_p11, %p2281_p9  ;;  %s1562_s0 = scalar_lea.sflag [#allocation4], %s1561_s26 }
 0xb7d   : > { %p1881_p13 = pneg %p1880_p12 }
 0xb7f   : > { %2062 = dma.done.wait (%p1881_p13), %s1562_s0, 64  }
 0xb80   : > { %2064 = vsyncadd (%p1881_p13), %s1562_s0, 4294967232  ;;  %s34_s0 = sadd.s32 1, %s2659_s28   ;;  %s2662_s2 = sld [smem:[#allocation7_spill]] }
 0xb81   : > { %p31_p0 = scmp.ge.s32.totalorder %s34_s0, 6   ;;  %s2663_s25 = sld [smem:[#allocation8_spill]] }
 0xb82   : > { %s2664_s26 = sld [smem:[#allocation18_spill]] }
 0xb83   : > { %s2665_s27 = sld [smem:[#allocation11_spill]]  ;;  %33 = sbr.rel (!%p31_p0) target bundleno = 21 (0x15), region = 186 }
 0xb84   : > { %s2666_s3 = sld [smem:[#allocation12_spill]] }
 0xb85   : > { %s2667_s28 = sld [smem:[#allocation14_spill]] }
 0xb86   : > { %s2668_s29 = sld [smem:[#allocation16_spill]] }
 0xb88   :  { %1568 = vsyncpa [#allocation4], 1 }
 0xb89   :  { %1570 = vsyncpa [#allocation4 + $0x1], 1 }

// kernel: tpu_custom_call.1
= control target key start
LH: loop header
LB: loop body
LE: loop exit
PB: predicated region body
PF: predicated region fallthrough
CT: control target
= control target key end

     0   :  { %s2561_s0 = inlined_call_operand.vmem [shape: f32[16,16], index: 0, kind: input, shape index: {}]   ;;  %s2562_s1 = inlined_call_operand.vmem [shape: f32[16,4], index: 1, kind: input, shape index: {}]   ;;  %s2563_s2 = inlined_call_operand.vmem [shape: bf16[16,32], index: 2, kind: input, shape index: {}]   ;;  %s2564_s3 = inlined_call_operand.vmem [shape: bf16[4,32], index: 3, kind: input, shape index: {}]   ;;  %s2565_s4 = inlined_call_operand.vmem [shape: f32[1,32], index: 4, kind: input, shape index: {}]   ;;  %s2566_s5 = inlined_call_operand.vmem [shape: f32[2,1,32], index: 5, kind: input, shape index: {}]   ;;  %s2567_s6 = inlined_call_operand.vmem [shape: f32[2,1,32], index: 6, kind: input, shape index: {}]   ;;  %s2568_s7 = inlined_call_operand.vmem [shape: bf16[2,32,96], index: 7, kind: input, shape index: {}]   ;;  %s2569_s8 = inlined_call_operand.vmem [shape: f32[2,1,96], index: 8, kind: input, shape index: {}]   ;;  %s2570_s9 = inlined_call_operand.vmem [shape: bf16[2,32,32], index: 9, kind: input, shape index: {}]   ;;  %s2571_s10 = inlined_call_operand.vmem [shape: f32[2,1,32], index: 10, kind: input, shape index: {}]   ;;  %s2572_s11 = inlined_call_operand.vmem [shape: f32[2,1,32], index: 11, kind: input, shape index: {}]   ;;  %s2573_s12 = inlined_call_operand.vmem [shape: f32[2,1,32], index: 12, kind: input, shape index: {}]   ;;  %s2574_s13 = inlined_call_operand.vmem [shape: bf16[2,32,128], index: 13, kind: input, shape index: {}]   ;;  %s2575_s14 = inlined_call_operand.vmem [shape: f32[2,1,128], index: 14, kind: input, shape index: {}]   ;;  %s2576_s15 = inlined_call_operand.vmem [shape: bf16[2,128,32], index: 15, kind: input, shape index: {}]   ;;  %s2577_s16 = inlined_call_operand.vmem [shape: f32[2,1,32], index: 16, kind: input, shape index: {}]   ;;  %s2578_s17 = inlined_call_operand.vmem [shape: f32[1,32], index: 17, kind: input, shape index: {}]   ;;  %s2579_s18 = inlined_call_operand.vmem [shape: f32[1,32], index: 18, kind: input, shape index: {}]   ;;  %s2580_s19 = inlined_call_operand.vmem [shape: bf16[32,128], index: 19, kind: input, shape index: {}]   ;;  %s2581_s20 = inlined_call_operand.vmem [shape: f32[1,128], index: 20, kind: input, shape index: {}]   ;;  %s2582_s21 = inlined_call_operand.hbm [shape: bf16[2,8,128], index: 21, kind: output, shape index: {}]  }
   0x1   :  { %2599 = sst [smem:[#allocation19_spill]] %s2561_s0 }
   0x2   :  { %2600 = sst [smem:[#allocation20_spill]] %s2562_s1 }
   0x3   :  { %2601 = sst [smem:[#allocation21_spill]] %s2563_s2 }
   0x4   :  { %2602 = sst [smem:[#allocation22_spill]] %s2564_s3 }
   0x5   :  { %2603 = sst [smem:[#allocation23_spill]] %s2565_s4 }
   0x6   :  { %2604 = sst [smem:[#allocation24_spill]] %s2566_s5 }
   0x7   :  { %2605 = sst [smem:[#allocation25_spill]] %s2568_s7 }
   0x8   :  { %2606 = sst [smem:[#allocation26_spill]] %s2570_s9 }
   0x9   :  { %2607 = sst [smem:[#allocation27_spill]] %s2576_s15 }
   0xa   :  { %2608 = sst [smem:[#allocation28_spill]] %s2577_s16 }
   0xb   :  { %2609 = sst [smem:[#allocation29_spill]] %s2578_s17 }
   0xc   :  { %2610 = sst [smem:[#allocation30_spill]] %s2579_s18 }
   0xd   :  { %2611 = sst [smem:[#allocation31_spill]] %s2580_s19 }
   0xe   :  { %2612 = sst [smem:[#allocation32_spill]] %s2581_s20 }
   0xf   :  { %2613 = sst [smem:[#allocation33_spill]] %s2582_s21 }
  0x10   :  { %26 = vsyncpa [#allocation4], 0 }
  0x11   :  { %28 = vsyncpa [#allocation4 + $0x1], 0  ;;  %s2222_s2 = smov 0   ;;  %s2224_s25 = smov 0  }
  0x12   :  { %s2226_s26 = smov 0   ;;  %s2228_s27 = smov 0  }
  0x13   :  { %s2230_s3 = smov 0   ;;  %s2232_s28 = smov 0  }
  0x14   :  { %s2234_s29 = smov 0   ;;  %s2236_s0 = smov 0  }
  0x15 LB: > { %2614 = sst [smem:[#allocation6_spill]] %s2067_s2  ;;  %s1752_s4 = sadd.s32 4294967295, %s2095_s0   ;;  %s2095_s0 = sphi %s2236_s0, %s34_s0   ;;  %s2091_s29 = sphi %s2234_s29, %s2668_s29   ;;  %s2087_s28 = sphi %s2232_s28, %s2667_s28   ;;  %s2083_s3 = sphi %s2230_s3, %s2666_s3   ;;  %s2079_s27 = sphi %s2228_s27, %s2665_s27   ;;  %s2075_s26 = sphi %s2226_s26, %s2664_s26   ;;  %s2071_s25 = sphi %s2224_s25, %s2663_s25   ;;  %s2067_s2 = sphi %s2222_s2, %s2662_s2  }
  0x16   : > { %2615 = sst [smem:[#allocation7_spill]] %s2071_s25  ;;  %s1753_s30 = sadd.s32 4294967294, %s2095_s0  }
  0x17   : > { %2616 = sst [smem:[#allocation8_spill]] %s2075_s26  ;;  %s43_s5 = sadd.s32 1, %s2087_s28 }
  0x18   : > { %2617 = sst [smem:[#allocation9_spill]] %s2079_s27  ;;  %p44_p0 = scmp.ge.s32.totalorder %s43_s5, 2 }
  0x19   : > { %2618 = sst [smem:[#allocation10_spill]] %s2083_s3  ;;  %s46_s22 = sadd.s32 1, %s2091_s29 }
  0x1a   : > { %2619 = sst [smem:[#allocation11_spill]] %s2087_s28  ;;  %p574_p1 = scmp.ne.s32.totalorder %s2075_s26, %s2071_s25 }
  0x1b   : > { %2620 = sst [smem:[#allocation12_spill]] %s2091_s29  ;;  %p575_p2 = scmp.eq.s32.totalorder %s1752_s4, 3 }
  0x1c   : > { %2621 = sst [smem:[#allocation13_spill]] %s2095_s0  ;;  %s2670_s5 = smov (%p44_p0, %s43_s5), 0 }
  0x1d   : > { %2622 = sst [smem:[#allocation14_spill]] %s2670_s5  ;;  %s2672_s22 = smov (!%p44_p0, %s46_s22), %s2091_s29 }
  0x1e   : > { %p2271_p3 = por %p575_p2, %p574_p1  ;;  %p580_p4 = scmp.ne.s32.totalorder %s2071_s25, %s2067_s2 }
  0x1f   : > { %p48_p5 = scmp.ge.s32.totalorder %s2672_s22, 2  ;;  %p581_p6 = scmp.eq.s32.totalorder %s1753_s30, 3 }
  0x20   : > { %s2623_s23 = scalar_select %p2271_p3, 1, 0 }
  0x21   : > { %p1756_p7 = scmp.ge.s32.totalorder %s2095_s0, 1  ;;  %p714_p8 = scmp.lt.s32.totalorder %s2095_s0, 5 }
  0x22   : > { %2624 = sst [smem:[#allocation15_spill]] %s2623_s23  ;;  %s2674_s22 = smov (%p48_p5, %s2672_s22), 0 }
  0x23   : > { %2625 = sst [smem:[#allocation16_spill]] %s2674_s22  ;;  %p2281_p9 = por %p581_p6, %p580_p4 }
  0x24   : > { %p715_p10 = pnand %p1756_p7, %p714_p8  ;;  %s561_s24 = ssub.s32 %s2091_s29, %s2674_s22 }
  0x25   : > { %s2626_s1 = scalar_select %p2281_p9, 1, 0 }
  0x26   : > { %s564_s4 = sadd.s32 1, %s2075_s26  ;;  %p562_p11 = scmp.eq.s32.totalorder %s561_s24, 0 }
  0x27   : > { %2627 = sst [smem:[#allocation17_spill]] %s2626_s1  ;;  %718 = sbr.rel (%p715_p10) target bundleno = 2931 (0xb73), region = 104 }
  0x28   : > { %s2289_s5 = scalar_select %p562_p11, %s2075_s26, %s564_s4  }
  0x29   : > { %s2588_s30 = sand.u32 (!%p715_p10), 1, %s2071_s25   ;;  %p821_p12 = scmp.lt.s32.totalorder (!%p715_p10), %s2083_s3, 1 }
  0x2a   : > { %2628 = sst [smem:[#allocation18_spill]] %s2289_s5  ;;  %s2295_s28 = sshll.u32 (!%p715_p10), %s2588_s30, 2 }
  0x2b   : > { %p829_p13 = scmp.lt.s32.totalorder (!%p715_p10), %s2079_s27, 1  ;;  %s2629_s29 = sld [smem:[#allocation19_spill]] (!%p715_p10) }
  0x2c   : > { %s822_s1 = scalar_select %p821_p12, %s2083_s3, 1 }
  0x2d   : > { %s2300_s2 = scalar_select %p829_p13, %s2079_s27, 1 }
  0x2e   : > { %s1758_s24 = sshll.u32 %s822_s1, 3  ;;  %s2630_s0 = sld [smem:[#allocation20_spill]] }
  0x2f   : > { %s1856_s27 = sshll.u32 %s2300_s2, 4  ;;  %s2632_s7 = sld [smem:[#allocation25_spill]] }
  0x30   : > { %s2633_s9 = sld [smem:[#allocation26_spill]]  ;;  %s2346_s19 = scalar_lea.vmem %s2574_s13, %s1856_s27 }
  0x31   : > { %s824_s30 = scalar_lea.vmem %s2629_s29, %s1758_s24  ;;  %s2634_s17 = sld [smem:[#allocation27_spill]] }
  0x32   : > { %s820_s1 = scalar_lea.vmem [#allocation3], %s2295_s28  ;;  %s2636_s22 = sld [smem:[#allocation9_spill]] }
  0x34   : > { %s828_s21 = scalar_lea.vmem %s2630_s0, %s1758_s24  ;;  %s2635_s24 = sld [smem:[#allocation28_spill]] }
  0x35   : > { %s2324_s15 = scalar_lea.vmem %s2632_s7, %s1856_s27  ;;  %s1859_s7 = sshll.u32 %s2300_s2, 6 }
  0x36   : > { %s2329_s5 = scalar_lea.vmem %s2633_s9, %s1856_s27 }
  0x37   : > { %s2356_s9 = scalar_lea.vmem %s2634_s17, %s1859_s7 }
  0x38   : > { %p1768_p0 = scmp.ne.s32.totalorder %s2636_s22, 0 }
  0x39   : > { %s2637_s29 = sld [smem:[#allocation22_spill]] (!%p1768_p0) }
  0x3a   : > { %s872_s16 = scalar_lea.vmem %s2635_s24, %s2300_s2  ;;  %877 = sbr.rel (%p1768_p0) target bundleno = 203 (0xcb), region = 108 }
  0x3b   : > { %s2638_s20 = sld [smem:[#allocation21_spill]] (!%p1768_p0) }
  0x3c   : > { %s2639_s17 = sld [smem:[#allocation23_spill]] (!%p1768_p0) }
  0x3f   : > { %v884_v0 = vld [vmem:[%s2637_s29] sm:$0x3]  ;;  %vm889_vm0 = vcmask 1041408   ;;  %vm885_vm1 = vcmask 31744   ;;  %vm912_vm2 = vcmask 130048   ;;  %vm934_vm3 = vcmask 261120  }
  0x40   : > { %v882_v2 = vld [vmem:[%s828_s21] sm:$0xff]  ;;  %v891_v3 = vsel %vm889_vm0, %v884_v0, 0 }
  0x41   : > { %v1860_v1 = vld [vmem:[%s2638_s20] sm:$0xff]  ;;  %v883_v4 = vpack.c.bf16 %v882_v2, %v882_v2  ;;  %900 = vmatpush.bf16.msra.mxu0 %v891_v3 }
  0x42   : > { %v878_v5 = vld [vmem:[%s824_s30] sm:$0xff]  ;;  %923 = vmatpush.bf16.msra.mxu1 %v1860_v1 }
  0x43   : > { %v879_v6 = vpack.c.bf16 %v878_v5, %v878_v5  ;;  %v1963_v7 = vld [vmem:[%s2639_s17] ss:$0 sm:$0xff] }
  0x44   : > { %1769 = vmatmul.msk.bf16.vlgmr.msra.gmra.mxu0 %vm885_vm1, %v883_v4 }
  0x45   : > { %1774 = vmatmul.msk.bf16.vlgmr.msra.gmra.mxu1 %vm912_vm2, %v879_v6 }
  0xc1   : > { %v902_v8 = vpop.f32.mrf.mxu0 }
  0xc2   : > { %v925_v9 = vpop.f32.mrf.mxu1 }
  0xc3   : > { %v926_v10 = vadd.f32 %v925_v9, %v902_v8 }
  0xc5   : > { %v933_v11 = vadd.f32 %v1963_v7, %v926_v10 }
  0xc7   : > { %935 = vst.msk [vmem:[#allocation2] sm:$0xff] %vm934_vm3, %v933_v11 }
  0xc9   : > { %v904_v12 = vpop.f32.mrf.mxu0 }
  0xca   : > { %v927_v13 = vpop.f32.mrf.mxu1 }
  0xcb PF: > { %vm949_vm4 = vcmask 261120   ;;  %v2097_v16 = vmov 32.0   ;;  %v1862_v28 = vld [vmem:[%s2324_s15 + $0x8] sm:$0xff]  ;;  %v1861_v29 = vld [vmem:[%s2324_s15] sm:$0xff]  ;;  %s2640_s15 = sld [smem:[#allocation24_spill]]  ;;  %s2642_s3 = scalar_lea.vmem %s2567_s6, %s2300_s2  ;;  %vm1062_vm9 = vcmask 1043456  }
  0xcc   : > { %1972 = vrcp.f32 %v2097_v16  ;;  %1012 = vmatpush.bf16.msra.mxu0 %v1862_v28  ;;  %v1965_v42 = vld [vmem:[%s2642_s3] ss:$0 sm:$0xff]  ;;  %s2643_s27 = scalar_lea.vmem %s2569_s8, %s2300_s2  ;;  %s2098_s4 = smov 88   ;;  %vm1025_vm10 = vcmask 64512   ;;  %vm1260_vm11 = vcmask 130048   ;;  %vm1262_vm12 = vcmask 195584  }
  0xcd   : > { %v1966_v46 = vld [vmem:[%s2643_s27] ss:$0 sm:$0xff]  ;;  %s2099_s29 = smov 64   ;;  %s2100_s26 = smov 96  }
  0xce   : > { %v2373_v14 = vld [vmem:[#allocation2] sm:$0xff]  ;;  %s2101_s0 = smov 72   ;;  %s2102_s7 = smov 80  }
  0xcf   : > { %v950_v15 = vsel %vm949_vm4, %v2373_v14, 0.0  ;;  %s2103_s22 = smov 120   ;;  %s2104_s17 = smov 104  }
  0xd0   : > { %951 = vadd.xlane.f32.xlu0 %v950_v15  ;;  %1013 = vmatpush.bf16.msra.mxu0 %v1861_v29  ;;  %s2105_s20 = smov 112   ;;  %s2106_s21 = smov 40  }
  0xd1   : > { %s2641_s30 = scalar_lea.vmem %s2640_s15, %s2300_s2  ;;  %s2107_s15 = smov 48  }
  0xd2   : > { %v1973_v17 = vpop.eup %1972  ;;  %v1964_v39 = vld [vmem:[%s2641_s30] ss:$0 sm:$0xff]  ;;  %s2108_s30 = smov 56   ;;  %s2109_s24 = smov 16  }
  0xd3   : > { %v954_v18 = vmul.f32 32.0, %v1973_v17  ;;  %vm958_vm5 = vweird.f32 %v1973_v17  ;;  %s2110_s25 = smov 8   ;;  %s2111_s3 = smov 24  }
  0xd4   : > { %s2644_s27 = scalar_lea.vmem %s2571_s10, %s2300_s2 }
  0xd5   : > { %v955_v19 = vsub.f32 1.0, %v954_v18 }
  0xd7   : > { %v956_v20 = vmul.f32 %v1973_v17, %v955_v19 }
  0xd9   : > { %v957_v21 = vadd.f32 %v1973_v17, %v956_v20 }
  0xdb   : > { %v2377_v22 = vsel %vm958_vm5, %v1973_v17, %v957_v21 }
 0x143   : > { %v952_v23 = vpop.xlane.xlu0 %951 }
 0x144   : > { %v960_v24 = vmul.f32 %v2377_v22, %v952_v23 }
 0x146   : > { %v961_v25 = vsub.f32 %v2373_v14, %v960_v24 }
 0x148   : > { %v962_v26 = vmul.f32 %v961_v25, %v961_v25 }
 0x14a   : > { %v963_v27 = vsel %vm949_vm4, %v962_v26, 0.0 }
 0x14b   : > { %964 = vadd.xlane.f32.xlu0 %v963_v27 }
 0x1be   : > { %v965_v30 = vpop.xlane.xlu0 %964 }
 0x1bf   : > { %v966_v31 = vmul.f32 %v965_v30, %v2377_v22 }
 0x1c1   : > { %v967_v32 = vadd.f32 1e-05, %v966_v31 }
 0x1c3   : > { %1974 = vrsqrt.f32 %v967_v32  ;;  %vm974_vm7 = vweird.f32 %v967_v32 }
 0x1c9   : > { %v1975_v33 = vpop.eup %1974 }
 0x1ca   : > { %v969_v34 = vmul.f32 %v1975_v33, %v967_v32  ;;  %vm975_vm6 = vweird.f32 %v1975_v33 }
 0x1cb   : > { %vm976_vm8 = vmor %vm974_vm7, %vm975_vm6 }
 0x1cc   : > { %v970_v35 = vmul.f32 %v1975_v33, %v969_v34 }
 0x1ce   : > { %v971_v36 = vmul.f32 0.5, %v970_v35 }
 0x1d0   : > { %v972_v37 = vsub.f32 1.5, %v971_v36 }
 0x1d2   : > { %v973_v38 = vmul.f32 %v1975_v33, %v972_v37 }
 0x1d4   : > { %v977_v40 = vsel %vm976_vm8, %v1975_v33, %v973_v38 }
 0x1d5   : > { %v978_v41 = vmul.f32 %v977_v40, %v961_v25 }
 0x1d7   : > { %v982_v43 = vmul.f32 %v1964_v39, %v978_v41 }
 0x1d9   : > { %v986_v44 = vadd.f32 %v1965_v42, %v982_v43 }
 0x1db   : > { %v987_v45 = vpack.c.bf16 %v986_v44, %v986_v44 }
 0x1dd   : > { %1783 = vmatmul.msk.bf16.vlgmr.msra.gmra.mxu0 %vm949_vm4, %v987_v45 }
 0x25a   : > { %v1015_v47 = vpop.f32.mrf.mxu0 }
 0x25b   : > { %v1016_v48 = vadd.f32 %v1966_v46, %v1015_v47 }
 0x25d   : > { %v1019_v49 = vpack.c.bf16 %v1016_v48, %v1016_v48 }
 0x25f   : > { %v1021_v50 = vunpack.c.l.b16 %v1019_v49 }
 0x261   : > { %v2401_v51 = vpack.c.b16 %v1021_v50, %v1021_v50 }
 0x262   : > { %v1017_v52 = vpop.f32.mrf.mxu0 }
 0x263   : > { %1081 = vrot.lane.b32.xlu0 %v2401_v51, %s2098_s4  ;;  %1057 = vrot.lane.b32.xlu2 %v2401_v51, %s2099_s29  ;;  %s2645_s4 = scalar_lea.vmem %s2572_s11, %s2300_s2 }
 0x264   : > { %1023 = vrot.lane.b32.xlu1 %v2401_v51, %s2100_s26 }
 0x26b   : > { %1193 = vrot.lane.b32.xlu0 %v2401_v51, %s2101_s0  ;;  %s2646_s0 = scalar_lea.vmem %s2573_s12, %s2300_s2 }
 0x273   : > { %1137 = vrot.lane.b32.xlu0 %v2401_v51, %s2102_s7 }
 0x2bd   : > { %v1058_v53 = vpop.permute.xlu2 %1057 }
 0x2be   : > { %v1064_v54 = vsel %vm1062_vm9, %v1058_v53, 0 }
 0x2bf   : > { %1073 = vmatpush.bf16.msra.mxu2 %v1064_v54 }
 0x2d5   : > { %v1082_v55 = vpop.permute.xlu0 %1081 }
 0x2d6   : > { %v1024_v56 = vpop.permute.xlu1 %1023  ;;  %v1087_v57 = vsel %vm1025_vm10, %v1082_v55, 0 }
 0x2d7   : > { %v1030_v58 = vsel %vm1025_vm10, %v1024_v56, 0  ;;  %1096 = vmatpush.bf16.xpose.msrb.mxu2 %v1087_v57 }
 0x2d8   : > { %1039 = vmatpush.bf16.xpose.msra.mxu1 %v1030_v58 }
 0x2dd   : > { %v1194_v59 = vpop.permute.xlu0 %1193 }
 0x2de   : > { %v1199_v60 = vsel %vm1025_vm10, %v1194_v59, 0 }
 0x2df   : > { %1784 = vmatmul.msk.bf16.vlgmr.msra.gmra.mxu1 %vm1025_vm10, %v1019_v49  ;;  %1208 = vmatpush.bf16.xpose.msra.mxu3 %v1199_v60 }
 0x2e5   : > { %v1138_v61 = vpop.permute.xlu0 %1137 }
 0x2e6   : > { %v1143_v62 = vsel %vm1025_vm10, %v1138_v61, 0 }
 0x2e7   : > { %1152 = vmatpush.bf16.xpose.msrb.mxu0 %v1143_v62 }
 0x35c   : > { %v1041_v63 = vpop.f32.mrf.mxu1 }
 0x35d   : > { %v1045_v0 = vsel %vm1025_vm10, %v1041_v63, -inf }
 0x35e   : > { %1046 = vmax.xlane.f32.xlu1 %v1045_v0 }
 0x364   : > { %v1043_v1 = vpop.f32.mrf.mxu1 }
 0x3d1   : > { %v1047_v2 = vpop.xlane.xlu1 %1046 }
 0x3d2   : > { %v1048_v3 = vsub.f32 %v1041_v63, %v1047_v2  ;;  %v1864_v2 = vld [vmem:[%s2329_s5 + $0x8] sm:$0xff] }
 0x3d3   : > { %1289 = vmatpush.bf16.msra.mxu0 %v1864_v2 }
 0x3d4   : > { %v1049_v4 = vmul.f32 1.442695, %v1048_v3  ;;  %v1863_v3 = vld [vmem:[%s2329_s5] sm:$0xff] }
 0x3d6   : > { %1976 = vpow2.f32 %v1049_v4 }
 0x3d7   : > { %1290 = vmatpush.bf16.msra.mxu0 %v1863_v3 }
 0x3dc   : > { %v1977_v5 = vpop.eup %1976 }
 0x3dd   : > { %v1051_v6 = vsel %vm1025_vm10, %v1977_v5, 0.0 }
 0x3de   : > { %1052 = vadd.xlane.f32.xlu2 %v1051_v6 }
 0x3f6   : > { %1079 = vrot.lane.b32.xlu2 %v2401_v51, %s2103_s22 }
 0x3fe   : > { %1191 = vrot.lane.b32.xlu2 %v2401_v51, %s2104_s17  ;;  %s2647_s17 = scalar_lea.vmem %s2575_s14, %s2300_s2 }
 0x406   : > { %1135 = vrot.lane.b32.xlu2 %v2401_v51, %s2105_s20 }
 0x451   : > { %v1053_v7 = vpop.xlane.xlu2 %1052 }
 0x452   : > { %1978 = vrcp.f32 %v1053_v7 }
 0x458   : > { %v1979_v8 = vpop.eup %1978 }
 0x459   : > { %v1080_v9 = vpop.permute.xlu2 %1079  ;;  %v1055_v10 = vmul.f32 %v1979_v8, %v1977_v5 }
 0x45b   : > { %v1056_v11 = vpack.c.bf16 %v1055_v10, %v1055_v10 }
 0x45d   : > { %1785 = vmatmul.msk.bf16.vlgmr.msra.gmra.mxu2 %vm1025_vm10, %v1056_v11  ;;  %v1967_v11 = vld [vmem:[%s2644_s27] ss:$0 sm:$0xff] }
 0x461   : > { %v1192_v12 = vpop.permute.xlu2 %1191 }
 0x462   : > { %1790 = vmatmul.msk.bf16.vlgmr.msra.gmra.mxu3 %vm1025_vm10, %v1192_v12 }
 0x469   : > { %v1136_v13 = vpop.permute.xlu2 %1135 }
 0x46a   : > { %1788 = vmatmul.msk.bf16.vlgmr.msrb.gmra.mxu0 %vm1025_vm10, %v1136_v13 }
 0x46d   : > { %1786 = vmatmul.msk.bf16.vlgmr.msrb.gmra.mxu2 %vm1025_vm10, %v1080_v9 }
 0x4e0   : > { %v2423_v15 = vpop.f32.mrf.mxu2 }
 0x4e5   : > { %v1210_v16 = vpop.f32.mrf.mxu3 }
 0x4e6   : > { %v1214_v17 = vsel %vm1025_vm10, %v1210_v16, -inf }
 0x4e7   : > { %1215 = vmax.xlane.f32.xlu0 %v1214_v17  ;;  %v1154_v18 = vpop.f32.mrf.mxu0 }
 0x4e8   : > { %v1077_v19 = vpop.f32.mrf.mxu2  ;;  %v1158_v20 = vsel %vm1025_vm10, %v1154_v18, -inf }
 0x4e9   : > { %1159 = vmax.xlane.f32.xlu2 %v1158_v20 }
 0x4ed   : > { %v1212_v21 = vpop.f32.mrf.mxu3 }
 0x4ef   : > { %v1156_v23 = vpop.f32.mrf.mxu0 }
 0x4f0   : > { %v1098_v24 = vpop.f32.mrf.mxu2 }
 0x4f1   : > { %v1102_v25 = vsel %vm1025_vm10, %v1098_v24, -inf }
 0x4f2   : > { %1103 = vmax.xlane.f32.xlu1 %v1102_v25  ;;  %v1865_v25 = vld [vmem:[%s2346_s19] sm:$0xff] }
 0x4f8   : > { %v1100_v26 = vpop.f32.mrf.mxu2 }
 0x501   : > { %1226 = vrot.lane.b32.xlu2 %v2401_v51, %s2106_s21 }
 0x55a   : > { %v1216_v37 = vpop.xlane.xlu0 %1215 }
 0x55b   : > { %v1217_v38 = vsub.f32 %v1210_v16, %v1216_v37 }
 0x55c   : > { %v1160_v27 = vpop.xlane.xlu2 %1159 }
 0x55d   : > { %v1161_v28 = vsub.f32 %v1154_v18, %v1160_v27  ;;  %v1218_v39 = vmul.f32 1.442695, %v1217_v38 }
 0x55f   : > { %v1162_v29 = vmul.f32 1.442695, %v1161_v28  ;;  %v1873_v28 = vld [vmem:[%s2356_s9 + $0x30] sm:$0xff] }
 0x561   : > { %1980 = vpow2.f32 %v1162_v29 }
 0x564   : > { %v1227_v50 = vpop.permute.xlu2 %1226 }
 0x565   : > { %v1104_v30 = vpop.xlane.xlu1 %1103  ;;  %v1232_v54 = vsel %vm1062_vm9, %v1227_v50, 0 }
 0x566   : > { %v1105_v31 = vsub.f32 %v1098_v24, %v1104_v30  ;;  %v1866_v24 = vld [vmem:[%s2346_s19 + $0x8] sm:$0xff] }
 0x567   : > { %v1981_v32 = vpop.eup %1980 }
 0x568   : > { %v1106_v33 = vmul.f32 1.442695, %v1105_v31  ;;  %v1164_v34 = vsel %vm1025_vm10, %v1981_v32, 0.0 }
 0x569   : > { %1165 = vadd.xlane.f32.xlu0 %v1164_v34 }
 0x56a   : > { %1982 = vpow2.f32 %v1106_v33 }
 0x56b   : > { %1984 = vpow2.f32 %v1218_v39  ;;  %v1969_v39 = vld [vmem:[%s2646_s0] ss:$0 sm:$0xff] }
 0x570   : > { %v1983_v35 = vpop.eup %1982 }
 0x571   : > { %v1108_v36 = vsel %vm1025_vm10, %v1983_v35, 0.0  ;;  %v1985_v40 = vpop.eup %1984 }
 0x572   : > { %1109 = vadd.xlane.f32.xlu1 %v1108_v36  ;;  %v1220_v41 = vsel %vm1025_vm10, %v1985_v40, 0.0  ;;  %v1968_v36 = vld [vmem:[%s2645_s4] ss:$0 sm:$0xff] }
 0x57d   : > { %1170 = vrot.lane.b32.xlu0 %v2401_v51, %s2107_s15  ;;  %s2649_s15 = sld [smem:[#allocation9_spill]] }
 0x583   : > { %p1842_p1 = scmp.ne.s32.totalorder %s2649_s15, 1 }
 0x584   : > { %s2651_s23 = sld [smem:[#allocation29_spill]] (!%p1842_p1) }
 0x585   : > { %s2652_s5 = sld [smem:[#allocation30_spill]] (!%p1842_p1) }
 0x586   : > { %s2653_s26 = sld [smem:[#allocation32_spill]] (!%p1842_p1) }
 0x58b   : > { %1114 = vrot.lane.b32.xlu1 %v2401_v51, %s2108_s30  ;;  %s2650_s30 = sld [smem:[#allocation31_spill]] (!%p1842_p1) }
 0x5b5   : > { %1221 = vadd.xlane.f32.xlu1 %v1220_v41 }
 0x5dc   : > { %v1166_v42 = vpop.xlane.xlu0 %1165 }
 0x5dd   : > { %1986 = vrcp.f32 %v1166_v42 }
 0x5e3   : > { %v1987_v43 = vpop.eup %1986 }
 0x5e4   : > { %v1168_v44 = vmul.f32 %v1987_v43, %v1981_v32  ;;  %v1872_v43 = vld [vmem:[%s2356_s9 + $0x28] sm:$0xff] }
 0x5e5   : > { %v1110_v46 = vpop.xlane.xlu1 %1109 }
 0x5e6   : > { %v1169_v48 = vpack.c.bf16 %v1168_v44, %v1168_v44  ;;  %1988 = vrcp.f32 %v1110_v46  ;;  %v1871_v44 = vld [vmem:[%s2356_s9 + $0x20] sm:$0xff]  ;;  %v1869_v46 = vld [vmem:[%s2356_s9 + $0x10] sm:$0xff] }
 0x5ec   : > { %v1989_v49 = vpop.eup %1988 }
 0x5ed   : > { %v1112_v51 = vmul.f32 %v1989_v49, %v1983_v35  ;;  %v1970_v49 = vld [vmem:[%s2647_s17] ss:$0 sm:$0xff] }
 0x5ef   : > { %v1171_v45 = vpop.permute.xlu0 %1170  ;;  %v1113_v55 = vpack.c.bf16 %v1112_v51, %v1112_v51 }
 0x5f0   : > { %v1176_v47 = vsel %vm1062_vm9, %v1171_v45, 0  ;;  %v1870_v45 = vld [vmem:[%s2356_s9 + $0x18] sm:$0xff] }
 0x5f1   : > { %1185 = vmatpush.bf16.msrb.mxu1 %v1176_v47  ;;  %v1868_v47 = vld [vmem:[%s2356_s9 + $0x8] sm:$0xff] }
 0x5f4   : > { %1789 = vmatmul.msk.bf16.vlgmr.msrb.gmra.mxu1 %vm1025_vm10, %v1169_v48  ;;  %v1867_v48 = vld [vmem:[%s2356_s9] sm:$0xff] }
 0x5f5   : > { %1376 = vmatpush.bf16.msra.mxu1 %v1866_v24 }
 0x5f9   : > { %1377 = vmatpush.bf16.msra.mxu1 %v1865_v25 }
 0x5fd   : > { %v1115_v52 = vpop.permute.xlu1 %1114 }
 0x5fe   : > { %v1120_v53 = vsel %vm1062_vm9, %v1115_v52, 0 }
 0x5ff   : > { %1129 = vmatpush.bf16.msra.mxu2 %v1120_v53 }
 0x602   : > { %1787 = vmatmul.msk.bf16.vlgmr.msra.gmra.mxu2 %vm1025_vm10, %v1113_v55 }
 0x603   : > { %1241 = vmatpush.bf16.msrb.mxu2 %v1232_v54 }
 0x628   : > { %v1222_v56 = vpop.xlane.xlu1 %1221 }
 0x629   : > { %1990 = vrcp.f32 %v1222_v56 }
 0x62f   : > { %v1991_v57 = vpop.eup %1990 }
 0x630   : > { %v1224_v58 = vmul.f32 %v1991_v57, %v1985_v40 }
 0x632   : > { %v1225_v59 = vpack.c.bf16 %v1224_v58, %v1224_v58 }
 0x634   : > { %1791 = vmatmul.msk.bf16.vlgmr.msrb.gmra.mxu2 %vm1025_vm10, %v1225_v59 }
 0x671   : > { %v1187_v60 = vpop.f32.mrf.mxu1 }
 0x672   : > { %1252 = vrot.lane.b32.xlu0 %v1187_v60, %s2109_s24 }
 0x679   : > { %v1189_v61 = vpop.f32.mrf.mxu1 }
 0x685   : > { %v1131_v62 = vpop.f32.mrf.mxu2 }
 0x686   : > { %1248 = vrot.lane.b32.xlu2 %v1131_v62, %s2110_s25 }
 0x68d   : > { %v1133_v63 = vpop.f32.mrf.mxu2 }
 0x68e   : > { %v1971_v63 = vld [vmem:[%s872_s16] ss:$0 sm:$0xff] }
 0x6b7   : > { %v1243_v0 = vpop.f32.mrf.mxu2 }
 0x6b8   : > { %1256 = vrot.lane.b32.xlu2 %v1243_v0, %s2111_s3 }
 0x6bf   : > { %v1245_v1 = vpop.f32.mrf.mxu2 }
 0x6e0   : > { %v1249_v4 = vpop.permute.xlu2 %1248 }
 0x6e1   : > { %v1259_v6 = vsel %vm1025_vm10, %v2423_v15, %v1249_v4 }
 0x6e4   : > { %v1253_v5 = vpop.permute.xlu0 %1252 }
 0x6e5   : > { %v1261_v7 = vsel %vm1260_vm11, %v1259_v6, %v1253_v5 }
 0x712   : > { %v1257_v8 = vpop.permute.xlu2 %1256 }
 0x713   : > { %v1263_v9 = vsel %vm1262_vm12, %v1261_v7, %v1257_v8 }
 0x714   : > { %v1264_v10 = vpack.c.bf16 %v1263_v9, %v1263_v9 }
 0x716   : > { %1800 = vmatmul.msk.bf16.vlgmr.msra.gmra.mxu0 %vm949_vm4, %v1264_v10 }
 0x793   : > { %v1292_v12 = vpop.f32.mrf.mxu0 }
 0x794   : > { %v1293_v13 = vadd.f32 %v1967_v11, %v1292_v12 }
 0x796   : > { %v2451_v16 = vadd.f32 %v1293_v13, %v2373_v14  ;;  %v1874_v14 = vld [vmem:[%s2356_s9 + $0x38] sm:$0xff] }
 0x797   : > { %1444 = vmatpush.bf16.msrb.mxu3 %v1874_v14 }
 0x798   : > { %v1321_v15 = vsel %vm949_vm4, %v2451_v16, 0.0 }
 0x799   : > { %1322 = vadd.xlane.f32.xlu0 %v1321_v15 }
 0x79b   : > { %v1294_v17 = vpop.f32.mrf.mxu0  ;;  %1445 = vmatpush.bf16.msrb.mxu3 %v1873_v28 }
 0x79f   : > { %1446 = vmatpush.bf16.msrb.mxu3 %v1872_v43 }
 0x7a3   : > { %1447 = vmatpush.bf16.msrb.mxu3 %v1871_v44 }
 0x7a7   : > { %1448 = vmatpush.bf16.msrb.mxu3 %v1870_v45 }
 0x7ab   : > { %1449 = vmatpush.bf16.msrb.mxu3 %v1869_v46 }
 0x7af   : > { %1450 = vmatpush.bf16.msrb.mxu3 %v1868_v47 }
 0x7b3   : > { %1451 = vmatpush.bf16.msrb.mxu3 %v1867_v48 }
 0x80c   : > { %v1323_v18 = vpop.xlane.xlu0 %1322 }
 0x80d   : > { %v1324_v19 = vmul.f32 %v1323_v18, %v2377_v22 }
 0x80f   : > { %v1325_v20 = vsub.f32 %v2451_v16, %v1324_v19 }
 0x811   : > { %v1326_v21 = vmul.f32 %v1325_v20, %v1325_v20 }
 0x813   : > { %v1327_v23 = vsel %vm949_vm4, %v1326_v21, 0.0 }
 0x814   : > { %1328 = vadd.xlane.f32.xlu1 %v1327_v23 }
 0x887   : > { %v1329_v26 = vpop.xlane.xlu1 %1328 }
 0x888   : > { %v1330_v27 = vmul.f32 %v1329_v26, %v2377_v22 }
 0x88a   : > { %v1331_v29 = vadd.f32 1e-05, %v1330_v27 }
 0x88c   : > { %1992 = vrsqrt.f32 %v1331_v29  ;;  %vm1338_vm14 = vweird.f32 %v1331_v29 }
 0x892   : > { %v1993_v30 = vpop.eup %1992 }
 0x893   : > { %v1333_v31 = vmul.f32 %v1993_v30, %v1331_v29  ;;  %vm1339_vm13 = vweird.f32 %v1993_v30 }
 0x894   : > { %vm1340_vm15 = vmor %vm1338_vm14, %vm1339_vm13 }
 0x895   : > { %v1334_v32 = vmul.f32 %v1993_v30, %v1333_v31 }
 0x897   : > { %v1335_v33 = vmul.f32 0.5, %v1334_v32 }
 0x899   : > { %v1336_v34 = vsub.f32 1.5, %v1335_v33 }
 0x89b   : > { %v1337_v35 = vmul.f32 %v1993_v30, %v1336_v34 }
 0x89d   : > { %v1341_v37 = vsel %vm1340_vm15, %v1993_v30, %v1337_v35 }
 0x89e   : > { %v1342_v38 = vmul.f32 %v1341_v37, %v1325_v20 }
 0x8a0   : > { %v1346_v40 = vmul.f32 %v1968_v36, %v1342_v38 }
 0x8a2   : > { %v1350_v41 = vadd.f32 %v1969_v39, %v1346_v40 }
 0x8a4   : > { %v1351_v42 = vpack.c.bf16 %v1350_v41, %v1350_v41 }
 0x8a6   : > { %1809 = vmatmul.msk.bf16.vlgmr.msra.gmra.mxu1 %vm949_vm4, %v1351_v42 }
 0x923   : > { %v1379_v50 = vpop.f32.mrf.mxu1 }
 0x924   : > { %v1380_v51 = vadd.f32 %v1970_v49, %v1379_v50 }
 0x926   : > { %v1384_v52 = vmul.f32 %v1380_v51, %v1380_v51  ;;  %v1383_v59 = vmul.f32 0.5, %v1380_v51 }
 0x928   : > { %v1385_v53 = vmul.f32 %v1384_v52, %v1380_v51 }
 0x92a   : > { %v1386_v54 = vmul.f32 0.044715, %v1385_v53 }
 0x92b   : > { %v1381_v55 = vpop.f32.mrf.mxu1 }
 0x92c   : > { %v1387_v56 = vadd.f32 %v1386_v54, %v1380_v51 }
 0x92e   : > { %v1388_v57 = vmul.f32 0.7978846, %v1387_v56 }
 0x930   : > { %1994 = vtanh.f32 %v1388_v57 }
 0x936   : > { %v1995_v58 = vpop.eup %1994 }
 0x937   : > { %v1390_v60 = vadd.f32 1.0, %v1995_v58 }
 0x939   : > { %v1391_v61 = vmul.f32 %v1390_v60, %v1383_v59 }
 0x93b   : > { %v1392_v62 = vpack.c.bf16 %v1391_v61, %v1391_v61 }
 0x93d   : > { %1452 = vmatmul.bf16.vlgmr.msrb.gmra.mxu3 %v1392_v62 }
 0x9c0   : > { %v1453_v0 = vpop.f32.mrf.mxu3 }
 0x9c1   : > { %v1454_v1 = vadd.f32 %v1971_v63, %v1453_v0 }
 0x9c3   : > { %v1457_v2 = vadd.f32 %v1454_v1, %v2451_v16 }
 0x9c4   : > { %1462 = sbr.rel (%p1842_p1) target bundleno = 2909 (0xb5d), region = 112 }
 0x9c5   : > { %1458 = vst.msk [vmem:[#allocation2] sm:$0xff] %vm949_vm4, %v1457_v2 }
 0x9c8   : > { %v1455_v3 = vpop.f32.mrf.mxu3 }
 0x9c9   : > { %v1465_v4 = vsel %vm949_vm4, %v1457_v2, 0.0  ;;  %v1876_v10 = vld [vmem:[%s2650_s30 + $0x8] sm:$0xff]  ;;  %v1875_v11 = vld [vmem:[%s2650_s30] sm:$0xff] }
 0x9ca   : > { %1466 = vadd.xlane.f32.xlu0 %v1465_v4  ;;  %1525 = vmatpush.bf16.msra.mxu0 %v1876_v10  ;;  %v1996_v23 = vld [vmem:[%s2651_s23] ss:$0 sm:$0xff] }
 0x9cb   : > { %v1998_v28 = vld [vmem:[%s2653_s26] ss:$0 sm:$0xff] }
 0x9ce   : > { %1526 = vmatpush.bf16.msra.mxu0 %v1875_v11 }
 0xa3d   : > { %v1467_v5 = vpop.xlane.xlu0 %1466 }
 0xa3e   : > { %v1468_v6 = vmul.f32 %v1467_v5, %v2377_v22 }
 0xa40   : > { %v1469_v7 = vsub.f32 %v1457_v2, %v1468_v6 }
 0xa42   : > { %v1470_v8 = vmul.f32 %v1469_v7, %v1469_v7 }
 0xa44   : > { %v1471_v9 = vsel %vm949_vm4, %v1470_v8, 0.0 }
 0xa45   : > { %1472 = vadd.xlane.f32.xlu0 %v1471_v9 }
 0xab8   : > { %v1473_v12 = vpop.xlane.xlu0 %1472 }
 0xab9   : > { %v1474_v13 = vmul.f32 %v1473_v12, %v2377_v22  ;;  %v1997_v22 = vld [vmem:[%s2652_s5] ss:$0 sm:$0xff] }
 0xabb   : > { %v1475_v16 = vadd.f32 1e-05, %v1474_v13 }
 0xabd   : > { %1999 = vrsqrt.f32 %v1475_v16  ;;  %vm1482_vm1 = vweird.f32 %v1475_v16 }
 0xac3   : > { %v2000_v15 = vpop.eup %1999 }
 0xac4   : > { %v1477_v17 = vmul.f32 %v2000_v15, %v1475_v16  ;;  %vm1483_vm0 = vweird.f32 %v2000_v15 }
 0xac5   : > { %vm1484_vm2 = vmor %vm1482_vm1, %vm1483_vm0 }
 0xac6   : > { %v1478_v18 = vmul.f32 %v2000_v15, %v1477_v17 }
 0xac8   : > { %v1479_v19 = vmul.f32 0.5, %v1478_v18 }
 0xaca   : > { %v1480_v20 = vsub.f32 1.5, %v1479_v19 }
 0xacc   : > { %v1481_v21 = vmul.f32 %v2000_v15, %v1480_v20 }
 0xace   : > { %v1485_v24 = vsel %vm1484_vm2, %v2000_v15, %v1481_v21 }
 0xacf   : > { %v1486_v25 = vmul.f32 %v1485_v24, %v1469_v7 }
 0xad1   : > { %v1490_v14 = vmul.f32 %v1996_v23, %v1486_v25 }
 0xad3   : > { %v1494_v26 = vadd.f32 %v1997_v22, %v1490_v14 }
 0xad5   : > { %v1495_v27 = vpack.c.bf16 %v1494_v26, %v1494_v26 }
 0xad7   : > { %1851 = vmatmul.msk.bf16.vlgmr.msra.gmra.mxu0 %vm949_vm4, %v1495_v27 }
 0xb54   : > { %v1528_v29 = vpop.f32.mrf.mxu0 }
 0xb55   : > { %v1529_v30 = vadd.f32 %v1998_v28, %v1528_v29 }
 0xb57   : > { %v1532_v31 = vpack.c.bf16 %v1529_v30, %v1529_v30 }
 0xb59   : > { %1533 = vst [vmem:[%s820_s1] sm:$0xf] %v1532_v31 }
 0xb5c   : > { %v1530_v32 = vpop.f32.mrf.mxu0 }
 0xb5d PF: > { %s2654_s0 = sld [smem:[#allocation10_spill]]  ;;  %s1547_s2 = sshll.u32 %s820_s1, 4  ;;  %s1548_s2 = int_to_ptr.vmem [resolvable:$true] %s1547_s2 }
 0xb5e   : > { %s2655_s7 = sld [smem:[#allocation7_spill]] }
 0xb5f   : > { %s2657_s21 = sld [smem:[#allocation33_spill]] }
 0xb63   : > { %s1853_s17 = sshll.u32 %s2654_s0, 2 }
 0xb64   : > { %s2658_s24 = sand.u32 1, %s2655_s7  }
 0xb65   : > { %s1545_s15 = scalar_lea.hbm %s2657_s21, %s1853_s17  ;;  %s1535_s25 = scalar_lea.sflag [#allocation4], %s2658_s24 }
 0xb66   : > { %s1549_s16 = sshll.u32 %s1545_s15, 4  ;;  %s2021_s19 = scalar_lea.hbm %s2657_s21, 8  ;;  %s1550_s16 = int_to_ptr.hbm [resolvable:$true] %s1549_s16 }
 0xb67   : > { %s2015_s3 = sshra.s32 %s1550_s16, 4  ;;  %s2016_s3 = int_to_ptr.hbm [resolvable:$true] %s2015_s3 }
 0xb68   : > { %s2017_s18 = scalar_lea.hbm %s2016_s3, 4  ;;  %p2022_p6 = scmp.lt.s32.totalorder %s2016_s3, %s2657_s21 }
 0xb69   : > { %p2018_p2 = scmp.ne.s32.totalorder %s2016_s3, %s2017_s18  ;;  %p2023_p7 = scmp.lt.s32.totalorder %s2021_s19, %s2017_s18 }
 0xb6b   : > { %p2019_p4 = pnand %p2018_p2, %p2271_p3  ;;  %p2024_p8 = por %p2023_p7, %p2022_p6 }
 0xb6d   : > { %p2020_p5 = pneg %p2019_p4 }
 0xb6f   : > { %p2025_p10 = pnand %p2024_p8, %p2020_p5 }
 0xb71   : > { %2028 = shalt.err (!%p2025_p10)
}
 0xb72   : > { %1877 = dma.vmem_to_hbm [thread:$0]  (%p2271_p3), %s1548_s2, 64, %s1550_s16, %s1535_s25  }
 0xb73 PF: > { %s2659_s28 = sld [smem:[#allocation13_spill]] }
 0xb74   : > { %s2660_s1 = sld [smem:[#allocation6_spill]] }
 0xb79   : > { %p1883_p11 = scmp.ge.s32.totalorder %s2659_s28, 2 }
 0xb7a   : > { %s1561_s26 = sand.u32 1, %s2660_s1  }
 0xb7b   : > { %p1880_p12 = pnand %p1883_p11, %p2281_p9  ;;  %s1562_s0 = scalar_lea.sflag [#allocation4], %s1561_s26 }
 0xb7d   : > { %p1881_p13 = pneg %p1880_p12 }
 0xb7f   : > { %2062 = dma.done.wait (%p1881_p13), %s1562_s0, 64  }
 0xb80   : > { %2064 = vsyncadd (%p1881_p13), %s1562_s0, 4294967232  ;;  %s34_s0 = sadd.s32 1, %s2659_s28   ;;  %s2662_s2 = sld [smem:[#allocation7_spill]] }
 0xb81   : > { %p31_p0 = scmp.ge.s32.totalorder %s34_s0, 6   ;;  %s2663_s25 = sld [smem:[#allocation8_spill]] }
 0xb82   : > { %s2664_s26 = sld [smem:[#allocation18_spill]] }
 0xb83   : > { %s2665_s27 = sld [smem:[#allocation11_spill]]  ;;  %33 = sbr.rel (!%p31_p0) target bundleno = 21 (0x15), region = 186 }
 0xb84   : > { %s2666_s3 = sld [smem:[#allocation12_spill]] }
 0xb85   : > { %s2667_s28 = sld [smem:[#allocation14_spill]] }
 0xb86   : > { %s2668_s29 = sld [smem:[#allocation16_spill]] }
 0xb88   :  { %1568 = vsyncpa [#allocation4], 1 }
 0xb89   :  { %1570 = vsyncpa [#allocation4 + $0x1], 1 }

</bundles_post_ra>
